<compile_context>
chip_gen: v7x
topology: tpu7x:2x2x1
jax: 0.10.0
libtpu: 0.0.40
codegen_flags: <defaults>
</compile_context>

<pallas_src>
import functools

import jax
import jax.numpy as jnp
from jax.experimental import pallas as pl
from jax.experimental.pallas import tpu as pltpu


def _round_up(v, m):
    return (v + m - 1) // m * m


def _gelu(x):
    # tanh-approximate GELU (torch nn.GELU default is erf; max |dev| ~5e-4).
    # tanh lowers to the EUP so the VALU cost is ~7 ops/element.
    c = 0.7978845608028654  # sqrt(2/pi)
    return 0.5 * x * (1.0 + jnp.tanh(c * (x + 0.044715 * (x * x * x))))


def inverted_block_kernel(x_ref, w1_ref, wA_ref, wB_ref, cmask_ref, w2_ref,
                          gamma_ref, beta_ref, ffn1_ref, ffn2_ref,
                          out_ref, te_ref, ts_ref, *, H, W, C):
    HW = H * W
    C2 = 2 * C
    Sx = te_ref.shape[1]              # zero-extended flat spatial extent
    b0 = (Sx - HW) // 2               # lane offset of pixel (0, 0); >= 3*W + 3

    x = x_ref[0]                      # (C, H*W), lane-dense

    # ---- zero only the halo pads (aligned stores, every step; see header) ----
    zpad = jnp.zeros((C2, b0), jnp.float32)
    te_ref[:, 0:b0] = zpad
    te_ref[:, b0 + HW:Sx] = zpad
    ts_ref[:, 0:b0] = zpad
    ts_ref[:, b0 + HW:Sx] = zpad

    # ---- pw1 (1x1) + GELU over real pixels only (gelu(0)=0, pads stay 0) ----
    # Internal channels are de-interleaved, so the cross-channel ("pair") copy
    # for the grouped conv is a single sublane half-roll of t.
    t = _gelu(jnp.dot(w1_ref[...], x, preferred_element_type=jnp.float32))  # (2C, HW)
    te_ref[:, b0:b0 + HW] = t
    ts_ref[:, b0:b0 + HW] = pltpu.roll(t, shift=C, axis=0)

    # ---- grouped 7x7 conv: 49 depthwise taps on the VPU ----
    # Lane-shifted windows of the halo'd scratch, per-channel weights broadcast
    # over lanes; the per-column boundary mask is applied once per dx.
    acc = jnp.zeros((C2, HW), jnp.float32)
    for dx in range(7):
        part = jnp.zeros((C2, HW), jnp.float32)
        for dy in range(7):
            k = dy * 7 + dx
            off = b0 + (dy - 3) * W + (dx - 3)              # static, in-bounds
            part = part + (wA_ref[k] * te_ref[:, off:off + HW]
                           + wB_ref[k] * ts_ref[:, off:off + HW])
        if dx == 3:                                         # centre column: all-ones mask
            acc = acc + part
        else:
            acc = acc + cmask_ref[dx] * part

    # ---- GELU -> pw2 (1x1, columns permuted back to original order) -> GELU
    # ---- -> residual ----
    u = _gelu(acc)                                                              # (2C, HW)
    v = _gelu(jnp.dot(w2_ref[...], u, preferred_element_type=jnp.float32))      # (C, HW)
    r = v + x                         # hifi residual (pre-LayerNorm)

    # ---- LayerNorm over channels (sublane reduction; eps = 1e-5) ----
    mu = jnp.mean(r, axis=0, keepdims=True)
    var = jnp.mean((r - mu) * (r - mu), axis=0, keepdims=True)
    y = (r - mu) * jax.lax.rsqrt(var + 1e-5) * gamma_ref[...] + beta_ref[...]

    # ---- ConvFFN: 1x1 -> GELU -> 1x1 -> GELU, inner + outer residuals ----
    f1 = _gelu(jnp.dot(ffn1_ref[...], y, preferred_element_type=jnp.float32))   # (4C, HW)
    f2 = _gelu(jnp.dot(ffn2_ref[...], f1, preferred_element_type=jnp.float32))  # (C, HW)
    out_ref[0] = (f2 + y) + x         # single lane-dense store of the final block


def _prep_weights(p, C, H, W):
    """Re-pack canonical (PyTorch-layout) params for the channels-first kernel."""
    C2 = 2 * C
    HW = H * W
    # De-interleaved order for the 2C internal channels: even group members
    # first, then odd.  Makes the grouped-conv pair swap a half-roll by C.
    perm = jnp.concatenate([jnp.arange(0, C2, 2), jnp.arange(1, C2, 2)])
    w1 = p["pw1"][perm, :]                       # (2C, C)  rows de-interleaved
    w2 = p["pw2"][:, perm]                       # (C, 2C)  cols de-interleaved
    # grouped 7x7 weights -> per-tap "self" / "pair" channel vectors, (49, 2C, 1)
    cw = p["conv1"].reshape(C2, 2, 49)           # [out, in-within-group, tap]
    wA = jnp.concatenate([cw[0::2, 0, :], cw[1::2, 1, :]], axis=0)   # self
    wB = jnp.concatenate([cw[0::2, 1, :], cw[1::2, 0, :]], axis=0)   # pair
    wA = jnp.transpose(wA, (1, 0))[:, :, None]
    wB = jnp.transpose(wB, (1, 0))[:, :, None]
    # per-column boundary masks for the 7 horizontal tap offsets, (7, 1, HW)
    # TODO(synk): derive in-kernel (iota % W compare) or drop via the halo
    # layout for production W; it is 7 KiB here, negligible.
    w_idx = jnp.arange(HW, dtype=jnp.int32) % W
    shifted = w_idx[None, :] + (jnp.arange(7, dtype=jnp.int32) - 3)[:, None]
    cmask = ((shifted >= 0) & (shifted < W)).astype(jnp.float32)[:, None, :]
    return (w1, wA, wB, cmask, w2,
            p["gamma"].reshape(C, 1), p["beta"].reshape(C, 1),
            p["ffn1"], p["ffn2"])


@jax.jit
def inverted_block(x, params):
    """x: (N, C, H, W) float32 (same layout as the PyTorch module)."""
    N, C, H, W = x.shape
    HW = H * W
    C2, C4 = 2 * C, 4 * C
    PAD = _round_up(3 * W + 3, 128)   # zero halo on each side of the flat axis
    Sx = HW + 2 * PAD

    x_flat = x.reshape(N, C, HW)      # free reshape (merges minor dims)
    (w1, wA, wB, cmask, w2,
     gamma, beta, ffn1_w, ffn2_w) = _prep_weights(params, C, H, W)

    kernel = functools.partial(inverted_block_kernel, H=H, W=W, C=C)

    def rep(shape):
        return pl.BlockSpec(shape, lambda b, n=len(shape): (0,) * n)

    out_flat = pl.pallas_call(
        kernel,
        out_shape=jax.ShapeDtypeStruct((N, C, HW), jnp.float32),
        grid_spec=pltpu.PrefetchScalarGridSpec(
            num_scalar_prefetch=0,
            grid=(N,),
            in_specs=[
                pl.BlockSpec((1, C, HW), lambda b: (b, 0, 0)),   # x
                rep((C2, C)),            # pw1 (de-interleaved rows)
                rep((49, C2, 1)),        # grouped-conv per-tap "self" weights
                rep((49, C2, 1)),        # grouped-conv per-tap "pair" weights
                rep((7, 1, HW)),         # per-column boundary masks
                rep((C, C2)),            # pw2 (de-interleaved cols)
                rep((C, 1)),             # layernorm gamma
                rep((C, 1)),             # layernorm beta
                rep((C4, C)),            # ConvFFN pw1
                rep((C, C4)),            # ConvFFN pw2
            ],
            out_specs=pl.BlockSpec((1, C, HW), lambda b: (b, 0, 0)),
            scratch_shapes=[pltpu.VMEM((C2, Sx), jnp.float32),   # halo'd t
                            pltpu.VMEM((C2, Sx), jnp.float32)],  # halo'd pair-swap
        ),
        # batch elements are independent -> megacore sharding on v7x
        compiler_params=pltpu.CompilerParams(dimension_semantics=("parallel",)),
    )(x_flat, w1, wA, wB, cmask, w2, gamma, beta, ffn1_w, ffn2_w)

    return out_flat.reshape(N, C, H, W)


def build_params(key, C):
    """Random parameters in the PyTorch (out_ch, in_ch) layout."""
    C2, C4 = 2 * C, 4 * C
    ks = jax.random.split(key, 7)
    pw1 = jax.random.normal(ks[0], (C2, C), jnp.float32) / jnp.sqrt(float(C))
    conv1 = jax.random.normal(ks[1], (C2, 2, 7, 7), jnp.float32) / jnp.sqrt(2.0 * 49.0)
    pw2 = jax.random.normal(ks[2], (C, C2), jnp.float32) / jnp.sqrt(float(C2))
    gamma = 1.0 + 0.1 * jax.random.normal(ks[3], (C,), jnp.float32)
    beta = 0.1 * jax.random.normal(ks[4], (C,), jnp.float32)
    ffn1 = jax.random.normal(ks[5], (C4, C), jnp.float32) / jnp.sqrt(float(C))
    ffn2 = jax.random.normal(ks[6], (C, C4), jnp.float32) / jnp.sqrt(float(C4))
    return dict(pw1=pw1, conv1=conv1, pw2=pw2, gamma=gamma, beta=beta,
                ffn1=ffn1, ffn2=ffn2)


def reference(x, p):
    """Pure-JAX NCHW reference mirroring the PyTorch forward (exact erf GELU)."""
    hp = jax.lax.Precision.HIGHEST
    gelu = lambda v: jax.nn.gelu(v, approximate=False)
    N, C, H, W = x.shape
    x1 = gelu(jnp.einsum("nchw,dc->ndhw", x, p["pw1"], precision=hp))
    x1 = jax.lax.conv_general_dilated(
        x1, p["conv1"], window_strides=(1, 1), padding=((3, 3), (3, 3)),
        dimension_numbers=("NCHW", "OIHW", "NCHW"),
        feature_group_count=C, precision=hp)
    x1 = gelu(x1)
    x1 = gelu(jnp.einsum("ndhw,cd->nchw", x1, p["pw2"], precision=hp))
    x3 = x1 + x
    mu = jnp.mean(x3, axis=1, keepdims=True)
    var = jnp.mean((x3 - mu) ** 2, axis=1, keepdims=True)
    x3 = (x3 - mu) / jnp.sqrt(var + 1e-5) * p["gamma"][None, :, None, None] \
        + p["beta"][None, :, None, None]
    f1 = gelu(jnp.einsum("nchw,ec->nehw", x3, p["ffn1"], precision=hp))
    f2 = gelu(jnp.einsum("nehw,ce->nchw", f1, p["ffn2"], precision=hp))
    x4 = f2 + x3
    return x4 + x


if __name__ == "__main__":
    N, C, H, W = 2, 4, 16, 16          # NCHW, same as the PyTorch module
    key = jax.random.PRNGKey(0)
    kx, kp = jax.random.split(key)
    x = jax.random.normal(kx, (N, C, H, W), jnp.float32)
    params = build_params(kp, C)

    out = jax.block_until_ready(inverted_block(x, params))
    ref = jax.block_until_ready(reference(x, params))

    err = float(jnp.max(jnp.abs(out - ref)))
    assert out.shape == (N, C, H, W), out.shape
    assert err < 1e-2, f"max abs error too large: {err}"
    print("KERNEL_OK")
</pallas_src>

<mosaic_0001>
module attributes {stable_mosaic.version = 11 : i64} {
  func.func @inverted_block_kernel(%arg0: i32, %arg1: memref<1x4x256xf32, #tpu.memory_space<vmem>>, %arg2: memref<8x4xf32, #tpu.memory_space<vmem>>, %arg3: memref<49x8x1xf32, #tpu.memory_space<vmem>>, %arg4: memref<49x8x1xf32, #tpu.memory_space<vmem>>, %arg5: memref<7x1x256xf32, #tpu.memory_space<vmem>>, %arg6: memref<4x8xf32, #tpu.memory_space<vmem>>, %arg7: memref<4x1xf32, #tpu.memory_space<vmem>>, %arg8: memref<4x1xf32, #tpu.memory_space<vmem>>, %arg9: memref<16x4xf32, #tpu.memory_space<vmem>>, %arg10: memref<4x16xf32, #tpu.memory_space<vmem>>, %arg11: memref<1x4x256xf32, #tpu.memory_space<vmem>>, %arg12: memref<8x512xf32, #tpu.memory_space<vmem>>, %arg13: memref<8x512xf32, #tpu.memory_space<vmem>>) attributes {dimension_semantics = [#tpu.dimension_semantics<parallel>], iteration_bounds = array<i64: 2>, scalar_prefetch = 0 : i64, scratch_operands = 2 : i64, tpu.core_type = #tpu.core_type<tc>, window_params = [{transform_indices = @transform_0, window_bounds = array<i64: 1, 4, 256>}, {pipeline_mode = #tpu.pipeline_mode<synchronous>, transform_indices = @transform_1, window_bounds = array<i64: 8, 4>}, {pipeline_mode = #tpu.pipeline_mode<synchronous>, transform_indices = @transform_2, window_bounds = array<i64: 49, 8, 1>}, {pipeline_mode = #tpu.pipeline_mode<synchronous>, transform_indices = @transform_3, window_bounds = array<i64: 49, 8, 1>}, {pipeline_mode = #tpu.pipeline_mode<synchronous>, transform_indices = @transform_4, window_bounds = array<i64: 7, 1, 256>}, {pipeline_mode = #tpu.pipeline_mode<synchronous>, transform_indices = @transform_5, window_bounds = array<i64: 4, 8>}, {pipeline_mode = #tpu.pipeline_mode<synchronous>, transform_indices = @transform_6, window_bounds = array<i64: 4, 1>}, {pipeline_mode = #tpu.pipeline_mode<synchronous>, transform_indices = @transform_7, window_bounds = array<i64: 4, 1>}, {pipeline_mode = #tpu.pipeline_mode<synchronous>, transform_indices = @transform_8, window_bounds = array<i64: 16, 4>}, {pipeline_mode = #tpu.pipeline_mode<synchronous>, transform_indices = @transform_9, window_bounds = array<i64: 4, 16>}, {transform_indices = @transform_10, window_bounds = array<i64: 1, 4, 256>}]} {
    %c0 = arith.constant 0 : index
    %c0_0 = arith.constant 0 : index
    %c0_1 = arith.constant 0 : index
    %0 = vector.load %arg1[%c0, %c0_0, %c0_1] : memref<1x4x256xf32, #tpu.memory_space<vmem>>, vector<1x4x256xf32>
    %1 = vector.shape_cast %0 : vector<1x4x256xf32> to vector<4x256xf32>
    %cst = arith.constant 0.000000e+00 : f32
    %2 = vector.broadcast %cst : f32 to vector<8x128xf32>
    %c0_2 = arith.constant 0 : index
    %c0_3 = arith.constant 0 : index
    %3 = vector.load %arg12[%c0_2, %c0_3] : memref<8x512xf32, #tpu.memory_space<vmem>>, vector<8x128xf32>
    tpu.vector_store %arg12[%c0_2, %c0_3], %2 {strides = array<i32>} : memref<8x512xf32, #tpu.memory_space<vmem>>, vector<8x128xf32>,
    %c0_4 = arith.constant 0 : index
    %c384 = arith.constant 384 : index
    %4 = vector.load %arg12[%c0_4, %c384] : memref<8x512xf32, #tpu.memory_space<vmem>>, vector<8x128xf32>
    tpu.vector_store %arg12[%c0_4, %c384], %2 {strides = array<i32>} : memref<8x512xf32, #tpu.memory_space<vmem>>, vector<8x128xf32>,
    %c0_5 = arith.constant 0 : index
    %c0_6 = arith.constant 0 : index
    %5 = vector.load %arg13[%c0_5, %c0_6] : memref<8x512xf32, #tpu.memory_space<vmem>>, vector<8x128xf32>
    tpu.vector_store %arg13[%c0_5, %c0_6], %2 {strides = array<i32>} : memref<8x512xf32, #tpu.memory_space<vmem>>, vector<8x128xf32>,
    %c0_7 = arith.constant 0 : index
    %c384_8 = arith.constant 384 : index
    %6 = vector.load %arg13[%c0_7, %c384_8] : memref<8x512xf32, #tpu.memory_space<vmem>>, vector<8x128xf32>
    tpu.vector_store %arg13[%c0_7, %c384_8], %2 {strides = array<i32>} : memref<8x512xf32, #tpu.memory_space<vmem>>, vector<8x128xf32>,
    %c0_9 = arith.constant 0 : index
    %c0_10 = arith.constant 0 : index
    %7 = vector.load %arg2[%c0_9, %c0_10] : memref<8x4xf32, #tpu.memory_space<vmem>>, vector<8x4xf32>
    %cst_11 = arith.constant dense<0.000000e+00> : vector<8x256xf32>
    %8 = tpu.matmul %7, %1, %cst_11 {dimension_numbers = #tpu.dot_dimension_numbers<[1], [0], [0], [1], [0, 0, 1, 1], [], []>} : vector<8x4xf32>, vector<4x256xf32>, vector<8x256xf32> -> vector<8x256xf32>
    %cst_12 = arith.constant 5.000000e-01 : f32
    %9 = vector.broadcast %cst_12 : f32 to vector<8x256xf32>
    %10 = arith.mulf %9, %8 : vector<8x256xf32>
    %11 = arith.mulf %8, %8 : vector<8x256xf32>
    %12 = arith.mulf %11, %8 : vector<8x256xf32>
    %cst_13 = arith.constant 4.471500e-02 : f32
    %13 = vector.broadcast %cst_13 : f32 to vector<8x256xf32>
    %14 = arith.mulf %13, %12 : vector<8x256xf32>
    %15 = arith.addf %8, %14 : vector<8x256xf32>
    %cst_14 = arith.constant 0.797884583 : f32
    %16 = vector.broadcast %cst_14 : f32 to vector<8x256xf32>
    %17 = arith.mulf %16, %15 : vector<8x256xf32>
    %18 = math.tanh %17 : vector<8x256xf32>
    %cst_15 = arith.constant 1.000000e+00 : f32
    %19 = vector.broadcast %cst_15 : f32 to vector<8x256xf32>
    %20 = arith.addf %19, %18 : vector<8x256xf32>
    %21 = arith.mulf %10, %20 : vector<8x256xf32>
    %c0_16 = arith.constant 0 : index
    %c128 = arith.constant 128 : index
    %22 = vector.load %arg12[%c0_16, %c128] : memref<8x512xf32, #tpu.memory_space<vmem>>, vector<8x256xf32>
    tpu.vector_store %arg12[%c0_16, %c128], %21 {strides = array<i32>} : memref<8x512xf32, #tpu.memory_space<vmem>>, vector<8x256xf32>,
    %c4_i32 = arith.constant 4 : i32
    %23 = tpu.dynamic_rotate %21 by %c4_i32 dim 0 : vector<8x256xf32>, i32 -> vector<8x256xf32>
    %c0_17 = arith.constant 0 : index
    %c128_18 = arith.constant 128 : index
    %24 = vector.load %arg13[%c0_17, %c128_18] : memref<8x512xf32, #tpu.memory_space<vmem>>, vector<8x256xf32>
    tpu.vector_store %arg13[%c0_17, %c128_18], %23 {strides = array<i32>} : memref<8x512xf32, #tpu.memory_space<vmem>>, vector<8x256xf32>,
    %cst_19 = arith.constant 0.000000e+00 : f32
    %25 = vector.broadcast %cst_19 : f32 to vector<8x256xf32>
    %cst_20 = arith.constant 0.000000e+00 : f32
    %26 = vector.broadcast %cst_20 : f32 to vector<8x256xf32>
    %c0_21 = arith.constant 0 : index
    %c0_22 = arith.constant 0 : index
    %c0_23 = arith.constant 0 : index
    %27 = vector.load %arg3[%c0_21, %c0_22, %c0_23] : memref<49x8x1xf32, #tpu.memory_space<vmem>>, vector<1x8x1xf32>
    %28 = vector.shape_cast %27 : vector<1x8x1xf32> to vector<8x1xf32>
    %c0_24 = arith.constant 0 : index
    %c77 = arith.constant 77 : index
    %29 = vector.load %arg12[%c0_24, %c77] : memref<8x512xf32, #tpu.memory_space<vmem>>, vector<8x256xf32>
    %30 = vector.broadcast %28 : vector<8x1xf32> to vector<8x256xf32>
    %31 = arith.mulf %30, %29 : vector<8x256xf32>
    %c0_25 = arith.constant 0 : index
    %c0_26 = arith.constant 0 : index
    %c0_27 = arith.constant 0 : index
    %32 = vector.load %arg4[%c0_25, %c0_26, %c0_27] : memref<49x8x1xf32, #tpu.memory_space<vmem>>, vector<1x8x1xf32>
    %33 = vector.shape_cast %32 : vector<1x8x1xf32> to vector<8x1xf32>
    %c0_28 = arith.constant 0 : index
    %c77_29 = arith.constant 77 : index
    %34 = vector.load %arg13[%c0_28, %c77_29] : memref<8x512xf32, #tpu.memory_space<vmem>>, vector<8x256xf32>
    %35 = vector.broadcast %33 : vector<8x1xf32> to vector<8x256xf32>
    %36 = arith.mulf %35, %34 : vector<8x256xf32>
    %37 = arith.addf %31, %36 : vector<8x256xf32>
    %38 = arith.addf %26, %37 : vector<8x256xf32>
    %c7 = arith.constant 7 : index
    %c0_30 = arith.constant 0 : index
    %c0_31 = arith.constant 0 : index
    %39 = vector.load %arg3[%c7, %c0_30, %c0_31] : memref<49x8x1xf32, #tpu.memory_space<vmem>>, vector<1x8x1xf32>
    %40 = vector.shape_cast %39 : vector<1x8x1xf32> to vector<8x1xf32>
    %c0_32 = arith.constant 0 : index
    %c93 = arith.constant 93 : index
    %41 = vector.load %arg12[%c0_32, %c93] : memref<8x512xf32, #tpu.memory_space<vmem>>, vector<8x256xf32>
    %42 = vector.broadcast %40 : vector<8x1xf32> to vector<8x256xf32>
    %43 = arith.mulf %42, %41 : vector<8x256xf32>
    %c7_33 = arith.constant 7 : index
    %c0_34 = arith.constant 0 : index
    %c0_35 = arith.constant 0 : index
    %44 = vector.load %arg4[%c7_33, %c0_34, %c0_35] : memref<49x8x1xf32, #tpu.memory_space<vmem>>, vector<1x8x1xf32>
    %45 = vector.shape_cast %44 : vector<1x8x1xf32> to vector<8x1xf32>
    %c0_36 = arith.constant 0 : index
    %c93_37 = arith.constant 93 : index
    %46 = vector.load %arg13[%c0_36, %c93_37] : memref<8x512xf32, #tpu.memory_space<vmem>>, vector<8x256xf32>
    %47 = vector.broadcast %45 : vector<8x1xf32> to vector<8x256xf32>
    %48 = arith.mulf %47, %46 : vector<8x256xf32>
    %49 = arith.addf %43, %48 : vector<8x256xf32>
    %50 = arith.addf %38, %49 : vector<8x256xf32>
    %c14 = arith.constant 14 : index
    %c0_38 = arith.constant 0 : index
    %c0_39 = arith.constant 0 : index
    %51 = vector.load %arg3[%c14, %c0_38, %c0_39] : memref<49x8x1xf32, #tpu.memory_space<vmem>>, vector<1x8x1xf32>
    %52 = vector.shape_cast %51 : vector<1x8x1xf32> to vector<8x1xf32>
    %c0_40 = arith.constant 0 : index
    %c109 = arith.constant 109 : index
    %53 = vector.load %arg12[%c0_40, %c109] : memref<8x512xf32, #tpu.memory_space<vmem>>, vector<8x256xf32>
    %54 = vector.broadcast %52 : vector<8x1xf32> to vector<8x256xf32>
    %55 = arith.mulf %54, %53 : vector<8x256xf32>
    %c14_41 = arith.constant 14 : index
    %c0_42 = arith.constant 0 : index
    %c0_43 = arith.constant 0 : index
    %56 = vector.load %arg4[%c14_41, %c0_42, %c0_43] : memref<49x8x1xf32, #tpu.memory_space<vmem>>, vector<1x8x1xf32>
    %57 = vector.shape_cast %56 : vector<1x8x1xf32> to vector<8x1xf32>
    %c0_44 = arith.constant 0 : index
    %c109_45 = arith.constant 109 : index
    %58 = vector.load %arg13[%c0_44, %c109_45] : memref<8x512xf32, #tpu.memory_space<vmem>>, vector<8x256xf32>
    %59 = vector.broadcast %57 : vector<8x1xf32> to vector<8x256xf32>
    %60 = arith.mulf %59, %58 : vector<8x256xf32>
    %61 = arith.addf %55, %60 : vector<8x256xf32>
    %62 = arith.addf %50, %61 : vector<8x256xf32>
    %c21 = arith.constant 21 : index
    %c0_46 = arith.constant 0 : index
    %c0_47 = arith.constant 0 : index
    %63 = vector.load %arg3[%c21, %c0_46, %c0_47] : memref<49x8x1xf32, #tpu.memory_space<vmem>>, vector<1x8x1xf32>
    %64 = vector.shape_cast %63 : vector<1x8x1xf32> to vector<8x1xf32>
    %c0_48 = arith.constant 0 : index
    %c125 = arith.constant 125 : index
    %65 = vector.load %arg12[%c0_48, %c125] : memref<8x512xf32, #tpu.memory_space<vmem>>, vector<8x256xf32>
    %66 = vector.broadcast %64 : vector<8x1xf32> to vector<8x256xf32>
    %67 = arith.mulf %66, %65 : vector<8x256xf32>
    %c21_49 = arith.constant 21 : index
    %c0_50 = arith.constant 0 : index
    %c0_51 = arith.constant 0 : index
    %68 = vector.load %arg4[%c21_49, %c0_50, %c0_51] : memref<49x8x1xf32, #tpu.memory_space<vmem>>, vector<1x8x1xf32>
    %69 = vector.shape_cast %68 : vector<1x8x1xf32> to vector<8x1xf32>
    %c0_52 = arith.constant 0 : index
    %c125_53 = arith.constant 125 : index
    %70 = vector.load %arg13[%c0_52, %c125_53] : memref<8x512xf32, #tpu.memory_space<vmem>>, vector<8x256xf32>
    %71 = vector.broadcast %69 : vector<8x1xf32> to vector<8x256xf32>
    %72 = arith.mulf %71, %70 : vector<8x256xf32>
    %73 = arith.addf %67, %72 : vector<8x256xf32>
    %74 = arith.addf %62, %73 : vector<8x256xf32>
    %c28 = arith.constant 28 : index
    %c0_54 = arith.constant 0 : index
    %c0_55 = arith.constant 0 : index
    %75 = vector.load %arg3[%c28, %c0_54, %c0_55] : memref<49x8x1xf32, #tpu.memory_space<vmem>>, vector<1x8x1xf32>
    %76 = vector.shape_cast %75 : vector<1x8x1xf32> to vector<8x1xf32>
    %c0_56 = arith.constant 0 : index
    %c141 = arith.constant 141 : index
    %77 = vector.load %arg12[%c0_56, %c141] : memref<8x512xf32, #tpu.memory_space<vmem>>, vector<8x256xf32>
    %78 = vector.broadcast %76 : vector<8x1xf32> to vector<8x256xf32>
    %79 = arith.mulf %78, %77 : vector<8x256xf32>
    %c28_57 = arith.constant 28 : index
    %c0_58 = arith.constant 0 : index
    %c0_59 = arith.constant 0 : index
    %80 = vector.load %arg4[%c28_57, %c0_58, %c0_59] : memref<49x8x1xf32, #tpu.memory_space<vmem>>, vector<1x8x1xf32>
    %81 = vector.shape_cast %80 : vector<1x8x1xf32> to vector<8x1xf32>
    %c0_60 = arith.constant 0 : index
    %c141_61 = arith.constant 141 : index
    %82 = vector.load %arg13[%c0_60, %c141_61] : memref<8x512xf32, #tpu.memory_space<vmem>>, vector<8x256xf32>
    %83 = vector.broadcast %81 : vector<8x1xf32> to vector<8x256xf32>
    %84 = arith.mulf %83, %82 : vector<8x256xf32>
    %85 = arith.addf %79, %84 : vector<8x256xf32>
    %86 = arith.addf %74, %85 : vector<8x256xf32>
    %c35 = arith.constant 35 : index
    %c0_62 = arith.constant 0 : index
    %c0_63 = arith.constant 0 : index
    %87 = vector.load %arg3[%c35, %c0_62, %c0_63] : memref<49x8x1xf32, #tpu.memory_space<vmem>>, vector<1x8x1xf32>
    %88 = vector.shape_cast %87 : vector<1x8x1xf32> to vector<8x1xf32>
    %c0_64 = arith.constant 0 : index
    %c157 = arith.constant 157 : index
    %89 = vector.load %arg12[%c0_64, %c157] : memref<8x512xf32, #tpu.memory_space<vmem>>, vector<8x256xf32>
    %90 = vector.broadcast %88 : vector<8x1xf32> to vector<8x256xf32>
    %91 = arith.mulf %90, %89 : vector<8x256xf32>
    %c35_65 = arith.constant 35 : index
    %c0_66 = arith.constant 0 : index
    %c0_67 = arith.constant 0 : index
    %92 = vector.load %arg4[%c35_65, %c0_66, %c0_67] : memref<49x8x1xf32, #tpu.memory_space<vmem>>, vector<1x8x1xf32>
    %93 = vector.shape_cast %92 : vector<1x8x1xf32> to vector<8x1xf32>
    %c0_68 = arith.constant 0 : index
    %c157_69 = arith.constant 157 : index
    %94 = vector.load %arg13[%c0_68, %c157_69] : memref<8x512xf32, #tpu.memory_space<vmem>>, vector<8x256xf32>
    %95 = vector.broadcast %93 : vector<8x1xf32> to vector<8x256xf32>
    %96 = arith.mulf %95, %94 : vector<8x256xf32>
    %97 = arith.addf %91, %96 : vector<8x256xf32>
    %98 = arith.addf %86, %97 : vector<8x256xf32>
    %c42 = arith.constant 42 : index
    %c0_70 = arith.constant 0 : index
    %c0_71 = arith.constant 0 : index
    %99 = vector.load %arg3[%c42, %c0_70, %c0_71] : memref<49x8x1xf32, #tpu.memory_space<vmem>>, vector<1x8x1xf32>
    %100 = vector.shape_cast %99 : vector<1x8x1xf32> to vector<8x1xf32>
    %c0_72 = arith.constant 0 : index
    %c173 = arith.constant 173 : index
    %101 = vector.load %arg12[%c0_72, %c173] : memref<8x512xf32, #tpu.memory_space<vmem>>, vector<8x256xf32>
    %102 = vector.broadcast %100 : vector<8x1xf32> to vector<8x256xf32>
    %103 = arith.mulf %102, %101 : vector<8x256xf32>
    %c42_73 = arith.constant 42 : index
    %c0_74 = arith.constant 0 : index
    %c0_75 = arith.constant 0 : index
    %104 = vector.load %arg4[%c42_73, %c0_74, %c0_75] : memref<49x8x1xf32, #tpu.memory_space<vmem>>, vector<1x8x1xf32>
    %105 = vector.shape_cast %104 : vector<1x8x1xf32> to vector<8x1xf32>
    %c0_76 = arith.constant 0 : index
    %c173_77 = arith.constant 173 : index
    %106 = vector.load %arg13[%c0_76, %c173_77] : memref<8x512xf32, #tpu.memory_space<vmem>>, vector<8x256xf32>
    %107 = vector.broadcast %105 : vector<8x1xf32> to vector<8x256xf32>
    %108 = arith.mulf %107, %106 : vector<8x256xf32>
    %109 = arith.addf %103, %108 : vector<8x256xf32>
    %110 = arith.addf %98, %109 : vector<8x256xf32>
    %c0_78 = arith.constant 0 : index
    %c0_79 = arith.constant 0 : index
    %c0_80 = arith.constant 0 : index
    %111 = vector.load %arg5[%c0_78, %c0_79, %c0_80] : memref<7x1x256xf32, #tpu.memory_space<vmem>>, vector<1x1x256xf32>
    %112 = vector.shape_cast %111 : vector<1x1x256xf32> to vector<1x256xf32>
    %113 = vector.broadcast %112 : vector<1x256xf32> to vector<8x256xf32>
    %114 = arith.mulf %113, %110 : vector<8x256xf32>
    %115 = arith.addf %25, %114 : vector<8x256xf32>
    %cst_81 = arith.constant 0.000000e+00 : f32
    %116 = vector.broadcast %cst_81 : f32 to vector<8x256xf32>
    %c1 = arith.constant 1 : index
    %c0_82 = arith.constant 0 : index
    %c0_83 = arith.constant 0 : index
    %117 = vector.load %arg3[%c1, %c0_82, %c0_83] : memref<49x8x1xf32, #tpu.memory_space<vmem>>, vector<1x8x1xf32>
    %118 = vector.shape_cast %117 : vector<1x8x1xf32> to vector<8x1xf32>
    %c0_84 = arith.constant 0 : index
    %c78 = arith.constant 78 : index
    %119 = vector.load %arg12[%c0_84, %c78] : memref<8x512xf32, #tpu.memory_space<vmem>>, vector<8x256xf32>
    %120 = vector.broadcast %118 : vector<8x1xf32> to vector<8x256xf32>
    %121 = arith.mulf %120, %119 : vector<8x256xf32>
    %c1_85 = arith.constant 1 : index
    %c0_86 = arith.constant 0 : index
    %c0_87 = arith.constant 0 : index
    %122 = vector.load %arg4[%c1_85, %c0_86, %c0_87] : memref<49x8x1xf32, #tpu.memory_space<vmem>>, vector<1x8x1xf32>
    %123 = vector.shape_cast %122 : vector<1x8x1xf32> to vector<8x1xf32>
    %c0_88 = arith.constant 0 : index
    %c78_89 = arith.constant 78 : index
    %124 = vector.load %arg13[%c0_88, %c78_89] : memref<8x512xf32, #tpu.memory_space<vmem>>, vector<8x256xf32>
    %125 = vector.broadcast %123 : vector<8x1xf32> to vector<8x256xf32>
    %126 = arith.mulf %125, %124 : vector<8x256xf32>
    %127 = arith.addf %121, %126 : vector<8x256xf32>
    %128 = arith.addf %116, %127 : vector<8x256xf32>
    %c8 = arith.constant 8 : index
    %c0_90 = arith.constant 0 : index
    %c0_91 = arith.constant 0 : index
    %129 = vector.load %arg3[%c8, %c0_90, %c0_91] : memref<49x8x1xf32, #tpu.memory_space<vmem>>, vector<1x8x1xf32>
    %130 = vector.shape_cast %129 : vector<1x8x1xf32> to vector<8x1xf32>
    %c0_92 = arith.constant 0 : index
    %c94 = arith.constant 94 : index
    %131 = vector.load %arg12[%c0_92, %c94] : memref<8x512xf32, #tpu.memory_space<vmem>>, vector<8x256xf32>
    %132 = vector.broadcast %130 : vector<8x1xf32> to vector<8x256xf32>
    %133 = arith.mulf %132, %131 : vector<8x256xf32>
    %c8_93 = arith.constant 8 : index
    %c0_94 = arith.constant 0 : index
    %c0_95 = arith.constant 0 : index
    %134 = vector.load %arg4[%c8_93, %c0_94, %c0_95] : memref<49x8x1xf32, #tpu.memory_space<vmem>>, vector<1x8x1xf32>
    %135 = vector.shape_cast %134 : vector<1x8x1xf32> to vector<8x1xf32>
    %c0_96 = arith.constant 0 : index
    %c94_97 = arith.constant 94 : index
    %136 = vector.load %arg13[%c0_96, %c94_97] : memref<8x512xf32, #tpu.memory_space<vmem>>, vector<8x256xf32>
    %137 = vector.broadcast %135 : vector<8x1xf32> to vector<8x256xf32>
    %138 = arith.mulf %137, %136 : vector<8x256xf32>
    %139 = arith.addf %133, %138 : vector<8x256xf32>
    %140 = arith.addf %128, %139 : vector<8x256xf32>
    %c15 = arith.constant 15 : index
    %c0_98 = arith.constant 0 : index
    %c0_99 = arith.constant 0 : index
    %141 = vector.load %arg3[%c15, %c0_98, %c0_99] : memref<49x8x1xf32, #tpu.memory_space<vmem>>, vector<1x8x1xf32>
    %142 = vector.shape_cast %141 : vector<1x8x1xf32> to vector<8x1xf32>
    %c0_100 = arith.constant 0 : index
    %c110 = arith.constant 110 : index
    %143 = vector.load %arg12[%c0_100, %c110] : memref<8x512xf32, #tpu.memory_space<vmem>>, vector<8x256xf32>
    %144 = vector.broadcast %142 : vector<8x1xf32> to vector<8x256xf32>
    %145 = arith.mulf %144, %143 : vector<8x256xf32>
    %c15_101 = arith.constant 15 : index
    %c0_102 = arith.constant 0 : index
    %c0_103 = arith.constant 0 : index
    %146 = vector.load %arg4[%c15_101, %c0_102, %c0_103] : memref<49x8x1xf32, #tpu.memory_space<vmem>>, vector<1x8x1xf32>
    %147 = vector.shape_cast %146 : vector<1x8x1xf32> to vector<8x1xf32>
    %c0_104 = arith.constant 0 : index
    %c110_105 = arith.constant 110 : index
    %148 = vector.load %arg13[%c0_104, %c110_105] : memref<8x512xf32, #tpu.memory_space<vmem>>, vector<8x256xf32>
    %149 = vector.broadcast %147 : vector<8x1xf32> to vector<8x256xf32>
    %150 = arith.mulf %149, %148 : vector<8x256xf32>
    %151 = arith.addf %145, %150 : vector<8x256xf32>
    %152 = arith.addf %140, %151 : vector<8x256xf32>
    %c22 = arith.constant 22 : index
    %c0_106 = arith.constant 0 : index
    %c0_107 = arith.constant 0 : index
    %153 = vector.load %arg3[%c22, %c0_106, %c0_107] : memref<49x8x1xf32, #tpu.memory_space<vmem>>, vector<1x8x1xf32>
    %154 = vector.shape_cast %153 : vector<1x8x1xf32> to vector<8x1xf32>
    %c0_108 = arith.constant 0 : index
    %c126 = arith.constant 126 : index
    %155 = vector.load %arg12[%c0_108, %c126] : memref<8x512xf32, #tpu.memory_space<vmem>>, vector<8x256xf32>
    %156 = vector.broadcast %154 : vector<8x1xf32> to vector<8x256xf32>
    %157 = arith.mulf %156, %155 : vector<8x256xf32>
    %c22_109 = arith.constant 22 : index
    %c0_110 = arith.constant 0 : index
    %c0_111 = arith.constant 0 : index
    %158 = vector.load %arg4[%c22_109, %c0_110, %c0_111] : memref<49x8x1xf32, #tpu.memory_space<vmem>>, vector<1x8x1xf32>
    %159 = vector.shape_cast %158 : vector<1x8x1xf32> to vector<8x1xf32>
    %c0_112 = arith.constant 0 : index
    %c126_113 = arith.constant 126 : index
    %160 = vector.load %arg13[%c0_112, %c126_113] : memref<8x512xf32, #tpu.memory_space<vmem>>, vector<8x256xf32>
    %161 = vector.broadcast %159 : vector<8x1xf32> to vector<8x256xf32>
    %162 = arith.mulf %161, %160 : vector<8x256xf32>
    %163 = arith.addf %157, %162 : vector<8x256xf32>
    %164 = arith.addf %152, %163 : vector<8x256xf32>
    %c29 = arith.constant 29 : index
    %c0_114 = arith.constant 0 : index
    %c0_115 = arith.constant 0 : index
    %165 = vector.load %arg3[%c29, %c0_114, %c0_115] : memref<49x8x1xf32, #tpu.memory_space<vmem>>, vector<1x8x1xf32>
    %166 = vector.shape_cast %165 : vector<1x8x1xf32> to vector<8x1xf32>
    %c0_116 = arith.constant 0 : index
    %c142 = arith.constant 142 : index
    %167 = vector.load %arg12[%c0_116, %c142] : memref<8x512xf32, #tpu.memory_space<vmem>>, vector<8x256xf32>
    %168 = vector.broadcast %166 : vector<8x1xf32> to vector<8x256xf32>
    %169 = arith.mulf %168, %167 : vector<8x256xf32>
    %c29_117 = arith.constant 29 : index
    %c0_118 = arith.constant 0 : index
    %c0_119 = arith.constant 0 : index
    %170 = vector.load %arg4[%c29_117, %c0_118, %c0_119] : memref<49x8x1xf32, #tpu.memory_space<vmem>>, vector<1x8x1xf32>
    %171 = vector.shape_cast %170 : vector<1x8x1xf32> to vector<8x1xf32>
    %c0_120 = arith.constant 0 : index
    %c142_121 = arith.constant 142 : index
    %172 = vector.load %arg13[%c0_120, %c142_121] : memref<8x512xf32, #tpu.memory_space<vmem>>, vector<8x256xf32>
    %173 = vector.broadcast %171 : vector<8x1xf32> to vector<8x256xf32>
    %174 = arith.mulf %173, %172 : vector<8x256xf32>
    %175 = arith.addf %169, %174 : vector<8x256xf32>
    %176 = arith.addf %164, %175 : vector<8x256xf32>
    %c36 = arith.constant 36 : index
    %c0_122 = arith.constant 0 : index
    %c0_123 = arith.constant 0 : index
    %177 = vector.load %arg3[%c36, %c0_122, %c0_123] : memref<49x8x1xf32, #tpu.memory_space<vmem>>, vector<1x8x1xf32>
    %178 = vector.shape_cast %177 : vector<1x8x1xf32> to vector<8x1xf32>
    %c0_124 = arith.constant 0 : index
    %c158 = arith.constant 158 : index
    %179 = vector.load %arg12[%c0_124, %c158] : memref<8x512xf32, #tpu.memory_space<vmem>>, vector<8x256xf32>
    %180 = vector.broadcast %178 : vector<8x1xf32> to vector<8x256xf32>
    %181 = arith.mulf %180, %179 : vector<8x256xf32>
    %c36_125 = arith.constant 36 : index
    %c0_126 = arith.constant 0 : index
    %c0_127 = arith.constant 0 : index
    %182 = vector.load %arg4[%c36_125, %c0_126, %c0_127] : memref<49x8x1xf32, #tpu.memory_space<vmem>>, vector<1x8x1xf32>
    %183 = vector.shape_cast %182 : vector<1x8x1xf32> to vector<8x1xf32>
    %c0_128 = arith.constant 0 : index
    %c158_129 = arith.constant 158 : index
    %184 = vector.load %arg13[%c0_128, %c158_129] : memref<8x512xf32, #tpu.memory_space<vmem>>, vector<8x256xf32>
    %185 = vector.broadcast %183 : vector<8x1xf32> to vector<8x256xf32>
    %186 = arith.mulf %185, %184 : vector<8x256xf32>
    %187 = arith.addf %181, %186 : vector<8x256xf32>
    %188 = arith.addf %176, %187 : vector<8x256xf32>
    %c43 = arith.constant 43 : index
    %c0_130 = arith.constant 0 : index
    %c0_131 = arith.constant 0 : index
    %189 = vector.load %arg3[%c43, %c0_130, %c0_131] : memref<49x8x1xf32, #tpu.memory_space<vmem>>, vector<1x8x1xf32>
    %190 = vector.shape_cast %189 : vector<1x8x1xf32> to vector<8x1xf32>
    %c0_132 = arith.constant 0 : index
    %c174 = arith.constant 174 : index
    %191 = vector.load %arg12[%c0_132, %c174] : memref<8x512xf32, #tpu.memory_space<vmem>>, vector<8x256xf32>
    %192 = vector.broadcast %190 : vector<8x1xf32> to vector<8x256xf32>
    %193 = arith.mulf %192, %191 : vector<8x256xf32>
    %c43_133 = arith.constant 43 : index
    %c0_134 = arith.constant 0 : index
    %c0_135 = arith.constant 0 : index
    %194 = vector.load %arg4[%c43_133, %c0_134, %c0_135] : memref<49x8x1xf32, #tpu.memory_space<vmem>>, vector<1x8x1xf32>
    %195 = vector.shape_cast %194 : vector<1x8x1xf32> to vector<8x1xf32>
    %c0_136 = arith.constant 0 : index
    %c174_137 = arith.constant 174 : index
    %196 = vector.load %arg13[%c0_136, %c174_137] : memref<8x512xf32, #tpu.memory_space<vmem>>, vector<8x256xf32>
    %197 = vector.broadcast %195 : vector<8x1xf32> to vector<8x256xf32>
    %198 = arith.mulf %197, %196 : vector<8x256xf32>
    %199 = arith.addf %193, %198 : vector<8x256xf32>
    %200 = arith.addf %188, %199 : vector<8x256xf32>
    %c1_138 = arith.constant 1 : index
    %c0_139 = arith.constant 0 : index
    %c0_140 = arith.constant 0 : index
    %201 = vector.load %arg5[%c1_138, %c0_139, %c0_140] : memref<7x1x256xf32, #tpu.memory_space<vmem>>, vector<1x1x256xf32>
    %202 = vector.shape_cast %201 : vector<1x1x256xf32> to vector<1x256xf32>
    %203 = vector.broadcast %202 : vector<1x256xf32> to vector<8x256xf32>
    %204 = arith.mulf %203, %200 : vector<8x256xf32>
    %205 = arith.addf %115, %204 : vector<8x256xf32>
    %cst_141 = arith.constant 0.000000e+00 : f32
    %206 = vector.broadcast %cst_141 : f32 to vector<8x256xf32>
    %c2 = arith.constant 2 : index
    %c0_142 = arith.constant 0 : index
    %c0_143 = arith.constant 0 : index
    %207 = vector.load %arg3[%c2, %c0_142, %c0_143] : memref<49x8x1xf32, #tpu.memory_space<vmem>>, vector<1x8x1xf32>
    %208 = vector.shape_cast %207 : vector<1x8x1xf32> to vector<8x1xf32>
    %c0_144 = arith.constant 0 : index
    %c79 = arith.constant 79 : index
    %209 = vector.load %arg12[%c0_144, %c79] : memref<8x512xf32, #tpu.memory_space<vmem>>, vector<8x256xf32>
    %210 = vector.broadcast %208 : vector<8x1xf32> to vector<8x256xf32>
    %211 = arith.mulf %210, %209 : vector<8x256xf32>
    %c2_145 = arith.constant 2 : index
    %c0_146 = arith.constant 0 : index
    %c0_147 = arith.constant 0 : index
    %212 = vector.load %arg4[%c2_145, %c0_146, %c0_147] : memref<49x8x1xf32, #tpu.memory_space<vmem>>, vector<1x8x1xf32>
    %213 = vector.shape_cast %212 : vector<1x8x1xf32> to vector<8x1xf32>
    %c0_148 = arith.constant 0 : index
    %c79_149 = arith.constant 79 : index
    %214 = vector.load %arg13[%c0_148, %c79_149] : memref<8x512xf32, #tpu.memory_space<vmem>>, vector<8x256xf32>
    %215 = vector.broadcast %213 : vector<8x1xf32> to vector<8x256xf32>
    %216 = arith.mulf %215, %214 : vector<8x256xf32>
    %217 = arith.addf %211, %216 : vector<8x256xf32>
    %218 = arith.addf %206, %217 : vector<8x256xf32>
    %c9 = arith.constant 9 : index
    %c0_150 = arith.constant 0 : index
    %c0_151 = arith.constant 0 : index
    %219 = vector.load %arg3[%c9, %c0_150, %c0_151] : memref<49x8x1xf32, #tpu.memory_space<vmem>>, vector<1x8x1xf32>
    %220 = vector.shape_cast %219 : vector<1x8x1xf32> to vector<8x1xf32>
    %c0_152 = arith.constant 0 : index
    %c95 = arith.constant 95 : index
    %221 = vector.load %arg12[%c0_152, %c95] : memref<8x512xf32, #tpu.memory_space<vmem>>, vector<8x256xf32>
    %222 = vector.broadcast %220 : vector<8x1xf32> to vector<8x256xf32>
    %223 = arith.mulf %222, %221 : vector<8x256xf32>
    %c9_153 = arith.constant 9 : index
    %c0_154 = arith.constant 0 : index
    %c0_155 = arith.constant 0 : index
    %224 = vector.load %arg4[%c9_153, %c0_154, %c0_155] : memref<49x8x1xf32, #tpu.memory_space<vmem>>, vector<1x8x1xf32>
    %225 = vector.shape_cast %224 : vector<1x8x1xf32> to vector<8x1xf32>
    %c0_156 = arith.constant 0 : index
    %c95_157 = arith.constant 95 : index
    %226 = vector.load %arg13[%c0_156, %c95_157] : memref<8x512xf32, #tpu.memory_space<vmem>>, vector<8x256xf32>
    %227 = vector.broadcast %225 : vector<8x1xf32> to vector<8x256xf32>
    %228 = arith.mulf %227, %226 : vector<8x256xf32>
    %229 = arith.addf %223, %228 : vector<8x256xf32>
    %230 = arith.addf %218, %229 : vector<8x256xf32>
    %c16 = arith.constant 16 : index
    %c0_158 = arith.constant 0 : index
    %c0_159 = arith.constant 0 : index
    %231 = vector.load %arg3[%c16, %c0_158, %c0_159] : memref<49x8x1xf32, #tpu.memory_space<vmem>>, vector<1x8x1xf32>
    %232 = vector.shape_cast %231 : vector<1x8x1xf32> to vector<8x1xf32>
    %c0_160 = arith.constant 0 : index
    %c111 = arith.constant 111 : index
    %233 = vector.load %arg12[%c0_160, %c111] : memref<8x512xf32, #tpu.memory_space<vmem>>, vector<8x256xf32>
    %234 = vector.broadcast %232 : vector<8x1xf32> to vector<8x256xf32>
    %235 = arith.mulf %234, %233 : vector<8x256xf32>
    %c16_161 = arith.constant 16 : index
    %c0_162 = arith.constant 0 : index
    %c0_163 = arith.constant 0 : index
    %236 = vector.load %arg4[%c16_161, %c0_162, %c0_163] : memref<49x8x1xf32, #tpu.memory_space<vmem>>, vector<1x8x1xf32>
    %237 = vector.shape_cast %236 : vector<1x8x1xf32> to vector<8x1xf32>
    %c0_164 = arith.constant 0 : index
    %c111_165 = arith.constant 111 : index
    %238 = vector.load %arg13[%c0_164, %c111_165] : memref<8x512xf32, #tpu.memory_space<vmem>>, vector<8x256xf32>
    %239 = vector.broadcast %237 : vector<8x1xf32> to vector<8x256xf32>
    %240 = arith.mulf %239, %238 : vector<8x256xf32>
    %241 = arith.addf %235, %240 : vector<8x256xf32>
    %242 = arith.addf %230, %241 : vector<8x256xf32>
    %c23 = arith.constant 23 : index
    %c0_166 = arith.constant 0 : index
    %c0_167 = arith.constant 0 : index
    %243 = vector.load %arg3[%c23, %c0_166, %c0_167] : memref<49x8x1xf32, #tpu.memory_space<vmem>>, vector<1x8x1xf32>
    %244 = vector.shape_cast %243 : vector<1x8x1xf32> to vector<8x1xf32>
    %c0_168 = arith.constant 0 : index
    %c127 = arith.constant 127 : index
    %245 = vector.load %arg12[%c0_168, %c127] : memref<8x512xf32, #tpu.memory_space<vmem>>, vector<8x256xf32>
    %246 = vector.broadcast %244 : vector<8x1xf32> to vector<8x256xf32>
    %247 = arith.mulf %246, %245 : vector<8x256xf32>
    %c23_169 = arith.constant 23 : index
    %c0_170 = arith.constant 0 : index
    %c0_171 = arith.constant 0 : index
    %248 = vector.load %arg4[%c23_169, %c0_170, %c0_171] : memref<49x8x1xf32, #tpu.memory_space<vmem>>, vector<1x8x1xf32>
    %249 = vector.shape_cast %248 : vector<1x8x1xf32> to vector<8x1xf32>
    %c0_172 = arith.constant 0 : index
    %c127_173 = arith.constant 127 : index
    %250 = vector.load %arg13[%c0_172, %c127_173] : memref<8x512xf32, #tpu.memory_space<vmem>>, vector<8x256xf32>
    %251 = vector.broadcast %249 : vector<8x1xf32> to vector<8x256xf32>
    %252 = arith.mulf %251, %250 : vector<8x256xf32>
    %253 = arith.addf %247, %252 : vector<8x256xf32>
    %254 = arith.addf %242, %253 : vector<8x256xf32>
    %c30 = arith.constant 30 : index
    %c0_174 = arith.constant 0 : index
    %c0_175 = arith.constant 0 : index
    %255 = vector.load %arg3[%c30, %c0_174, %c0_175] : memref<49x8x1xf32, #tpu.memory_space<vmem>>, vector<1x8x1xf32>
    %256 = vector.shape_cast %255 : vector<1x8x1xf32> to vector<8x1xf32>
    %c0_176 = arith.constant 0 : index
    %c143 = arith.constant 143 : index
    %257 = vector.load %arg12[%c0_176, %c143] : memref<8x512xf32, #tpu.memory_space<vmem>>, vector<8x256xf32>
    %258 = vector.broadcast %256 : vector<8x1xf32> to vector<8x256xf32>
    %259 = arith.mulf %258, %257 : vector<8x256xf32>
    %c30_177 = arith.constant 30 : index
    %c0_178 = arith.constant 0 : index
    %c0_179 = arith.constant 0 : index
    %260 = vector.load %arg4[%c30_177, %c0_178, %c0_179] : memref<49x8x1xf32, #tpu.memory_space<vmem>>, vector<1x8x1xf32>
    %261 = vector.shape_cast %260 : vector<1x8x1xf32> to vector<8x1xf32>
    %c0_180 = arith.constant 0 : index
    %c143_181 = arith.constant 143 : index
    %262 = vector.load %arg13[%c0_180, %c143_181] : memref<8x512xf32, #tpu.memory_space<vmem>>, vector<8x256xf32>
    %263 = vector.broadcast %261 : vector<8x1xf32> to vector<8x256xf32>
    %264 = arith.mulf %263, %262 : vector<8x256xf32>
    %265 = arith.addf %259, %264 : vector<8x256xf32>
    %266 = arith.addf %254, %265 : vector<8x256xf32>
    %c37 = arith.constant 37 : index
    %c0_182 = arith.constant 0 : index
    %c0_183 = arith.constant 0 : index
    %267 = vector.load %arg3[%c37, %c0_182, %c0_183] : memref<49x8x1xf32, #tpu.memory_space<vmem>>, vector<1x8x1xf32>
    %268 = vector.shape_cast %267 : vector<1x8x1xf32> to vector<8x1xf32>
    %c0_184 = arith.constant 0 : index
    %c159 = arith.constant 159 : index
    %269 = vector.load %arg12[%c0_184, %c159] : memref<8x512xf32, #tpu.memory_space<vmem>>, vector<8x256xf32>
    %270 = vector.broadcast %268 : vector<8x1xf32> to vector<8x256xf32>
    %271 = arith.mulf %270, %269 : vector<8x256xf32>
    %c37_185 = arith.constant 37 : index
    %c0_186 = arith.constant 0 : index
    %c0_187 = arith.constant 0 : index
    %272 = vector.load %arg4[%c37_185, %c0_186, %c0_187] : memref<49x8x1xf32, #tpu.memory_space<vmem>>, vector<1x8x1xf32>
    %273 = vector.shape_cast %272 : vector<1x8x1xf32> to vector<8x1xf32>
    %c0_188 = arith.constant 0 : index
    %c159_189 = arith.constant 159 : index
    %274 = vector.load %arg13[%c0_188, %c159_189] : memref<8x512xf32, #tpu.memory_space<vmem>>, vector<8x256xf32>
    %275 = vector.broadcast %273 : vector<8x1xf32> to vector<8x256xf32>
    %276 = arith.mulf %275, %274 : vector<8x256xf32>
    %277 = arith.addf %271, %276 : vector<8x256xf32>
    %278 = arith.addf %266, %277 : vector<8x256xf32>
    %c44 = arith.constant 44 : index
    %c0_190 = arith.constant 0 : index
    %c0_191 = arith.constant 0 : index
    %279 = vector.load %arg3[%c44, %c0_190, %c0_191] : memref<49x8x1xf32, #tpu.memory_space<vmem>>, vector<1x8x1xf32>
    %280 = vector.shape_cast %279 : vector<1x8x1xf32> to vector<8x1xf32>
    %c0_192 = arith.constant 0 : index
    %c175 = arith.constant 175 : index
    %281 = vector.load %arg12[%c0_192, %c175] : memref<8x512xf32, #tpu.memory_space<vmem>>, vector<8x256xf32>
    %282 = vector.broadcast %280 : vector<8x1xf32> to vector<8x256xf32>
    %283 = arith.mulf %282, %281 : vector<8x256xf32>
    %c44_193 = arith.constant 44 : index
    %c0_194 = arith.constant 0 : index
    %c0_195 = arith.constant 0 : index
    %284 = vector.load %arg4[%c44_193, %c0_194, %c0_195] : memref<49x8x1xf32, #tpu.memory_space<vmem>>, vector<1x8x1xf32>
    %285 = vector.shape_cast %284 : vector<1x8x1xf32> to vector<8x1xf32>
    %c0_196 = arith.constant 0 : index
    %c175_197 = arith.constant 175 : index
    %286 = vector.load %arg13[%c0_196, %c175_197] : memref<8x512xf32, #tpu.memory_space<vmem>>, vector<8x256xf32>
    %287 = vector.broadcast %285 : vector<8x1xf32> to vector<8x256xf32>
    %288 = arith.mulf %287, %286 : vector<8x256xf32>
    %289 = arith.addf %283, %288 : vector<8x256xf32>
    %290 = arith.addf %278, %289 : vector<8x256xf32>
    %c2_198 = arith.constant 2 : index
    %c0_199 = arith.constant 0 : index
    %c0_200 = arith.constant 0 : index
    %291 = vector.load %arg5[%c2_198, %c0_199, %c0_200] : memref<7x1x256xf32, #tpu.memory_space<vmem>>, vector<1x1x256xf32>
    %292 = vector.shape_cast %291 : vector<1x1x256xf32> to vector<1x256xf32>
    %293 = vector.broadcast %292 : vector<1x256xf32> to vector<8x256xf32>
    %294 = arith.mulf %293, %290 : vector<8x256xf32>
    %295 = arith.addf %205, %294 : vector<8x256xf32>
    %cst_201 = arith.constant 0.000000e+00 : f32
    %296 = vector.broadcast %cst_201 : f32 to vector<8x256xf32>
    %c3 = arith.constant 3 : index
    %c0_202 = arith.constant 0 : index
    %c0_203 = arith.constant 0 : index
    %297 = vector.load %arg3[%c3, %c0_202, %c0_203] : memref<49x8x1xf32, #tpu.memory_space<vmem>>, vector<1x8x1xf32>
    %298 = vector.shape_cast %297 : vector<1x8x1xf32> to vector<8x1xf32>
    %c0_204 = arith.constant 0 : index
    %c80 = arith.constant 80 : index
    %299 = vector.load %arg12[%c0_204, %c80] : memref<8x512xf32, #tpu.memory_space<vmem>>, vector<8x256xf32>
    %300 = vector.broadcast %298 : vector<8x1xf32> to vector<8x256xf32>
    %301 = arith.mulf %300, %299 : vector<8x256xf32>
    %c3_205 = arith.constant 3 : index
    %c0_206 = arith.constant 0 : index
    %c0_207 = arith.constant 0 : index
    %302 = vector.load %arg4[%c3_205, %c0_206, %c0_207] : memref<49x8x1xf32, #tpu.memory_space<vmem>>, vector<1x8x1xf32>
    %303 = vector.shape_cast %302 : vector<1x8x1xf32> to vector<8x1xf32>
    %c0_208 = arith.constant 0 : index
    %c80_209 = arith.constant 80 : index
    %304 = vector.load %arg13[%c0_208, %c80_209] : memref<8x512xf32, #tpu.memory_space<vmem>>, vector<8x256xf32>
    %305 = vector.broadcast %303 : vector<8x1xf32> to vector<8x256xf32>
    %306 = arith.mulf %305, %304 : vector<8x256xf32>
    %307 = arith.addf %301, %306 : vector<8x256xf32>
    %308 = arith.addf %296, %307 : vector<8x256xf32>
    %c10 = arith.constant 10 : index
    %c0_210 = arith.constant 0 : index
    %c0_211 = arith.constant 0 : index
    %309 = vector.load %arg3[%c10, %c0_210, %c0_211] : memref<49x8x1xf32, #tpu.memory_space<vmem>>, vector<1x8x1xf32>
    %310 = vector.shape_cast %309 : vector<1x8x1xf32> to vector<8x1xf32>
    %c0_212 = arith.constant 0 : index
    %c96 = arith.constant 96 : index
    %311 = vector.load %arg12[%c0_212, %c96] : memref<8x512xf32, #tpu.memory_space<vmem>>, vector<8x256xf32>
    %312 = vector.broadcast %310 : vector<8x1xf32> to vector<8x256xf32>
    %313 = arith.mulf %312, %311 : vector<8x256xf32>
    %c10_213 = arith.constant 10 : index
    %c0_214 = arith.constant 0 : index
    %c0_215 = arith.constant 0 : index
    %314 = vector.load %arg4[%c10_213, %c0_214, %c0_215] : memref<49x8x1xf32, #tpu.memory_space<vmem>>, vector<1x8x1xf32>
    %315 = vector.shape_cast %314 : vector<1x8x1xf32> to vector<8x1xf32>
    %c0_216 = arith.constant 0 : index
    %c96_217 = arith.constant 96 : index
    %316 = vector.load %arg13[%c0_216, %c96_217] : memref<8x512xf32, #tpu.memory_space<vmem>>, vector<8x256xf32>
    %317 = vector.broadcast %315 : vector<8x1xf32> to vector<8x256xf32>
    %318 = arith.mulf %317, %316 : vector<8x256xf32>
    %319 = arith.addf %313, %318 : vector<8x256xf32>
    %320 = arith.addf %308, %319 : vector<8x256xf32>
    %c17 = arith.constant 17 : index
    %c0_218 = arith.constant 0 : index
    %c0_219 = arith.constant 0 : index
    %321 = vector.load %arg3[%c17, %c0_218, %c0_219] : memref<49x8x1xf32, #tpu.memory_space<vmem>>, vector<1x8x1xf32>
    %322 = vector.shape_cast %321 : vector<1x8x1xf32> to vector<8x1xf32>
    %c0_220 = arith.constant 0 : index
    %c112 = arith.constant 112 : index
    %323 = vector.load %arg12[%c0_220, %c112] : memref<8x512xf32, #tpu.memory_space<vmem>>, vector<8x256xf32>
    %324 = vector.broadcast %322 : vector<8x1xf32> to vector<8x256xf32>
    %325 = arith.mulf %324, %323 : vector<8x256xf32>
    %c17_221 = arith.constant 17 : index
    %c0_222 = arith.constant 0 : index
    %c0_223 = arith.constant 0 : index
    %326 = vector.load %arg4[%c17_221, %c0_222, %c0_223] : memref<49x8x1xf32, #tpu.memory_space<vmem>>, vector<1x8x1xf32>
    %327 = vector.shape_cast %326 : vector<1x8x1xf32> to vector<8x1xf32>
    %c0_224 = arith.constant 0 : index
    %c112_225 = arith.constant 112 : index
    %328 = vector.load %arg13[%c0_224, %c112_225] : memref<8x512xf32, #tpu.memory_space<vmem>>, vector<8x256xf32>
    %329 = vector.broadcast %327 : vector<8x1xf32> to vector<8x256xf32>
    %330 = arith.mulf %329, %328 : vector<8x256xf32>
    %331 = arith.addf %325, %330 : vector<8x256xf32>
    %332 = arith.addf %320, %331 : vector<8x256xf32>
    %c24 = arith.constant 24 : index
    %c0_226 = arith.constant 0 : index
    %c0_227 = arith.constant 0 : index
    %333 = vector.load %arg3[%c24, %c0_226, %c0_227] : memref<49x8x1xf32, #tpu.memory_space<vmem>>, vector<1x8x1xf32>
    %334 = vector.shape_cast %333 : vector<1x8x1xf32> to vector<8x1xf32>
    %c0_228 = arith.constant 0 : index
    %c128_229 = arith.constant 128 : index
    %335 = vector.load %arg12[%c0_228, %c128_229] : memref<8x512xf32, #tpu.memory_space<vmem>>, vector<8x256xf32>
    %336 = vector.broadcast %334 : vector<8x1xf32> to vector<8x256xf32>
    %337 = arith.mulf %336, %335 : vector<8x256xf32>
    %c24_230 = arith.constant 24 : index
    %c0_231 = arith.constant 0 : index
    %c0_232 = arith.constant 0 : index
    %338 = vector.load %arg4[%c24_230, %c0_231, %c0_232] : memref<49x8x1xf32, #tpu.memory_space<vmem>>, vector<1x8x1xf32>
    %339 = vector.shape_cast %338 : vector<1x8x1xf32> to vector<8x1xf32>
    %c0_233 = arith.constant 0 : index
    %c128_234 = arith.constant 128 : index
    %340 = vector.load %arg13[%c0_233, %c128_234] : memref<8x512xf32, #tpu.memory_space<vmem>>, vector<8x256xf32>
    %341 = vector.broadcast %339 : vector<8x1xf32> to vector<8x256xf32>
    %342 = arith.mulf %341, %340 : vector<8x256xf32>
    %343 = arith.addf %337, %342 : vector<8x256xf32>
    %344 = arith.addf %332, %343 : vector<8x256xf32>
    %c31 = arith.constant 31 : index
    %c0_235 = arith.constant 0 : index
    %c0_236 = arith.constant 0 : index
    %345 = vector.load %arg3[%c31, %c0_235, %c0_236] : memref<49x8x1xf32, #tpu.memory_space<vmem>>, vector<1x8x1xf32>
    %346 = vector.shape_cast %345 : vector<1x8x1xf32> to vector<8x1xf32>
    %c0_237 = arith.constant 0 : index
    %c144 = arith.constant 144 : index
    %347 = vector.load %arg12[%c0_237, %c144] : memref<8x512xf32, #tpu.memory_space<vmem>>, vector<8x256xf32>
    %348 = vector.broadcast %346 : vector<8x1xf32> to vector<8x256xf32>
    %349 = arith.mulf %348, %347 : vector<8x256xf32>
    %c31_238 = arith.constant 31 : index
    %c0_239 = arith.constant 0 : index
    %c0_240 = arith.constant 0 : index
    %350 = vector.load %arg4[%c31_238, %c0_239, %c0_240] : memref<49x8x1xf32, #tpu.memory_space<vmem>>, vector<1x8x1xf32>
    %351 = vector.shape_cast %350 : vector<1x8x1xf32> to vector<8x1xf32>
    %c0_241 = arith.constant 0 : index
    %c144_242 = arith.constant 144 : index
    %352 = vector.load %arg13[%c0_241, %c144_242] : memref<8x512xf32, #tpu.memory_space<vmem>>, vector<8x256xf32>
    %353 = vector.broadcast %351 : vector<8x1xf32> to vector<8x256xf32>
    %354 = arith.mulf %353, %352 : vector<8x256xf32>
    %355 = arith.addf %349, %354 : vector<8x256xf32>
    %356 = arith.addf %344, %355 : vector<8x256xf32>
    %c38 = arith.constant 38 : index
    %c0_243 = arith.constant 0 : index
    %c0_244 = arith.constant 0 : index
    %357 = vector.load %arg3[%c38, %c0_243, %c0_244] : memref<49x8x1xf32, #tpu.memory_space<vmem>>, vector<1x8x1xf32>
    %358 = vector.shape_cast %357 : vector<1x8x1xf32> to vector<8x1xf32>
    %c0_245 = arith.constant 0 : index
    %c160 = arith.constant 160 : index
    %359 = vector.load %arg12[%c0_245, %c160] : memref<8x512xf32, #tpu.memory_space<vmem>>, vector<8x256xf32>
    %360 = vector.broadcast %358 : vector<8x1xf32> to vector<8x256xf32>
    %361 = arith.mulf %360, %359 : vector<8x256xf32>
    %c38_246 = arith.constant 38 : index
    %c0_247 = arith.constant 0 : index
    %c0_248 = arith.constant 0 : index
    %362 = vector.load %arg4[%c38_246, %c0_247, %c0_248] : memref<49x8x1xf32, #tpu.memory_space<vmem>>, vector<1x8x1xf32>
    %363 = vector.shape_cast %362 : vector<1x8x1xf32> to vector<8x1xf32>
    %c0_249 = arith.constant 0 : index
    %c160_250 = arith.constant 160 : index
    %364 = vector.load %arg13[%c0_249, %c160_250] : memref<8x512xf32, #tpu.memory_space<vmem>>, vector<8x256xf32>
    %365 = vector.broadcast %363 : vector<8x1xf32> to vector<8x256xf32>
    %366 = arith.mulf %365, %364 : vector<8x256xf32>
    %367 = arith.addf %361, %366 : vector<8x256xf32>
    %368 = arith.addf %356, %367 : vector<8x256xf32>
    %c45 = arith.constant 45 : index
    %c0_251 = arith.constant 0 : index
    %c0_252 = arith.constant 0 : index
    %369 = vector.load %arg3[%c45, %c0_251, %c0_252] : memref<49x8x1xf32, #tpu.memory_space<vmem>>, vector<1x8x1xf32>
    %370 = vector.shape_cast %369 : vector<1x8x1xf32> to vector<8x1xf32>
    %c0_253 = arith.constant 0 : index
    %c176 = arith.constant 176 : index
    %371 = vector.load %arg12[%c0_253, %c176] : memref<8x512xf32, #tpu.memory_space<vmem>>, vector<8x256xf32>
    %372 = vector.broadcast %370 : vector<8x1xf32> to vector<8x256xf32>
    %373 = arith.mulf %372, %371 : vector<8x256xf32>
    %c45_254 = arith.constant 45 : index
    %c0_255 = arith.constant 0 : index
    %c0_256 = arith.constant 0 : index
    %374 = vector.load %arg4[%c45_254, %c0_255, %c0_256] : memref<49x8x1xf32, #tpu.memory_space<vmem>>, vector<1x8x1xf32>
    %375 = vector.shape_cast %374 : vector<1x8x1xf32> to vector<8x1xf32>
    %c0_257 = arith.constant 0 : index
    %c176_258 = arith.constant 176 : index
    %376 = vector.load %arg13[%c0_257, %c176_258] : memref<8x512xf32, #tpu.memory_space<vmem>>, vector<8x256xf32>
    %377 = vector.broadcast %375 : vector<8x1xf32> to vector<8x256xf32>
    %378 = arith.mulf %377, %376 : vector<8x256xf32>
    %379 = arith.addf %373, %378 : vector<8x256xf32>
    %380 = arith.addf %368, %379 : vector<8x256xf32>
    %381 = arith.addf %295, %380 : vector<8x256xf32>
    %cst_259 = arith.constant 0.000000e+00 : f32
    %382 = vector.broadcast %cst_259 : f32 to vector<8x256xf32>
    %c4 = arith.constant 4 : index
    %c0_260 = arith.constant 0 : index
    %c0_261 = arith.constant 0 : index
    %383 = vector.load %arg3[%c4, %c0_260, %c0_261] : memref<49x8x1xf32, #tpu.memory_space<vmem>>, vector<1x8x1xf32>
    %384 = vector.shape_cast %383 : vector<1x8x1xf32> to vector<8x1xf32>
    %c0_262 = arith.constant 0 : index
    %c81 = arith.constant 81 : index
    %385 = vector.load %arg12[%c0_262, %c81] : memref<8x512xf32, #tpu.memory_space<vmem>>, vector<8x256xf32>
    %386 = vector.broadcast %384 : vector<8x1xf32> to vector<8x256xf32>
    %387 = arith.mulf %386, %385 : vector<8x256xf32>
    %c4_263 = arith.constant 4 : index
    %c0_264 = arith.constant 0 : index
    %c0_265 = arith.constant 0 : index
    %388 = vector.load %arg4[%c4_263, %c0_264, %c0_265] : memref<49x8x1xf32, #tpu.memory_space<vmem>>, vector<1x8x1xf32>
    %389 = vector.shape_cast %388 : vector<1x8x1xf32> to vector<8x1xf32>
    %c0_266 = arith.constant 0 : index
    %c81_267 = arith.constant 81 : index
    %390 = vector.load %arg13[%c0_266, %c81_267] : memref<8x512xf32, #tpu.memory_space<vmem>>, vector<8x256xf32>
    %391 = vector.broadcast %389 : vector<8x1xf32> to vector<8x256xf32>
    %392 = arith.mulf %391, %390 : vector<8x256xf32>
    %393 = arith.addf %387, %392 : vector<8x256xf32>
    %394 = arith.addf %382, %393 : vector<8x256xf32>
    %c11 = arith.constant 11 : index
    %c0_268 = arith.constant 0 : index
    %c0_269 = arith.constant 0 : index
    %395 = vector.load %arg3[%c11, %c0_268, %c0_269] : memref<49x8x1xf32, #tpu.memory_space<vmem>>, vector<1x8x1xf32>
    %396 = vector.shape_cast %395 : vector<1x8x1xf32> to vector<8x1xf32>
    %c0_270 = arith.constant 0 : index
    %c97 = arith.constant 97 : index
    %397 = vector.load %arg12[%c0_270, %c97] : memref<8x512xf32, #tpu.memory_space<vmem>>, vector<8x256xf32>
    %398 = vector.broadcast %396 : vector<8x1xf32> to vector<8x256xf32>
    %399 = arith.mulf %398, %397 : vector<8x256xf32>
    %c11_271 = arith.constant 11 : index
    %c0_272 = arith.constant 0 : index
    %c0_273 = arith.constant 0 : index
    %400 = vector.load %arg4[%c11_271, %c0_272, %c0_273] : memref<49x8x1xf32, #tpu.memory_space<vmem>>, vector<1x8x1xf32>
    %401 = vector.shape_cast %400 : vector<1x8x1xf32> to vector<8x1xf32>
    %c0_274 = arith.constant 0 : index
    %c97_275 = arith.constant 97 : index
    %402 = vector.load %arg13[%c0_274, %c97_275] : memref<8x512xf32, #tpu.memory_space<vmem>>, vector<8x256xf32>
    %403 = vector.broadcast %401 : vector<8x1xf32> to vector<8x256xf32>
    %404 = arith.mulf %403, %402 : vector<8x256xf32>
    %405 = arith.addf %399, %404 : vector<8x256xf32>
    %406 = arith.addf %394, %405 : vector<8x256xf32>
    %c18 = arith.constant 18 : index
    %c0_276 = arith.constant 0 : index
    %c0_277 = arith.constant 0 : index
    %407 = vector.load %arg3[%c18, %c0_276, %c0_277] : memref<49x8x1xf32, #tpu.memory_space<vmem>>, vector<1x8x1xf32>
    %408 = vector.shape_cast %407 : vector<1x8x1xf32> to vector<8x1xf32>
    %c0_278 = arith.constant 0 : index
    %c113 = arith.constant 113 : index
    %409 = vector.load %arg12[%c0_278, %c113] : memref<8x512xf32, #tpu.memory_space<vmem>>, vector<8x256xf32>
    %410 = vector.broadcast %408 : vector<8x1xf32> to vector<8x256xf32>
    %411 = arith.mulf %410, %409 : vector<8x256xf32>
    %c18_279 = arith.constant 18 : index
    %c0_280 = arith.constant 0 : index
    %c0_281 = arith.constant 0 : index
    %412 = vector.load %arg4[%c18_279, %c0_280, %c0_281] : memref<49x8x1xf32, #tpu.memory_space<vmem>>, vector<1x8x1xf32>
    %413 = vector.shape_cast %412 : vector<1x8x1xf32> to vector<8x1xf32>
    %c0_282 = arith.constant 0 : index
    %c113_283 = arith.constant 113 : index
    %414 = vector.load %arg13[%c0_282, %c113_283] : memref<8x512xf32, #tpu.memory_space<vmem>>, vector<8x256xf32>
    %415 = vector.broadcast %413 : vector<8x1xf32> to vector<8x256xf32>
    %416 = arith.mulf %415, %414 : vector<8x256xf32>
    %417 = arith.addf %411, %416 : vector<8x256xf32>
    %418 = arith.addf %406, %417 : vector<8x256xf32>
    %c25 = arith.constant 25 : index
    %c0_284 = arith.constant 0 : index
    %c0_285 = arith.constant 0 : index
    %419 = vector.load %arg3[%c25, %c0_284, %c0_285] : memref<49x8x1xf32, #tpu.memory_space<vmem>>, vector<1x8x1xf32>
    %420 = vector.shape_cast %419 : vector<1x8x1xf32> to vector<8x1xf32>
    %c0_286 = arith.constant 0 : index
    %c129 = arith.constant 129 : index
    %421 = vector.load %arg12[%c0_286, %c129] : memref<8x512xf32, #tpu.memory_space<vmem>>, vector<8x256xf32>
    %422 = vector.broadcast %420 : vector<8x1xf32> to vector<8x256xf32>
    %423 = arith.mulf %422, %421 : vector<8x256xf32>
    %c25_287 = arith.constant 25 : index
    %c0_288 = arith.constant 0 : index
    %c0_289 = arith.constant 0 : index
    %424 = vector.load %arg4[%c25_287, %c0_288, %c0_289] : memref<49x8x1xf32, #tpu.memory_space<vmem>>, vector<1x8x1xf32>
    %425 = vector.shape_cast %424 : vector<1x8x1xf32> to vector<8x1xf32>
    %c0_290 = arith.constant 0 : index
    %c129_291 = arith.constant 129 : index
    %426 = vector.load %arg13[%c0_290, %c129_291] : memref<8x512xf32, #tpu.memory_space<vmem>>, vector<8x256xf32>
    %427 = vector.broadcast %425 : vector<8x1xf32> to vector<8x256xf32>
    %428 = arith.mulf %427, %426 : vector<8x256xf32>
    %429 = arith.addf %423, %428 : vector<8x256xf32>
    %430 = arith.addf %418, %429 : vector<8x256xf32>
    %c32 = arith.constant 32 : index
    %c0_292 = arith.constant 0 : index
    %c0_293 = arith.constant 0 : index
    %431 = vector.load %arg3[%c32, %c0_292, %c0_293] : memref<49x8x1xf32, #tpu.memory_space<vmem>>, vector<1x8x1xf32>
    %432 = vector.shape_cast %431 : vector<1x8x1xf32> to vector<8x1xf32>
    %c0_294 = arith.constant 0 : index
    %c145 = arith.constant 145 : index
    %433 = vector.load %arg12[%c0_294, %c145] : memref<8x512xf32, #tpu.memory_space<vmem>>, vector<8x256xf32>
    %434 = vector.broadcast %432 : vector<8x1xf32> to vector<8x256xf32>
    %435 = arith.mulf %434, %433 : vector<8x256xf32>
    %c32_295 = arith.constant 32 : index
    %c0_296 = arith.constant 0 : index
    %c0_297 = arith.constant 0 : index
    %436 = vector.load %arg4[%c32_295, %c0_296, %c0_297] : memref<49x8x1xf32, #tpu.memory_space<vmem>>, vector<1x8x1xf32>
    %437 = vector.shape_cast %436 : vector<1x8x1xf32> to vector<8x1xf32>
    %c0_298 = arith.constant 0 : index
    %c145_299 = arith.constant 145 : index
    %438 = vector.load %arg13[%c0_298, %c145_299] : memref<8x512xf32, #tpu.memory_space<vmem>>, vector<8x256xf32>
    %439 = vector.broadcast %437 : vector<8x1xf32> to vector<8x256xf32>
    %440 = arith.mulf %439, %438 : vector<8x256xf32>
    %441 = arith.addf %435, %440 : vector<8x256xf32>
    %442 = arith.addf %430, %441 : vector<8x256xf32>
    %c39 = arith.constant 39 : index
    %c0_300 = arith.constant 0 : index
    %c0_301 = arith.constant 0 : index
    %443 = vector.load %arg3[%c39, %c0_300, %c0_301] : memref<49x8x1xf32, #tpu.memory_space<vmem>>, vector<1x8x1xf32>
    %444 = vector.shape_cast %443 : vector<1x8x1xf32> to vector<8x1xf32>
    %c0_302 = arith.constant 0 : index
    %c161 = arith.constant 161 : index
    %445 = vector.load %arg12[%c0_302, %c161] : memref<8x512xf32, #tpu.memory_space<vmem>>, vector<8x256xf32>
    %446 = vector.broadcast %444 : vector<8x1xf32> to vector<8x256xf32>
    %447 = arith.mulf %446, %445 : vector<8x256xf32>
    %c39_303 = arith.constant 39 : index
    %c0_304 = arith.constant 0 : index
    %c0_305 = arith.constant 0 : index
    %448 = vector.load %arg4[%c39_303, %c0_304, %c0_305] : memref<49x8x1xf32, #tpu.memory_space<vmem>>, vector<1x8x1xf32>
    %449 = vector.shape_cast %448 : vector<1x8x1xf32> to vector<8x1xf32>
    %c0_306 = arith.constant 0 : index
    %c161_307 = arith.constant 161 : index
    %450 = vector.load %arg13[%c0_306, %c161_307] : memref<8x512xf32, #tpu.memory_space<vmem>>, vector<8x256xf32>
    %451 = vector.broadcast %449 : vector<8x1xf32> to vector<8x256xf32>
    %452 = arith.mulf %451, %450 : vector<8x256xf32>
    %453 = arith.addf %447, %452 : vector<8x256xf32>
    %454 = arith.addf %442, %453 : vector<8x256xf32>
    %c46 = arith.constant 46 : index
    %c0_308 = arith.constant 0 : index
    %c0_309 = arith.constant 0 : index
    %455 = vector.load %arg3[%c46, %c0_308, %c0_309] : memref<49x8x1xf32, #tpu.memory_space<vmem>>, vector<1x8x1xf32>
    %456 = vector.shape_cast %455 : vector<1x8x1xf32> to vector<8x1xf32>
    %c0_310 = arith.constant 0 : index
    %c177 = arith.constant 177 : index
    %457 = vector.load %arg12[%c0_310, %c177] : memref<8x512xf32, #tpu.memory_space<vmem>>, vector<8x256xf32>
    %458 = vector.broadcast %456 : vector<8x1xf32> to vector<8x256xf32>
    %459 = arith.mulf %458, %457 : vector<8x256xf32>
    %c46_311 = arith.constant 46 : index
    %c0_312 = arith.constant 0 : index
    %c0_313 = arith.constant 0 : index
    %460 = vector.load %arg4[%c46_311, %c0_312, %c0_313] : memref<49x8x1xf32, #tpu.memory_space<vmem>>, vector<1x8x1xf32>
    %461 = vector.shape_cast %460 : vector<1x8x1xf32> to vector<8x1xf32>
    %c0_314 = arith.constant 0 : index
    %c177_315 = arith.constant 177 : index
    %462 = vector.load %arg13[%c0_314, %c177_315] : memref<8x512xf32, #tpu.memory_space<vmem>>, vector<8x256xf32>
    %463 = vector.broadcast %461 : vector<8x1xf32> to vector<8x256xf32>
    %464 = arith.mulf %463, %462 : vector<8x256xf32>
    %465 = arith.addf %459, %464 : vector<8x256xf32>
    %466 = arith.addf %454, %465 : vector<8x256xf32>
    %c4_316 = arith.constant 4 : index
    %c0_317 = arith.constant 0 : index
    %c0_318 = arith.constant 0 : index
    %467 = vector.load %arg5[%c4_316, %c0_317, %c0_318] : memref<7x1x256xf32, #tpu.memory_space<vmem>>, vector<1x1x256xf32>
    %468 = vector.shape_cast %467 : vector<1x1x256xf32> to vector<1x256xf32>
    %469 = vector.broadcast %468 : vector<1x256xf32> to vector<8x256xf32>
    %470 = arith.mulf %469, %466 : vector<8x256xf32>
    %471 = arith.addf %381, %470 : vector<8x256xf32>
    %cst_319 = arith.constant 0.000000e+00 : f32
    %472 = vector.broadcast %cst_319 : f32 to vector<8x256xf32>
    %c5 = arith.constant 5 : index
    %c0_320 = arith.constant 0 : index
    %c0_321 = arith.constant 0 : index
    %473 = vector.load %arg3[%c5, %c0_320, %c0_321] : memref<49x8x1xf32, #tpu.memory_space<vmem>>, vector<1x8x1xf32>
    %474 = vector.shape_cast %473 : vector<1x8x1xf32> to vector<8x1xf32>
    %c0_322 = arith.constant 0 : index
    %c82 = arith.constant 82 : index
    %475 = vector.load %arg12[%c0_322, %c82] : memref<8x512xf32, #tpu.memory_space<vmem>>, vector<8x256xf32>
    %476 = vector.broadcast %474 : vector<8x1xf32> to vector<8x256xf32>
    %477 = arith.mulf %476, %475 : vector<8x256xf32>
    %c5_323 = arith.constant 5 : index
    %c0_324 = arith.constant 0 : index
    %c0_325 = arith.constant 0 : index
    %478 = vector.load %arg4[%c5_323, %c0_324, %c0_325] : memref<49x8x1xf32, #tpu.memory_space<vmem>>, vector<1x8x1xf32>
    %479 = vector.shape_cast %478 : vector<1x8x1xf32> to vector<8x1xf32>
    %c0_326 = arith.constant 0 : index
    %c82_327 = arith.constant 82 : index
    %480 = vector.load %arg13[%c0_326, %c82_327] : memref<8x512xf32, #tpu.memory_space<vmem>>, vector<8x256xf32>
    %481 = vector.broadcast %479 : vector<8x1xf32> to vector<8x256xf32>
    %482 = arith.mulf %481, %480 : vector<8x256xf32>
    %483 = arith.addf %477, %482 : vector<8x256xf32>
    %484 = arith.addf %472, %483 : vector<8x256xf32>
    %c12 = arith.constant 12 : index
    %c0_328 = arith.constant 0 : index
    %c0_329 = arith.constant 0 : index
    %485 = vector.load %arg3[%c12, %c0_328, %c0_329] : memref<49x8x1xf32, #tpu.memory_space<vmem>>, vector<1x8x1xf32>
    %486 = vector.shape_cast %485 : vector<1x8x1xf32> to vector<8x1xf32>
    %c0_330 = arith.constant 0 : index
    %c98 = arith.constant 98 : index
    %487 = vector.load %arg12[%c0_330, %c98] : memref<8x512xf32, #tpu.memory_space<vmem>>, vector<8x256xf32>
    %488 = vector.broadcast %486 : vector<8x1xf32> to vector<8x256xf32>
    %489 = arith.mulf %488, %487 : vector<8x256xf32>
    %c12_331 = arith.constant 12 : index
    %c0_332 = arith.constant 0 : index
    %c0_333 = arith.constant 0 : index
    %490 = vector.load %arg4[%c12_331, %c0_332, %c0_333] : memref<49x8x1xf32, #tpu.memory_space<vmem>>, vector<1x8x1xf32>
    %491 = vector.shape_cast %490 : vector<1x8x1xf32> to vector<8x1xf32>
    %c0_334 = arith.constant 0 : index
    %c98_335 = arith.constant 98 : index
    %492 = vector.load %arg13[%c0_334, %c98_335] : memref<8x512xf32, #tpu.memory_space<vmem>>, vector<8x256xf32>
    %493 = vector.broadcast %491 : vector<8x1xf32> to vector<8x256xf32>
    %494 = arith.mulf %493, %492 : vector<8x256xf32>
    %495 = arith.addf %489, %494 : vector<8x256xf32>
    %496 = arith.addf %484, %495 : vector<8x256xf32>
    %c19 = arith.constant 19 : index
    %c0_336 = arith.constant 0 : index
    %c0_337 = arith.constant 0 : index
    %497 = vector.load %arg3[%c19, %c0_336, %c0_337] : memref<49x8x1xf32, #tpu.memory_space<vmem>>, vector<1x8x1xf32>
    %498 = vector.shape_cast %497 : vector<1x8x1xf32> to vector<8x1xf32>
    %c0_338 = arith.constant 0 : index
    %c114 = arith.constant 114 : index
    %499 = vector.load %arg12[%c0_338, %c114] : memref<8x512xf32, #tpu.memory_space<vmem>>, vector<8x256xf32>
    %500 = vector.broadcast %498 : vector<8x1xf32> to vector<8x256xf32>
    %501 = arith.mulf %500, %499 : vector<8x256xf32>
    %c19_339 = arith.constant 19 : index
    %c0_340 = arith.constant 0 : index
    %c0_341 = arith.constant 0 : index
    %502 = vector.load %arg4[%c19_339, %c0_340, %c0_341] : memref<49x8x1xf32, #tpu.memory_space<vmem>>, vector<1x8x1xf32>
    %503 = vector.shape_cast %502 : vector<1x8x1xf32> to vector<8x1xf32>
    %c0_342 = arith.constant 0 : index
    %c114_343 = arith.constant 114 : index
    %504 = vector.load %arg13[%c0_342, %c114_343] : memref<8x512xf32, #tpu.memory_space<vmem>>, vector<8x256xf32>
    %505 = vector.broadcast %503 : vector<8x1xf32> to vector<8x256xf32>
    %506 = arith.mulf %505, %504 : vector<8x256xf32>
    %507 = arith.addf %501, %506 : vector<8x256xf32>
    %508 = arith.addf %496, %507 : vector<8x256xf32>
    %c26 = arith.constant 26 : index
    %c0_344 = arith.constant 0 : index
    %c0_345 = arith.constant 0 : index
    %509 = vector.load %arg3[%c26, %c0_344, %c0_345] : memref<49x8x1xf32, #tpu.memory_space<vmem>>, vector<1x8x1xf32>
    %510 = vector.shape_cast %509 : vector<1x8x1xf32> to vector<8x1xf32>
    %c0_346 = arith.constant 0 : index
    %c130 = arith.constant 130 : index
    %511 = vector.load %arg12[%c0_346, %c130] : memref<8x512xf32, #tpu.memory_space<vmem>>, vector<8x256xf32>
    %512 = vector.broadcast %510 : vector<8x1xf32> to vector<8x256xf32>
    %513 = arith.mulf %512, %511 : vector<8x256xf32>
    %c26_347 = arith.constant 26 : index
    %c0_348 = arith.constant 0 : index
    %c0_349 = arith.constant 0 : index
    %514 = vector.load %arg4[%c26_347, %c0_348, %c0_349] : memref<49x8x1xf32, #tpu.memory_space<vmem>>, vector<1x8x1xf32>
    %515 = vector.shape_cast %514 : vector<1x8x1xf32> to vector<8x1xf32>
    %c0_350 = arith.constant 0 : index
    %c130_351 = arith.constant 130 : index
    %516 = vector.load %arg13[%c0_350, %c130_351] : memref<8x512xf32, #tpu.memory_space<vmem>>, vector<8x256xf32>
    %517 = vector.broadcast %515 : vector<8x1xf32> to vector<8x256xf32>
    %518 = arith.mulf %517, %516 : vector<8x256xf32>
    %519 = arith.addf %513, %518 : vector<8x256xf32>
    %520 = arith.addf %508, %519 : vector<8x256xf32>
    %c33 = arith.constant 33 : index
    %c0_352 = arith.constant 0 : index
    %c0_353 = arith.constant 0 : index
    %521 = vector.load %arg3[%c33, %c0_352, %c0_353] : memref<49x8x1xf32, #tpu.memory_space<vmem>>, vector<1x8x1xf32>
    %522 = vector.shape_cast %521 : vector<1x8x1xf32> to vector<8x1xf32>
    %c0_354 = arith.constant 0 : index
    %c146 = arith.constant 146 : index
    %523 = vector.load %arg12[%c0_354, %c146] : memref<8x512xf32, #tpu.memory_space<vmem>>, vector<8x256xf32>
    %524 = vector.broadcast %522 : vector<8x1xf32> to vector<8x256xf32>
    %525 = arith.mulf %524, %523 : vector<8x256xf32>
    %c33_355 = arith.constant 33 : index
    %c0_356 = arith.constant 0 : index
    %c0_357 = arith.constant 0 : index
    %526 = vector.load %arg4[%c33_355, %c0_356, %c0_357] : memref<49x8x1xf32, #tpu.memory_space<vmem>>, vector<1x8x1xf32>
    %527 = vector.shape_cast %526 : vector<1x8x1xf32> to vector<8x1xf32>
    %c0_358 = arith.constant 0 : index
    %c146_359 = arith.constant 146 : index
    %528 = vector.load %arg13[%c0_358, %c146_359] : memref<8x512xf32, #tpu.memory_space<vmem>>, vector<8x256xf32>
    %529 = vector.broadcast %527 : vector<8x1xf32> to vector<8x256xf32>
    %530 = arith.mulf %529, %528 : vector<8x256xf32>
    %531 = arith.addf %525, %530 : vector<8x256xf32>
    %532 = arith.addf %520, %531 : vector<8x256xf32>
    %c40 = arith.constant 40 : index
    %c0_360 = arith.constant 0 : index
    %c0_361 = arith.constant 0 : index
    %533 = vector.load %arg3[%c40, %c0_360, %c0_361] : memref<49x8x1xf32, #tpu.memory_space<vmem>>, vector<1x8x1xf32>
    %534 = vector.shape_cast %533 : vector<1x8x1xf32> to vector<8x1xf32>
    %c0_362 = arith.constant 0 : index
    %c162 = arith.constant 162 : index
    %535 = vector.load %arg12[%c0_362, %c162] : memref<8x512xf32, #tpu.memory_space<vmem>>, vector<8x256xf32>
    %536 = vector.broadcast %534 : vector<8x1xf32> to vector<8x256xf32>
    %537 = arith.mulf %536, %535 : vector<8x256xf32>
    %c40_363 = arith.constant 40 : index
    %c0_364 = arith.constant 0 : index
    %c0_365 = arith.constant 0 : index
    %538 = vector.load %arg4[%c40_363, %c0_364, %c0_365] : memref<49x8x1xf32, #tpu.memory_space<vmem>>, vector<1x8x1xf32>
    %539 = vector.shape_cast %538 : vector<1x8x1xf32> to vector<8x1xf32>
    %c0_366 = arith.constant 0 : index
    %c162_367 = arith.constant 162 : index
    %540 = vector.load %arg13[%c0_366, %c162_367] : memref<8x512xf32, #tpu.memory_space<vmem>>, vector<8x256xf32>
    %541 = vector.broadcast %539 : vector<8x1xf32> to vector<8x256xf32>
    %542 = arith.mulf %541, %540 : vector<8x256xf32>
    %543 = arith.addf %537, %542 : vector<8x256xf32>
    %544 = arith.addf %532, %543 : vector<8x256xf32>
    %c47 = arith.constant 47 : index
    %c0_368 = arith.constant 0 : index
    %c0_369 = arith.constant 0 : index
    %545 = vector.load %arg3[%c47, %c0_368, %c0_369] : memref<49x8x1xf32, #tpu.memory_space<vmem>>, vector<1x8x1xf32>
    %546 = vector.shape_cast %545 : vector<1x8x1xf32> to vector<8x1xf32>
    %c0_370 = arith.constant 0 : index
    %c178 = arith.constant 178 : index
    %547 = vector.load %arg12[%c0_370, %c178] : memref<8x512xf32, #tpu.memory_space<vmem>>, vector<8x256xf32>
    %548 = vector.broadcast %546 : vector<8x1xf32> to vector<8x256xf32>
    %549 = arith.mulf %548, %547 : vector<8x256xf32>
    %c47_371 = arith.constant 47 : index
    %c0_372 = arith.constant 0 : index
    %c0_373 = arith.constant 0 : index
    %550 = vector.load %arg4[%c47_371, %c0_372, %c0_373] : memref<49x8x1xf32, #tpu.memory_space<vmem>>, vector<1x8x1xf32>
    %551 = vector.shape_cast %550 : vector<1x8x1xf32> to vector<8x1xf32>
    %c0_374 = arith.constant 0 : index
    %c178_375 = arith.constant 178 : index
    %552 = vector.load %arg13[%c0_374, %c178_375] : memref<8x512xf32, #tpu.memory_space<vmem>>, vector<8x256xf32>
    %553 = vector.broadcast %551 : vector<8x1xf32> to vector<8x256xf32>
    %554 = arith.mulf %553, %552 : vector<8x256xf32>
    %555 = arith.addf %549, %554 : vector<8x256xf32>
    %556 = arith.addf %544, %555 : vector<8x256xf32>
    %c5_376 = arith.constant 5 : index
    %c0_377 = arith.constant 0 : index
    %c0_378 = arith.constant 0 : index
    %557 = vector.load %arg5[%c5_376, %c0_377, %c0_378] : memref<7x1x256xf32, #tpu.memory_space<vmem>>, vector<1x1x256xf32>
    %558 = vector.shape_cast %557 : vector<1x1x256xf32> to vector<1x256xf32>
    %559 = vector.broadcast %558 : vector<1x256xf32> to vector<8x256xf32>
    %560 = arith.mulf %559, %556 : vector<8x256xf32>
    %561 = arith.addf %471, %560 : vector<8x256xf32>
    %cst_379 = arith.constant 0.000000e+00 : f32
    %562 = vector.broadcast %cst_379 : f32 to vector<8x256xf32>
    %c6 = arith.constant 6 : index
    %c0_380 = arith.constant 0 : index
    %c0_381 = arith.constant 0 : index
    %563 = vector.load %arg3[%c6, %c0_380, %c0_381] : memref<49x8x1xf32, #tpu.memory_space<vmem>>, vector<1x8x1xf32>
    %564 = vector.shape_cast %563 : vector<1x8x1xf32> to vector<8x1xf32>
    %c0_382 = arith.constant 0 : index
    %c83 = arith.constant 83 : index
    %565 = vector.load %arg12[%c0_382, %c83] : memref<8x512xf32, #tpu.memory_space<vmem>>, vector<8x256xf32>
    %566 = vector.broadcast %564 : vector<8x1xf32> to vector<8x256xf32>
    %567 = arith.mulf %566, %565 : vector<8x256xf32>
    %c6_383 = arith.constant 6 : index
    %c0_384 = arith.constant 0 : index
    %c0_385 = arith.constant 0 : index
    %568 = vector.load %arg4[%c6_383, %c0_384, %c0_385] : memref<49x8x1xf32, #tpu.memory_space<vmem>>, vector<1x8x1xf32>
    %569 = vector.shape_cast %568 : vector<1x8x1xf32> to vector<8x1xf32>
    %c0_386 = arith.constant 0 : index
    %c83_387 = arith.constant 83 : index
    %570 = vector.load %arg13[%c0_386, %c83_387] : memref<8x512xf32, #tpu.memory_space<vmem>>, vector<8x256xf32>
    %571 = vector.broadcast %569 : vector<8x1xf32> to vector<8x256xf32>
    %572 = arith.mulf %571, %570 : vector<8x256xf32>
    %573 = arith.addf %567, %572 : vector<8x256xf32>
    %574 = arith.addf %562, %573 : vector<8x256xf32>
    %c13 = arith.constant 13 : index
    %c0_388 = arith.constant 0 : index
    %c0_389 = arith.constant 0 : index
    %575 = vector.load %arg3[%c13, %c0_388, %c0_389] : memref<49x8x1xf32, #tpu.memory_space<vmem>>, vector<1x8x1xf32>
    %576 = vector.shape_cast %575 : vector<1x8x1xf32> to vector<8x1xf32>
    %c0_390 = arith.constant 0 : index
    %c99 = arith.constant 99 : index
    %577 = vector.load %arg12[%c0_390, %c99] : memref<8x512xf32, #tpu.memory_space<vmem>>, vector<8x256xf32>
    %578 = vector.broadcast %576 : vector<8x1xf32> to vector<8x256xf32>
    %579 = arith.mulf %578, %577 : vector<8x256xf32>
    %c13_391 = arith.constant 13 : index
    %c0_392 = arith.constant 0 : index
    %c0_393 = arith.constant 0 : index
    %580 = vector.load %arg4[%c13_391, %c0_392, %c0_393] : memref<49x8x1xf32, #tpu.memory_space<vmem>>, vector<1x8x1xf32>
    %581 = vector.shape_cast %580 : vector<1x8x1xf32> to vector<8x1xf32>
    %c0_394 = arith.constant 0 : index
    %c99_395 = arith.constant 99 : index
    %582 = vector.load %arg13[%c0_394, %c99_395] : memref<8x512xf32, #tpu.memory_space<vmem>>, vector<8x256xf32>
    %583 = vector.broadcast %581 : vector<8x1xf32> to vector<8x256xf32>
    %584 = arith.mulf %583, %582 : vector<8x256xf32>
    %585 = arith.addf %579, %584 : vector<8x256xf32>
    %586 = arith.addf %574, %585 : vector<8x256xf32>
    %c20 = arith.constant 20 : index
    %c0_396 = arith.constant 0 : index
    %c0_397 = arith.constant 0 : index
    %587 = vector.load %arg3[%c20, %c0_396, %c0_397] : memref<49x8x1xf32, #tpu.memory_space<vmem>>, vector<1x8x1xf32>
    %588 = vector.shape_cast %587 : vector<1x8x1xf32> to vector<8x1xf32>
    %c0_398 = arith.constant 0 : index
    %c115 = arith.constant 115 : index
    %589 = vector.load %arg12[%c0_398, %c115] : memref<8x512xf32, #tpu.memory_space<vmem>>, vector<8x256xf32>
    %590 = vector.broadcast %588 : vector<8x1xf32> to vector<8x256xf32>
    %591 = arith.mulf %590, %589 : vector<8x256xf32>
    %c20_399 = arith.constant 20 : index
    %c0_400 = arith.constant 0 : index
    %c0_401 = arith.constant 0 : index
    %592 = vector.load %arg4[%c20_399, %c0_400, %c0_401] : memref<49x8x1xf32, #tpu.memory_space<vmem>>, vector<1x8x1xf32>
    %593 = vector.shape_cast %592 : vector<1x8x1xf32> to vector<8x1xf32>
    %c0_402 = arith.constant 0 : index
    %c115_403 = arith.constant 115 : index
    %594 = vector.load %arg13[%c0_402, %c115_403] : memref<8x512xf32, #tpu.memory_space<vmem>>, vector<8x256xf32>
    %595 = vector.broadcast %593 : vector<8x1xf32> to vector<8x256xf32>
    %596 = arith.mulf %595, %594 : vector<8x256xf32>
    %597 = arith.addf %591, %596 : vector<8x256xf32>
    %598 = arith.addf %586, %597 : vector<8x256xf32>
    %c27 = arith.constant 27 : index
    %c0_404 = arith.constant 0 : index
    %c0_405 = arith.constant 0 : index
    %599 = vector.load %arg3[%c27, %c0_404, %c0_405] : memref<49x8x1xf32, #tpu.memory_space<vmem>>, vector<1x8x1xf32>
    %600 = vector.shape_cast %599 : vector<1x8x1xf32> to vector<8x1xf32>
    %c0_406 = arith.constant 0 : index
    %c131 = arith.constant 131 : index
    %601 = vector.load %arg12[%c0_406, %c131] : memref<8x512xf32, #tpu.memory_space<vmem>>, vector<8x256xf32>
    %602 = vector.broadcast %600 : vector<8x1xf32> to vector<8x256xf32>
    %603 = arith.mulf %602, %601 : vector<8x256xf32>
    %c27_407 = arith.constant 27 : index
    %c0_408 = arith.constant 0 : index
    %c0_409 = arith.constant 0 : index
    %604 = vector.load %arg4[%c27_407, %c0_408, %c0_409] : memref<49x8x1xf32, #tpu.memory_space<vmem>>, vector<1x8x1xf32>
    %605 = vector.shape_cast %604 : vector<1x8x1xf32> to vector<8x1xf32>
    %c0_410 = arith.constant 0 : index
    %c131_411 = arith.constant 131 : index
    %606 = vector.load %arg13[%c0_410, %c131_411] : memref<8x512xf32, #tpu.memory_space<vmem>>, vector<8x256xf32>
    %607 = vector.broadcast %605 : vector<8x1xf32> to vector<8x256xf32>
    %608 = arith.mulf %607, %606 : vector<8x256xf32>
    %609 = arith.addf %603, %608 : vector<8x256xf32>
    %610 = arith.addf %598, %609 : vector<8x256xf32>
    %c34 = arith.constant 34 : index
    %c0_412 = arith.constant 0 : index
    %c0_413 = arith.constant 0 : index
    %611 = vector.load %arg3[%c34, %c0_412, %c0_413] : memref<49x8x1xf32, #tpu.memory_space<vmem>>, vector<1x8x1xf32>
    %612 = vector.shape_cast %611 : vector<1x8x1xf32> to vector<8x1xf32>
    %c0_414 = arith.constant 0 : index
    %c147 = arith.constant 147 : index
    %613 = vector.load %arg12[%c0_414, %c147] : memref<8x512xf32, #tpu.memory_space<vmem>>, vector<8x256xf32>
    %614 = vector.broadcast %612 : vector<8x1xf32> to vector<8x256xf32>
    %615 = arith.mulf %614, %613 : vector<8x256xf32>
    %c34_415 = arith.constant 34 : index
    %c0_416 = arith.constant 0 : index
    %c0_417 = arith.constant 0 : index
    %616 = vector.load %arg4[%c34_415, %c0_416, %c0_417] : memref<49x8x1xf32, #tpu.memory_space<vmem>>, vector<1x8x1xf32>
    %617 = vector.shape_cast %616 : vector<1x8x1xf32> to vector<8x1xf32>
    %c0_418 = arith.constant 0 : index
    %c147_419 = arith.constant 147 : index
    %618 = vector.load %arg13[%c0_418, %c147_419] : memref<8x512xf32, #tpu.memory_space<vmem>>, vector<8x256xf32>
    %619 = vector.broadcast %617 : vector<8x1xf32> to vector<8x256xf32>
    %620 = arith.mulf %619, %618 : vector<8x256xf32>
    %621 = arith.addf %615, %620 : vector<8x256xf32>
    %622 = arith.addf %610, %621 : vector<8x256xf32>
    %c41 = arith.constant 41 : index
    %c0_420 = arith.constant 0 : index
    %c0_421 = arith.constant 0 : index
    %623 = vector.load %arg3[%c41, %c0_420, %c0_421] : memref<49x8x1xf32, #tpu.memory_space<vmem>>, vector<1x8x1xf32>
    %624 = vector.shape_cast %623 : vector<1x8x1xf32> to vector<8x1xf32>
    %c0_422 = arith.constant 0 : index
    %c163 = arith.constant 163 : index
    %625 = vector.load %arg12[%c0_422, %c163] : memref<8x512xf32, #tpu.memory_space<vmem>>, vector<8x256xf32>
    %626 = vector.broadcast %624 : vector<8x1xf32> to vector<8x256xf32>
    %627 = arith.mulf %626, %625 : vector<8x256xf32>
    %c41_423 = arith.constant 41 : index
    %c0_424 = arith.constant 0 : index
    %c0_425 = arith.constant 0 : index
    %628 = vector.load %arg4[%c41_423, %c0_424, %c0_425] : memref<49x8x1xf32, #tpu.memory_space<vmem>>, vector<1x8x1xf32>
    %629 = vector.shape_cast %628 : vector<1x8x1xf32> to vector<8x1xf32>
    %c0_426 = arith.constant 0 : index
    %c163_427 = arith.constant 163 : index
    %630 = vector.load %arg13[%c0_426, %c163_427] : memref<8x512xf32, #tpu.memory_space<vmem>>, vector<8x256xf32>
    %631 = vector.broadcast %629 : vector<8x1xf32> to vector<8x256xf32>
    %632 = arith.mulf %631, %630 : vector<8x256xf32>
    %633 = arith.addf %627, %632 : vector<8x256xf32>
    %634 = arith.addf %622, %633 : vector<8x256xf32>
    %c48 = arith.constant 48 : index
    %c0_428 = arith.constant 0 : index
    %c0_429 = arith.constant 0 : index
    %635 = vector.load %arg3[%c48, %c0_428, %c0_429] : memref<49x8x1xf32, #tpu.memory_space<vmem>>, vector<1x8x1xf32>
    %636 = vector.shape_cast %635 : vector<1x8x1xf32> to vector<8x1xf32>
    %c0_430 = arith.constant 0 : index
    %c179 = arith.constant 179 : index
    %637 = vector.load %arg12[%c0_430, %c179] : memref<8x512xf32, #tpu.memory_space<vmem>>, vector<8x256xf32>
    %638 = vector.broadcast %636 : vector<8x1xf32> to vector<8x256xf32>
    %639 = arith.mulf %638, %637 : vector<8x256xf32>
    %c48_431 = arith.constant 48 : index
    %c0_432 = arith.constant 0 : index
    %c0_433 = arith.constant 0 : index
    %640 = vector.load %arg4[%c48_431, %c0_432, %c0_433] : memref<49x8x1xf32, #tpu.memory_space<vmem>>, vector<1x8x1xf32>
    %641 = vector.shape_cast %640 : vector<1x8x1xf32> to vector<8x1xf32>
    %c0_434 = arith.constant 0 : index
    %c179_435 = arith.constant 179 : index
    %642 = vector.load %arg13[%c0_434, %c179_435] : memref<8x512xf32, #tpu.memory_space<vmem>>, vector<8x256xf32>
    %643 = vector.broadcast %641 : vector<8x1xf32> to vector<8x256xf32>
    %644 = arith.mulf %643, %642 : vector<8x256xf32>
    %645 = arith.addf %639, %644 : vector<8x256xf32>
    %646 = arith.addf %634, %645 : vector<8x256xf32>
    %c6_436 = arith.constant 6 : index
    %c0_437 = arith.constant 0 : index
    %c0_438 = arith.constant 0 : index
    %647 = vector.load %arg5[%c6_436, %c0_437, %c0_438] : memref<7x1x256xf32, #tpu.memory_space<vmem>>, vector<1x1x256xf32>
    %648 = vector.shape_cast %647 : vector<1x1x256xf32> to vector<1x256xf32>
    %649 = vector.broadcast %648 : vector<1x256xf32> to vector<8x256xf32>
    %650 = arith.mulf %649, %646 : vector<8x256xf32>
    %651 = arith.addf %561, %650 : vector<8x256xf32>
    %cst_439 = arith.constant 5.000000e-01 : f32
    %652 = vector.broadcast %cst_439 : f32 to vector<8x256xf32>
    %653 = arith.mulf %652, %651 : vector<8x256xf32>
    %654 = arith.mulf %651, %651 : vector<8x256xf32>
    %655 = arith.mulf %654, %651 : vector<8x256xf32>
    %cst_440 = arith.constant 4.471500e-02 : f32
    %656 = vector.broadcast %cst_440 : f32 to vector<8x256xf32>
    %657 = arith.mulf %656, %655 : vector<8x256xf32>
    %658 = arith.addf %651, %657 : vector<8x256xf32>
    %cst_441 = arith.constant 0.797884583 : f32
    %659 = vector.broadcast %cst_441 : f32 to vector<8x256xf32>
    %660 = arith.mulf %659, %658 : vector<8x256xf32>
    %661 = math.tanh %660 : vector<8x256xf32>
    %cst_442 = arith.constant 1.000000e+00 : f32
    %662 = vector.broadcast %cst_442 : f32 to vector<8x256xf32>
    %663 = arith.addf %662, %661 : vector<8x256xf32>
    %664 = arith.mulf %653, %663 : vector<8x256xf32>
    %c0_443 = arith.constant 0 : index
    %c0_444 = arith.constant 0 : index
    %665 = vector.load %arg6[%c0_443, %c0_444] : memref<4x8xf32, #tpu.memory_space<vmem>>, vector<4x8xf32>
    %cst_445 = arith.constant dense<0.000000e+00> : vector<4x256xf32>
    %666 = tpu.matmul %665, %664, %cst_445 {dimension_numbers = #tpu.dot_dimension_numbers<[1], [0], [0], [1], [0, 0, 1, 1], [], []>} : vector<4x8xf32>, vector<8x256xf32>, vector<4x256xf32> -> vector<4x256xf32>
    %cst_446 = arith.constant 5.000000e-01 : f32
    %667 = vector.broadcast %cst_446 : f32 to vector<4x256xf32>
    %668 = arith.mulf %667, %666 : vector<4x256xf32>
    %669 = arith.mulf %666, %666 : vector<4x256xf32>
    %670 = arith.mulf %669, %666 : vector<4x256xf32>
    %cst_447 = arith.constant 4.471500e-02 : f32
    %671 = vector.broadcast %cst_447 : f32 to vector<4x256xf32>
    %672 = arith.mulf %671, %670 : vector<4x256xf32>
    %673 = arith.addf %666, %672 : vector<4x256xf32>
    %cst_448 = arith.constant 0.797884583 : f32
    %674 = vector.broadcast %cst_448 : f32 to vector<4x256xf32>
    %675 = arith.mulf %674, %673 : vector<4x256xf32>
    %676 = math.tanh %675 : vector<4x256xf32>
    %cst_449 = arith.constant 1.000000e+00 : f32
    %677 = vector.broadcast %cst_449 : f32 to vector<4x256xf32>
    %678 = arith.addf %677, %676 : vector<4x256xf32>
    %679 = arith.mulf %668, %678 : vector<4x256xf32>
    %680 = arith.addf %679, %1 : vector<4x256xf32>
    %cst_450 = arith.constant dense<0.000000e+00> : vector<256xf32>
    %681 = vector.multi_reduction <add>, %680, %cst_450 [0] : vector<4x256xf32> to vector<256xf32>
    %682 = vector.shape_cast %681 : vector<256xf32> to vector<1x256xf32>
    %cst_451 = arith.constant 4.000000e+00 : f32
    %683 = vector.broadcast %cst_451 : f32 to vector<1x256xf32>
    %684 = arith.divf %682, %683 : vector<1x256xf32>
    %685 = vector.broadcast %684 : vector<1x256xf32> to vector<4x256xf32>
    %686 = arith.subf %680, %685 : vector<4x256xf32>
    %687 = vector.broadcast %684 : vector<1x256xf32> to vector<4x256xf32>
    %688 = arith.subf %680, %687 : vector<4x256xf32>
    %689 = arith.mulf %686, %688 : vector<4x256xf32>
    %cst_452 = arith.constant dense<0.000000e+00> : vector<256xf32>
    %690 = vector.multi_reduction <add>, %689, %cst_452 [0] : vector<4x256xf32> to vector<256xf32>
    %691 = vector.shape_cast %690 : vector<256xf32> to vector<1x256xf32>
    %cst_453 = arith.constant 4.000000e+00 : f32
    %692 = vector.broadcast %cst_453 : f32 to vector<1x256xf32>
    %693 = arith.divf %691, %692 : vector<1x256xf32>
    %694 = vector.broadcast %684 : vector<1x256xf32> to vector<4x256xf32>
    %695 = arith.subf %680, %694 : vector<4x256xf32>
    %cst_454 = arith.constant 9.99999974E-6 : f32
    %696 = vector.broadcast %cst_454 : f32 to vector<1x256xf32>
    %697 = arith.addf %693, %696 : vector<1x256xf32>
    %698 = math.rsqrt %697 : vector<1x256xf32>
    %699 = vector.broadcast %698 : vector<1x256xf32> to vector<4x256xf32>
    %700 = arith.mulf %695, %699 : vector<4x256xf32>
    %c0_455 = arith.constant 0 : index
    %c0_456 = arith.constant 0 : index
    %701 = vector.load %arg7[%c0_455, %c0_456] : memref<4x1xf32, #tpu.memory_space<vmem>>, vector<4x1xf32>
    %702 = vector.broadcast %701 : vector<4x1xf32> to vector<4x256xf32>
    %703 = arith.mulf %700, %702 : vector<4x256xf32>
    %c0_457 = arith.constant 0 : index
    %c0_458 = arith.constant 0 : index
    %704 = vector.load %arg8[%c0_457, %c0_458] : memref<4x1xf32, #tpu.memory_space<vmem>>, vector<4x1xf32>
    %705 = vector.broadcast %704 : vector<4x1xf32> to vector<4x256xf32>
    %706 = arith.addf %703, %705 : vector<4x256xf32>
    %c0_459 = arith.constant 0 : index
    %c0_460 = arith.constant 0 : index
    %707 = vector.load %arg9[%c0_459, %c0_460] : memref<16x4xf32, #tpu.memory_space<vmem>>, vector<16x4xf32>
    %cst_461 = arith.constant dense<0.000000e+00> : vector<16x256xf32>
    %708 = tpu.matmul %707, %706, %cst_461 {dimension_numbers = #tpu.dot_dimension_numbers<[1], [0], [0], [1], [0, 0, 1, 1], [], []>} : vector<16x4xf32>, vector<4x256xf32>, vector<16x256xf32> -> vector<16x256xf32>
    %cst_462 = arith.constant 5.000000e-01 : f32
    %709 = vector.broadcast %cst_462 : f32 to vector<16x256xf32>
    %710 = arith.mulf %709, %708 : vector<16x256xf32>
    %711 = arith.mulf %708, %708 : vector<16x256xf32>
    %712 = arith.mulf %711, %708 : vector<16x256xf32>
    %cst_463 = arith.constant 4.471500e-02 : f32
    %713 = vector.broadcast %cst_463 : f32 to vector<16x256xf32>
    %714 = arith.mulf %713, %712 : vector<16x256xf32>
    %715 = arith.addf %708, %714 : vector<16x256xf32>
    %cst_464 = arith.constant 0.797884583 : f32
    %716 = vector.broadcast %cst_464 : f32 to vector<16x256xf32>
    %717 = arith.mulf %716, %715 : vector<16x256xf32>
    %718 = math.tanh %717 : vector<16x256xf32>
    %cst_465 = arith.constant 1.000000e+00 : f32
    %719 = vector.broadcast %cst_465 : f32 to vector<16x256xf32>
    %720 = arith.addf %719, %718 : vector<16x256xf32>
    %721 = arith.mulf %710, %720 : vector<16x256xf32>
    %c0_466 = arith.constant 0 : index
    %c0_467 = arith.constant 0 : index
    %722 = vector.load %arg10[%c0_466, %c0_467] : memref<4x16xf32, #tpu.memory_space<vmem>>, vector<4x16xf32>
    %cst_468 = arith.constant dense<0.000000e+00> : vector<4x256xf32>
    %723 = tpu.matmul %722, %721, %cst_468 {dimension_numbers = #tpu.dot_dimension_numbers<[1], [0], [0], [1], [0, 0, 1, 1], [], []>} : vector<4x16xf32>, vector<16x256xf32>, vector<4x256xf32> -> vector<4x256xf32>
    %cst_469 = arith.constant 5.000000e-01 : f32
    %724 = vector.broadcast %cst_469 : f32 to vector<4x256xf32>
    %725 = arith.mulf %724, %723 : vector<4x256xf32>
    %726 = arith.mulf %723, %723 : vector<4x256xf32>
    %727 = arith.mulf %726, %723 : vector<4x256xf32>
    %cst_470 = arith.constant 4.471500e-02 : f32
    %728 = vector.broadcast %cst_470 : f32 to vector<4x256xf32>
    %729 = arith.mulf %728, %727 : vector<4x256xf32>
    %730 = arith.addf %723, %729 : vector<4x256xf32>
    %cst_471 = arith.constant 0.797884583 : f32
    %731 = vector.broadcast %cst_471 : f32 to vector<4x256xf32>
    %732 = arith.mulf %731, %730 : vector<4x256xf32>
    %733 = math.tanh %732 : vector<4x256xf32>
    %cst_472 = arith.constant 1.000000e+00 : f32
    %734 = vector.broadcast %cst_472 : f32 to vector<4x256xf32>
    %735 = arith.addf %734, %733 : vector<4x256xf32>
    %736 = arith.mulf %725, %735 : vector<4x256xf32>
    %737 = arith.addf %736, %706 : vector<4x256xf32>
    %738 = arith.addf %737, %1 : vector<4x256xf32>
    %c0_473 = arith.constant 0 : index
    %c0_474 = arith.constant 0 : index
    %c0_475 = arith.constant 0 : index
    %739 = vector.load %arg11[%c0_473, %c0_474, %c0_475] : memref<1x4x256xf32, #tpu.memory_space<vmem>>, vector<1x4x256xf32>
    %740 = vector.shape_cast %739 : vector<1x4x256xf32> to vector<4x256xf32>
    %741 = vector.shape_cast %738 : vector<4x256xf32> to vector<1x4x256xf32>
    tpu.vector_store %arg11[%c0_473, %c0_474, %c0_475], %741 {strides = array<i32>} : memref<1x4x256xf32, #tpu.memory_space<vmem>>, vector<1x4x256xf32>,
    return
  }
  func.func @transform_0(%arg0: i32) -> (i32, i32, i32) {
    %c0_i32 = arith.constant 0 : i32
    %c0_i32_0 = arith.constant 0 : i32
    %c0_i32_1 = arith.constant 0 : i32
    return %arg0, %c0_i32, %c0_i32_0 : i32, i32, i32
  }
  func.func @transform_1(%arg0: i32) -> (i32, i32) {
    %c0_i32 = arith.constant 0 : i32
    %c0_i32_0 = arith.constant 0 : i32
    %c0_i32_1 = arith.constant 0 : i32
    return %c0_i32, %c0_i32_0 : i32, i32
  }
  func.func @transform_2(%arg0: i32) -> (i32, i32, i32) {
    %c0_i32 = arith.constant 0 : i32
    %c0_i32_0 = arith.constant 0 : i32
    %c0_i32_1 = arith.constant 0 : i32
    %c0_i32_2 = arith.constant 0 : i32
    return %c0_i32, %c0_i32_0, %c0_i32_1 : i32, i32, i32
  }
  func.func @transform_3(%arg0: i32) -> (i32, i32, i32) {
    %c0_i32 = arith.constant 0 : i32
    %c0_i32_0 = arith.constant 0 : i32
    %c0_i32_1 = arith.constant 0 : i32
    %c0_i32_2 = arith.constant 0 : i32
    return %c0_i32, %c0_i32_0, %c0_i32_1 : i32, i32, i32
  }
  func.func @transform_4(%arg0: i32) -> (i32, i32, i32) {
    %c0_i32 = arith.constant 0 : i32
    %c0_i32_0 = arith.constant 0 : i32
    %c0_i32_1 = arith.constant 0 : i32
    %c0_i32_2 = arith.constant 0 : i32
    return %c0_i32, %c0_i32_0, %c0_i32_1 : i32, i32, i32
  }
  func.func @transform_5(%arg0: i32) -> (i32, i32) {
    %c0_i32 = arith.constant 0 : i32
    %c0_i32_0 = arith.constant 0 : i32
    %c0_i32_1 = arith.constant 0 : i32
    return %c0_i32, %c0_i32_0 : i32, i32
  }
  func.func @transform_6(%arg0: i32) -> (i32, i32) {
    %c0_i32 = arith.constant 0 : i32
    %c0_i32_0 = arith.constant 0 : i32
    %c0_i32_1 = arith.constant 0 : i32
    return %c0_i32, %c0_i32_0 : i32, i32
  }
  func.func @transform_7(%arg0: i32) -> (i32, i32) {
    %c0_i32 = arith.constant 0 : i32
    %c0_i32_0 = arith.constant 0 : i32
    %c0_i32_1 = arith.constant 0 : i32
    return %c0_i32, %c0_i32_0 : i32, i32
  }
  func.func @transform_8(%arg0: i32) -> (i32, i32) {
    %c0_i32 = arith.constant 0 : i32
    %c0_i32_0 = arith.constant 0 : i32
    %c0_i32_1 = arith.constant 0 : i32
    return %c0_i32, %c0_i32_0 : i32, i32
  }
  func.func @transform_9(%arg0: i32) -> (i32, i32) {
    %c0_i32 = arith.constant 0 : i32
    %c0_i32_0 = arith.constant 0 : i32
    %c0_i32_1 = arith.constant 0 : i32
    return %c0_i32, %c0_i32_0 : i32, i32
  }
  func.func @transform_10(%arg0: i32) -> (i32, i32, i32) {
    %c0_i32 = arith.constant 0 : i32
    %c0_i32_0 = arith.constant 0 : i32
    %c0_i32_1 = arith.constant 0 : i32
    return %arg0, %c0_i32, %c0_i32_0 : i32, i32, i32
  }
}

</mosaic_0001>

<bundles_post_ra>
// kernel: inverted_block.1
= control target key start
LH: loop header
LB: loop body
LE: loop exit
PB: predicated region body
PF: predicated region fallthrough
CT: control target
= control target key end

     0   :  { %s3260_s13 = smov 0   ;;  %s4984_s0 = inlined_call_operand.vmem [shape: f32[2,4,256], index: 0, kind: input, shape index: {}]   ;;  %s4985_s1 = inlined_call_operand.vmem [shape: f32[8,4], index: 1, kind: input, shape index: {}]   ;;  %s4986_s2 = inlined_call_operand.vmem [shape: f32[49,8,1], index: 2, kind: input, shape index: {}]   ;;  %s4987_s3 = inlined_call_operand.vmem [shape: f32[49,8,1], index: 3, kind: input, shape index: {}]   ;;  %s4988_s4 = inlined_call_operand.vmem [shape: f32[7,1,256], index: 4, kind: input, shape index: {}]   ;;  %s4989_s5 = inlined_call_operand.vmem [shape: f32[4,8], index: 5, kind: input, shape index: {}]   ;;  %s4990_s6 = inlined_call_operand.vmem [shape: f32[4,1], index: 6, kind: input, shape index: {}]   ;;  %s4991_s7 = inlined_call_operand.vmem [shape: f32[4,1], index: 7, kind: input, shape index: {}]   ;;  %s4992_s8 = inlined_call_operand.vmem [shape: f32[16,4], index: 8, kind: input, shape index: {}]   ;;  %s4993_s9 = inlined_call_operand.vmem [shape: f32[4,16], index: 9, kind: input, shape index: {}]   ;;  %s4994_s10 = inlined_call_operand.vmem [shape: f32[2,4,256], index: 10, kind: output, shape index: {}]  }
   0x1 LB: > { %s3002_s14 = sadd.s32 4294967295, %s3189_s13   ;;  %p3006_p0 = scmp.ge.s32.totalorder %s3189_s13, 1  ;;  %s3189_s13 = sphi %s3260_s13, %s20_s13  }
   0x2   : > { %p312_p1 = scmp.lt.s32.totalorder %s3189_s13, 3 }
   0x4   : > { %p313_p2 = pnand %p3006_p0, %p312_p1 }
   0x6   : > { %316 = sbr.rel (%p313_p2) target bundleno = 1556 (0x614), region = 60 }
   0xd   : > { %v3028_v0 = vld [vmem:[%s4986_s2 + $0x40] sm:$0xff]  ;;  %v3014_v1 = vld [vmem:[%s4986_s2 + $0x38] sm:$0xff]  ;;  %p350_p3 = scmp.lt.s32.totalorder %s3002_s14, 1  ;;  %v3191_v2 = vmov 0   ;;  %v4995_v5 = vmov 0.0   ;;  %vm372_vm0 = vcmask 1043456  }
   0xe   : > { %3152 = vset.pattern.permute.xlu1 %v3191_v2  ;;  %3151 = vset.pattern.permute.xlu0 %v3191_v2  ;;  %v3029_v3 = vld [vmem:[%s4987_s3 + $0x40] sm:$0xff]  ;;  %v3015_v4 = vld [vmem:[%s4987_s3 + $0x38] sm:$0xff]  ;;  %v3017_v8 = vld [vmem:[%s4987_s3 + $0x70] sm:$0xff]  ;;  %vm368_vm1 = vcmask 31744   ;;  %s3193_s24 = smov 112   ;;  %s3194_s25 = smov 96  }
   0xf   : > { %814 = vperm.xlu1 %3152, %v3028_v0   ;;  %506 = vperm.xlu0 %3151, %v3014_v1   ;;  %s5236_s14 = smov (!%p350_p3, %s3002_s14), 1  ;;  %v3016_v9 = vld [vmem:[%s4986_s2 + $0x70] sm:$0xff]  ;;  %v365_v10 = vld [vmem:[%s4985_s1] sm:$0xff]  ;;  %v3031_v11 = vld [vmem:[%s4987_s3 + $0x78] sm:$0xff]  ;;  %s3195_s27 = smov 80   ;;  %vm575_vm2 = vcmask 785408  }
  0x10   : > { %441 = vmatprep.mubr.f32.mxu0 %v4995_v5  ;;  %2630 = vmatprep.mubr.f32.mxu1 %v4995_v5  ;;  %s3123_s23 = sshll.u32 %s5236_s14, 3  ;;  %v3030_v12 = vld [vmem:[%s4986_s2 + $0x78] sm:$0xff]  ;;  %v3044_v13 = vld [vmem:[%s4987_s3 + $0x48] sm:$0xff]  ;;  %v3033_v17 = vld [vmem:[%s4987_s3 + $0xb0] sm:$0xff]  ;;  %s3196_s28 = smov 64   ;;  %vm534_vm3 = vcmask 916480  }
  0x11   : > { %s3290_s26 = scalar_lea.vmem %s4984_s0, %s3123_s23  ;;  %v3043_v14 = vld [vmem:[%s4986_s2 + $0x48] sm:$0xff]  ;;  %v3032_v18 = vld [vmem:[%s4986_s2 + $0xb0] sm:$0xff]  ;;  %v3046_v19 = vld [vmem:[%s4987_s3 + $0x80] sm:$0xff]  ;;  %s3197_s29 = smov 48   ;;  %vm616_vm4 = vcmask 654336   ;;  %vm663_vm5 = vcmask 523264  }
  0x12   : > { %v360_v6 = vld [vmem:[%s3290_s26] sm:$0xff]  ;;  %v3019_v15 = vld [vmem:[%s4987_s3 + $0xa8] sm:$0xff]  ;;  %v3048_v25 = vld [vmem:[%s4987_s3 + $0xb8] sm:$0xff]  ;;  %s3198_s30 = smov 32   ;;  %vm704_vm6 = vcmask 392192   ;;  %vm745_vm7 = vcmask 261120  }
  0x13   : > { %824 = vperm.xlu1 %3152, %v3029_v3   ;;  %516 = vperm.xlu0 %3151, %v3015_v4   ;;  %v3293_v7 = vcombine.high %v360_v6, %v360_v6  ;;  %v3018_v16 = vld [vmem:[%s4986_s2 + $0xa8] sm:$0xff]  ;;  %v3045_v20 = vld [vmem:[%s4986_s2 + $0x80] sm:$0xff]  ;;  %v3047_v26 = vld [vmem:[%s4986_s2 + $0xb8] sm:$0xff]  ;;  %s3199_s11 = smov 51   ;;  %s3200_s12 = smov 50   ;;  %vm1072_vm8 = vcmask 408576  }
  0x14   : > { %v3021_v21 = vld [vmem:[%s4987_s3 + $0xe0] sm:$0xff]  ;;  %v3035_v23 = vld [vmem:[%s4987_s3 + $0xe8] sm:$0xff]  ;;  %v3059_v27 = vld [vmem:[%s4987_s3 + $0x50] sm:$0xff]  ;;  %s3201_s15 = smov 49   ;;  %s3202_s16 = smov 47   ;;  %vm775_vm9 = vcmask 416768  }
  0x15   : > { %5066 = vst [vmem:[#allocation4_spill] sm:$0xff] %v3293_v7  ;;  %3011 = vmatprep.subr.msk.mxu0 %vm372_vm0, %v3293_v7  ;;  %v3020_v22 = vld [vmem:[%s4986_s2 + $0xe0] sm:$0xff]  ;;  %v3034_v24 = vld [vmem:[%s4986_s2 + $0xe8] sm:$0xff]  ;;  %v3058_v28 = vld [vmem:[%s4986_s2 + $0x50] sm:$0xff]  ;;  %s3203_s17 = smov 46   ;;  %s3204_s18 = smov 45  }
  0x16   : > { %3012 = vmatpush1.msk.msra.mxu0 %vm372_vm0, %v360_v6  ;;  %v3073_v29 = vld [vmem:[%s4987_s3 + $0x58] sm:$0xff]  ;;  %v3037_v33 = vld [vmem:[%s4987_s3 + $0x120] sm:$0xff]  ;;  %v3050_v35 = vld [vmem:[%s4987_s3 + $0xf0] sm:$0xff]  ;;  %vm1369_vm10 = vcmask 400384   ;;  %vm1940_vm11 = vcmask 384000   ;;  %vm2237_vm12 = vcmask 375808  }
  0x17   : > { %557 = vperm.xlu1 %3152, %v3017_v8   ;;  %547 = vperm.xlu0 %3151, %v3016_v9   ;;  %v3072_v30 = vld [vmem:[%s4986_s2 + $0x58] sm:$0xff]  ;;  %v3036_v34 = vld [vmem:[%s4986_s2 + $0x120] sm:$0xff]  ;;  %v3049_v36 = vld [vmem:[%s4986_s2 + $0xf0] sm:$0xff]  ;;  %vm2534_vm13 = vcmask 367616   ;;  %vm2562_vm14 = vcmask 64512   ;;  %vm2845_vm15 = vcmask 130048  }
  0x18   : > { %3013 = vmatmul.mubr.msk.f32.vlgmr.msra.gmra.mrb[0].mxu0 %vm368_vm1, %v365_v10  ;;  %v3023_v31 = vld [vmem:[%s4987_s3 + $0x118] sm:$0xff]  ;;  %v3061_v37 = vld [vmem:[%s4987_s3 + $0x88] sm:$0xff]  ;;  %v3075_v39 = vld [vmem:[%s4987_s3 + $0x90] sm:$0xff] }
  0x19   : > { %2795 = vmatprep.mubr.f32.mxu0 %v4995_v5  ;;  %v3022_v32 = vld [vmem:[%s4986_s2 + $0x118] sm:$0xff]  ;;  %v3060_v38 = vld [vmem:[%s4986_s2 + $0x88] sm:$0xff]  ;;  %v3074_v40 = vld [vmem:[%s4986_s2 + $0x90] sm:$0xff] }
  0x1a   : > { %v3088_v41 = vld [vmem:[%s4987_s3 + $0x60] sm:$0xff]  ;;  %v3025_v43 = vld [vmem:[%s4987_s3 + $0x150] sm:$0xff]  ;;  %v3039_v45 = vld [vmem:[%s4987_s3 + $0x158] sm:$0xff] }
  0x1b   : > { %864 = vperm.xlu1 %3152, %v3031_v11   ;;  %854 = vperm.xlu0 %3151, %v3030_v12   ;;  %v3087_v42 = vld [vmem:[%s4986_s2 + $0x60] sm:$0xff]  ;;  %v3024_v44 = vld [vmem:[%s4986_s2 + $0x150] sm:$0xff]  ;;  %v3038_v46 = vld [vmem:[%s4986_s2 + $0x158] sm:$0xff] }
  0x1c   : > { %v3052_v47 = vld [vmem:[%s4987_s3 + $0x128] sm:$0xff]  ;;  %v3063_v49 = vld [vmem:[%s4987_s3 + $0xc0] sm:$0xff]  ;;  %v3090_v53 = vld [vmem:[%s4987_s3 + $0x98] sm:$0xff] }
  0x1d   : > { %v3051_v48 = vld [vmem:[%s4986_s2 + $0x128] sm:$0xff]  ;;  %v3062_v50 = vld [vmem:[%s4986_s2 + $0xc0] sm:$0xff]  ;;  %v3089_v54 = vld [vmem:[%s4986_s2 + $0x98] sm:$0xff] }
  0x1e   : > { %v3077_v51 = vld [vmem:[%s4987_s3 + $0xc8] sm:$0xff]  ;;  %v3054_v57 = vld [vmem:[%s4987_s3 + $0x160] sm:$0xff]  ;;  %v3065_v59 = vld [vmem:[%s4987_s3 + $0xf8] sm:$0xff] }
  0x1f   : > { %1121 = vperm.xlu1 %3152, %v3044_v13   ;;  %1111 = vperm.xlu0 %3151, %v3043_v14   ;;  %v3076_v52 = vld [vmem:[%s4986_s2 + $0xc8] sm:$0xff]  ;;  %v3053_v58 = vld [vmem:[%s4986_s2 + $0x160] sm:$0xff]  ;;  %v3064_v60 = vld [vmem:[%s4986_s2 + $0xf8] sm:$0xff] }
  0x20   : > { %v3103_v55 = vld [vmem:[%s4987_s3 + $0x68] sm:$0xff]  ;;  %v3079_v61 = vld [vmem:[%s4987_s3 + $0x100] sm:$0xff]  ;;  %v3092_v63 = vld [vmem:[%s4987_s3 + $0xd0] sm:$0xff] }
  0x21   : > { %v3102_v56 = vld [vmem:[%s4986_s2 + $0x68] sm:$0xff]  ;;  %v3078_v62 = vld [vmem:[%s4986_s2 + $0x100] sm:$0xff]  ;;  %v3091_v0 = vld [vmem:[%s4986_s2 + $0xd0] sm:$0xff] }
  0x22   : > { %v3105_v1 = vld [vmem:[%s4987_s3 + $0xa0] sm:$0xff]  ;;  %v3067_v3 = vld [vmem:[%s4987_s3 + $0x130] sm:$0xff]  ;;  %v3081_v6 = vld [vmem:[%s4987_s3 + $0x138] sm:$0xff] }
  0x23   : > { %598 = vperm.xlu1 %3152, %v3019_v15   ;;  %588 = vperm.xlu0 %3151, %v3018_v16   ;;  %v3104_v2 = vld [vmem:[%s4986_s2 + $0xa0] sm:$0xff]  ;;  %v3066_v4 = vld [vmem:[%s4986_s2 + $0x130] sm:$0xff]  ;;  %v3080_v8 = vld [vmem:[%s4986_s2 + $0x138] sm:$0xff] }
  0x24   : > { %v3094_v11 = vld [vmem:[%s4987_s3 + $0x108] sm:$0xff]  ;;  %v3107_v15 = vld [vmem:[%s4987_s3 + $0xd8] sm:$0xff] }
  0x25   : > { %v3093_v12 = vld [vmem:[%s4986_s2 + $0x108] sm:$0xff]  ;;  %v3106_v16 = vld [vmem:[%s4986_s2 + $0xd8] sm:$0xff] }
  0x27   : > { %904 = vperm.xlu1 %3152, %v3033_v17   ;;  %894 = vperm.xlu0 %3151, %v3032_v18  }
  0x2b   : > { %1161 = vperm.xlu1 %3152, %v3046_v19   ;;  %1151 = vperm.xlu0 %3151, %v3045_v20   ;;  %v3069_v19 = vld [vmem:[%s4987_s3 + $0x168] sm:$0xff] }
  0x2c   : > { %v3068_v20 = vld [vmem:[%s4986_s2 + $0x168] sm:$0xff] }
  0x2f   : > { %645 = vperm.xlu1 %3152, %v3021_v21   ;;  %632 = vperm.xlu0 %3151, %v3020_v22  }
  0x33   : > { %944 = vperm.xlu1 %3152, %v3035_v23   ;;  %934 = vperm.xlu0 %3151, %v3034_v24   ;;  %v3083_v23 = vld [vmem:[%s4987_s3 + $0x170] sm:$0xff] }
  0x34   : > { %v3082_v24 = vld [vmem:[%s4986_s2 + $0x170] sm:$0xff] }
  0x37   : > { %1201 = vperm.xlu1 %3152, %v3048_v25   ;;  %1191 = vperm.xlu0 %3151, %v3047_v26  }
  0x3b   : > { %1418 = vperm.xlu1 %3152, %v3059_v27   ;;  %1408 = vperm.xlu0 %3151, %v3058_v28   ;;  %v3096_v27 = vld [vmem:[%s4987_s3 + $0x140] sm:$0xff] }
  0x3c   : > { %v3095_v28 = vld [vmem:[%s4986_s2 + $0x140] sm:$0xff] }
  0x3f   : > { %1692 = vperm.xlu1 %3152, %v3073_v29   ;;  %1682 = vperm.xlu0 %3151, %v3072_v30  }
  0x43   : > { %686 = vperm.xlu1 %3152, %v3023_v31   ;;  %676 = vperm.xlu0 %3151, %v3022_v32   ;;  %v3109_v31 = vld [vmem:[%s4987_s3 + $0x110] sm:$0xff] }
  0x44   : > { %v3108_v32 = vld [vmem:[%s4986_s2 + $0x110] sm:$0xff] }
  0x47   : > { %984 = vperm.xlu1 %3152, %v3037_v33   ;;  %974 = vperm.xlu0 %3151, %v3036_v34  }
  0x4b   : > { %1241 = vperm.xlu1 %3152, %v3050_v35   ;;  %1231 = vperm.xlu0 %3151, %v3049_v36   ;;  %v3098_v35 = vld [vmem:[%s4987_s3 + $0x178] sm:$0xff] }
  0x4c   : > { %v3097_v36 = vld [vmem:[%s4986_s2 + $0x178] sm:$0xff] }
  0x4f   : > { %1458 = vperm.xlu1 %3152, %v3061_v37   ;;  %1448 = vperm.xlu0 %3151, %v3060_v38  }
  0x53   : > { %1732 = vperm.xlu1 %3152, %v3075_v39   ;;  %1722 = vperm.xlu0 %3151, %v3074_v40   ;;  %v3111_v39 = vld [vmem:[%s4987_s3 + $0x148] sm:$0xff] }
  0x54   : > { %v3110_v40 = vld [vmem:[%s4986_s2 + $0x148] sm:$0xff] }
  0x57   : > { %1989 = vperm.xlu1 %3152, %v3088_v41   ;;  %1979 = vperm.xlu0 %3151, %v3087_v42  }
  0x5b   : > { %727 = vperm.xlu1 %3152, %v3025_v43   ;;  %717 = vperm.xlu0 %3151, %v3024_v44   ;;  %v3113_v43 = vld [vmem:[%s4987_s3 + $0x180] sm:$0xff] }
  0x5c   : > { %v3112_v44 = vld [vmem:[%s4986_s2 + $0x180] sm:$0xff] }
  0x5f   : > { %1024 = vperm.xlu1 %3152, %v3039_v45   ;;  %1014 = vperm.xlu0 %3151, %v3038_v46  }
  0x63   : > { %1281 = vperm.xlu1 %3152, %v3052_v47   ;;  %1271 = vperm.xlu0 %3151, %v3051_v48   ;;  %v484_v47 = vld [vmem:[%s4987_s3] sm:$0xff] }
  0x64   : > { %v472_v48 = vld [vmem:[%s4986_s2] sm:$0xff] }
  0x67   : > { %1497 = vperm.xlu1 %3152, %v3063_v49   ;;  %1488 = vperm.xlu0 %3151, %v3062_v50  }
  0x6b   : > { %1772 = vperm.xlu1 %3152, %v3077_v51   ;;  %1762 = vperm.xlu0 %3151, %v3076_v52   ;;  %v3027_v51 = vld [vmem:[%s4987_s3 + $0x8] sm:$0xff] }
  0x6c   : > { %v3026_v52 = vld [vmem:[%s4986_s2 + $0x8] sm:$0xff] }
  0x6f   : > { %2029 = vperm.xlu1 %3152, %v3090_v53   ;;  %2019 = vperm.xlu0 %3151, %v3089_v54  }
  0x73   : > { %2286 = vperm.xlu1 %3152, %v3103_v55   ;;  %2276 = vperm.xlu0 %3151, %v3102_v56   ;;  %v3042_v55 = vld [vmem:[%s4987_s3 + $0x10] sm:$0xff] }
  0x74   : > { %v3041_v56 = vld [vmem:[%s4986_s2 + $0x10] sm:$0xff] }
  0x77   : > { %1321 = vperm.xlu1 %3152, %v3054_v57   ;;  %1311 = vperm.xlu0 %3151, %v3053_v58  }
  0x7b   : > { %1531 = vperm.xlu1 %3152, %v3065_v59   ;;  %1521 = vperm.xlu0 %3151, %v3064_v60   ;;  %v3057_v59 = vld [vmem:[%s4987_s3 + $0x18] sm:$0xff] }
  0x7c   : > { %v3056_v60 = vld [vmem:[%s4986_s2 + $0x18] sm:$0xff] }
  0x7f   : > { %1812 = vperm.xlu1 %3152, %v3079_v61   ;;  %1802 = vperm.xlu0 %3151, %v3078_v62  }
  0x83   : > { %2069 = vperm.xlu1 %3152, %v3092_v63   ;;  %2059 = vperm.xlu0 %3151, %v3091_v0   ;;  %v3071_v63 = vld [vmem:[%s4987_s3 + $0x20] sm:$0xff] }
  0x84   : > { %v3070_v0 = vld [vmem:[%s4986_s2 + $0x20] sm:$0xff] }
  0x87   : > { %2326 = vperm.xlu1 %3152, %v3105_v1   ;;  %2316 = vperm.xlu0 %3151, %v3104_v2  }
  0x8b   : > { %1571 = vperm.xlu1 %3152, %v3067_v3   ;;  %1561 = vperm.xlu0 %3151, %v3066_v4   ;;  %v3086_v3 = vld [vmem:[%s4987_s3 + $0x28] sm:$0xff] }
  0x8c   : > { %v3085_v4 = vld [vmem:[%s4986_s2 + $0x28] sm:$0xff] }
  0x8e   : > { %v3489_v9 = vpop.permute.xlu1 %814  ;;  %v3491_v10 = vpop.permute.xlu0 %506 }
  0x8f   : > { %1852 = vperm.xlu1 %3152, %v3081_v6   ;;  %1842 = vperm.xlu0 %3151, %v3080_v8  }
  0x92   : > { %v3499_v13 = vpop.permute.xlu1 %824  ;;  %v3501_v14 = vpop.permute.xlu0 %516 }
  0x93   : > { %2109 = vperm.xlu1 %3152, %v3094_v11   ;;  %2099 = vperm.xlu0 %3151, %v3093_v12   ;;  %v3101_v11 = vld [vmem:[%s4987_s3 + $0x30] sm:$0xff] }
  0x94   : > { %v3100_v12 = vld [vmem:[%s4986_s2 + $0x30] sm:$0xff] }
  0x96   : > { %v3509_v17 = vpop.permute.xlu1 %557  ;;  %v3511_v18 = vpop.permute.xlu0 %547 }
  0x97   : > { %2366 = vperm.xlu1 %3152, %v3107_v15   ;;  %2356 = vperm.xlu0 %3151, %v3106_v16   ;;  %v817_v15 = vmul.f32 0.0, %v3489_v9  ;;  %v509_v16 = vmul.f32 0.0, %v3491_v10 }
  0x9a   : > { %v3519_v21 = vpop.permute.xlu1 %864  ;;  %v3521_v22 = vpop.permute.xlu0 %854 }
  0x9b   : > { %1611 = vperm.xlu1 %3152, %v3069_v19   ;;  %1601 = vperm.xlu0 %3151, %v3068_v20   ;;  %v827_v19 = vmul.f32 0.0, %v3499_v13  ;;  %v519_v20 = vmul.f32 0.0, %v3501_v14 }
  0x9e   : > { %v3529_v25 = vpop.permute.xlu1 %1121  ;;  %v3531_v26 = vpop.permute.xlu0 %1111 }
  0x9f   : > { %1892 = vperm.xlu1 %3152, %v3083_v23   ;;  %1882 = vperm.xlu0 %3151, %v3082_v24  }
  0xa2   : > { %v3539_v29 = vpop.permute.xlu1 %598  ;;  %v3541_v30 = vpop.permute.xlu0 %588 }
  0xa3   : > { %2149 = vperm.xlu1 %3152, %v3096_v27   ;;  %2139 = vperm.xlu0 %3151, %v3095_v28   ;;  %v560_v27 = vmul.f32 0.0, %v3509_v17  ;;  %v550_v28 = vmul.f32 0.0, %v3511_v18 }
  0xa6   : > { %v3549_v33 = vpop.permute.xlu1 %904  ;;  %v3551_v34 = vpop.permute.xlu0 %894 }
  0xa7   : > { %2406 = vperm.xlu1 %3152, %v3109_v31   ;;  %2396 = vperm.xlu0 %3151, %v3108_v32   ;;  %v867_v31 = vmul.f32 0.0, %v3519_v21  ;;  %v857_v32 = vmul.f32 0.0, %v3521_v22 }
  0xaa   : > { %v3559_v37 = vpop.permute.xlu1 %1161  ;;  %v3561_v38 = vpop.permute.xlu0 %1151 }
  0xab   : > { %2189 = vperm.xlu1 %3152, %v3098_v35   ;;  %2179 = vperm.xlu0 %3151, %v3097_v36   ;;  %v830_v35 = vadd.f32 %v827_v19, %v817_v15  ;;  %v522_v36 = vadd.f32 %v519_v20, %v509_v16 }
  0xae   : > { %v3569_v41 = vpop.permute.xlu1 %645  ;;  %v3571_v42 = vpop.permute.xlu0 %632 }
  0xaf   : > { %2446 = vperm.xlu1 %3152, %v3111_v39   ;;  %2436 = vperm.xlu0 %3151, %v3110_v40   ;;  %v650_v19 = vmul.f32 0.0, %v3569_v41  ;;  %v637_v20 = vmul.f32 0.0, %v3571_v42 }
  0xb2   : > { %v3579_v45 = vpop.permute.xlu1 %944  ;;  %v3581_v46 = vpop.permute.xlu0 %934 }
  0xb3   : > { %2486 = vperm.xlu1 %3152, %v3113_v43   ;;  %2476 = vperm.xlu0 %3151, %v3112_v44   ;;  %v870_v43 = vadd.f32 %v867_v31, %v857_v32  ;;  %v563_v44 = vadd.f32 %v560_v27, %v550_v28  ;;  %v949_v27 = vmul.f32 0.0, %v3579_v45  ;;  %v939_v28 = vmul.f32 0.0, %v3581_v46 }
  0xb6   : > { %v3589_v49 = vpop.permute.xlu1 %1201  ;;  %v3591_v50 = vpop.permute.xlu0 %1191 }
  0xb7   : > { %490 = vperm.xlu1 %3152, %v484_v47   ;;  %478 = vperm.xlu0 %3151, %v472_v48   ;;  %v1124_v47 = vmul.f32 0.0, %v3529_v25  ;;  %v1114_v48 = vmul.f32 0.0, %v3531_v26 }
  0xba   : > { %v3599_v53 = vpop.permute.xlu1 %1418  ;;  %v3601_v54 = vpop.permute.xlu0 %1408 }
  0xbb   : > { %798 = vperm.xlu1 %3152, %v3027_v51   ;;  %788 = vperm.xlu0 %3151, %v3026_v52   ;;  %v601_v51 = vmul.f32 0.0, %v3539_v29  ;;  %v591_v52 = vmul.f32 0.0, %v3541_v30 }
  0xbe   : > { %v3609_v57 = vpop.permute.xlu1 %1692  ;;  %v3611_v58 = vpop.permute.xlu0 %1682 }
  0xbf   : > { %1095 = vperm.xlu1 %3152, %v3042_v55   ;;  %1085 = vperm.xlu0 %3151, %v3041_v56  }
  0xc2   : > { %v3619_v61 = vpop.permute.xlu1 %686  ;;  %v3621_v62 = vpop.permute.xlu0 %676 }
  0xc3   : > { %1392 = vperm.xlu1 %3152, %v3057_v59   ;;  %1382 = vperm.xlu0 %3151, %v3056_v60   ;;  %v907_v59 = vmul.f32 0.0, %v3549_v33  ;;  %v897_v60 = vmul.f32 0.0, %v3551_v34 }
  0xc5   : > { %v910_v16 = vadd.f32 %v907_v59, %v897_v60 }
  0xc6   : > { %v3629_v1 = vpop.permute.xlu1 %984  ;;  %v3631_v2 = vpop.permute.xlu0 %974 }
  0xc7   : > { %1666 = vperm.xlu1 %3152, %v3071_v63   ;;  %1656 = vperm.xlu0 %3151, %v3070_v0   ;;  %v1164_v63 = vmul.f32 0.0, %v3559_v37  ;;  %v1154_v0 = vmul.f32 0.0, %v3561_v38 }
  0xc9   : > { %v1167_v15 = vadd.f32 %v1164_v63, %v1154_v0 }
  0xca   : > { %v3639_v6 = vpop.permute.xlu1 %1241  ;;  %v3641_v8 = vpop.permute.xlu0 %1231 }
  0xcb   : > { %1963 = vperm.xlu1 %3152, %v3086_v3   ;;  %1953 = vperm.xlu0 %3151, %v3085_v4   ;;  %v604_v3 = vadd.f32 %v601_v51, %v591_v52  ;;  %v1127_v4 = vadd.f32 %v1124_v47, %v1114_v48 }
  0xce   : > { %v3653_v23 = vpop.permute.xlu1 %1458  ;;  %v3655_v24 = vpop.permute.xlu0 %1448 }
  0xcf   : > { %2260 = vperm.xlu1 %3152, %v3101_v11   ;;  %2250 = vperm.xlu0 %3151, %v3100_v12  }
  0xd2   : > { %v3661_v39 = vpop.permute.xlu1 %1732  ;;  %v3663_v40 = vpop.permute.xlu0 %1722 }
  0xd3   : > { %836 = vrot.lane.b32.xlu1 %v830_v35, %s3193_s24  ;;  %528 = vrot.lane.b32.xlu0 %v522_v36, %s3193_s24  ;;  %v952_v35 = vadd.f32 %v949_v27, %v939_v28  ;;  %v653_v36 = vadd.f32 %v650_v19, %v637_v20 }
  0xd6   : > { %v3671_v55 = vpop.permute.xlu1 %1989  ;;  %v3673_v56 = vpop.permute.xlu0 %1979 }
  0xd7   : > { %876 = vrot.lane.b32.xlu1 %v870_v43, %s3194_s25  ;;  %569 = vrot.lane.b32.xlu0 %v563_v44, %s3194_s25 }
  0xda   : > { %v3681_v11 = vpop.permute.xlu1 %727  ;;  %v3683_v12 = vpop.permute.xlu0 %717 }
  0xdb   : > { %610 = vrot.lane.b32.xlu1 %v604_v3, %s3195_s27  ;;  %1133 = vrot.lane.b32.xlu0 %v1127_v4, %s3193_s24 }
  0xde   : > { %v3691_v31 = vpop.permute.xlu1 %1024  ;;  %v3693_v32 = vpop.permute.xlu0 %1014 }
  0xdf   : > { %1173 = vrot.lane.b32.xlu1 %v1167_v15, %s3194_s25  ;;  %916 = vrot.lane.b32.xlu0 %v910_v16, %s3195_s27 }
  0xe2   : > { %v3697_v43 = vpop.permute.xlu1 %1281  ;;  %v3699_v44 = vpop.permute.xlu0 %1271 }
  0xe3   : > { %960 = vrot.lane.b32.xlu1 %v952_v35, %s3196_s28  ;;  %661 = vrot.lane.b32.xlu0 %v653_v36, %s3196_s28 }
  0xe6   : > { %v3703_v47 = vpop.permute.xlu1 %1497  ;;  %v3705_v48 = vpop.permute.xlu0 %1488 }
  0xea   : > { %v3707_v51 = vpop.permute.xlu1 %1772  ;;  %v3709_v52 = vpop.permute.xlu0 %1762 }
  0xeb   : > { %5067 = vst [vmem:[#allocation5_spill] sm:$0xff] %v3707_v51  ;;  %5068 = vst [vmem:[#allocation6_spill] sm:$0xff] %v3709_v52  ;;  %v443_v59 = vpop.f32.mrb[0].mxu0 }
  0xec   : > { %v445_v60 = vpop.f32.mrb[1].mxu0  ;;  %v450_v19 = vmul.f32 %v443_v59, %v443_v59 }
  0xee   : > { %v3711_v63 = vpop.permute.xlu1 %2029  ;;  %v3713_v0 = vpop.permute.xlu0 %2019  ;;  %v452_v20 = vmul.f32 %v450_v19, %v443_v59 }
  0xef   : > { %5069 = vst [vmem:[#allocation7_spill] sm:$0xff] %v3711_v63  ;;  %5070 = vst [vmem:[#allocation8_spill] sm:$0xff] %v3713_v0  ;;  %v451_v0 = vmul.f32 %v445_v60, %v445_v60 }
  0xf0   : > { %v454_v35 = vmul.f32 0.044715, %v452_v20 }
  0xf2   : > { %v3715_v3 = vpop.permute.xlu1 %2286  ;;  %v3717_v4 = vpop.permute.xlu0 %2276  ;;  %v456_v7 = vadd.f32 %v454_v35, %v443_v59 }
  0xf3   : > { %5071 = vst [vmem:[#allocation9_spill] sm:$0xff] %v3715_v3  ;;  %5072 = vst [vmem:[#allocation10_spill] sm:$0xff] %v3717_v4 }
  0xf4   : > { %v458_v3 = vmul.f32 0.7978846, %v456_v7  ;;  %v448_v7 = vmul.f32 0.5, %v443_v59 }
  0xf6   : > { %v3719_v15 = vpop.permute.xlu1 %1321  ;;  %v3721_v16 = vpop.permute.xlu0 %1311  ;;  %3154 = vtanh.f32 %v458_v3 }
  0xf7   : > { %5073 = vst [vmem:[#allocation11_spill] sm:$0xff] %v3719_v15  ;;  %5074 = vst [vmem:[#allocation12_spill] sm:$0xff] %v3721_v16  ;;  %v453_v15 = vmul.f32 %v451_v0, %v445_v60 }
  0xf9   : > { %v455_v16 = vmul.f32 0.044715, %v453_v15 }
  0xfa   : > { %v3723_v27 = vpop.permute.xlu1 %1531  ;;  %v3725_v28 = vpop.permute.xlu0 %1521 }
  0xfb   : > { %5075 = vst [vmem:[#allocation13_spill] sm:$0xff] %v3723_v27  ;;  %5076 = vst [vmem:[#allocation14_spill] sm:$0xff] %v3725_v28  ;;  %v457_v28 = vadd.f32 %v455_v16, %v445_v60 }
  0xfd   : > { %v459_v35 = vmul.f32 0.7978846, %v457_v28 }
  0xfe   : > { %v3727_v36 = vpop.permute.xlu1 %1812  ;;  %v3729_v5 = vpop.permute.xlu0 %1802 }
  0xff   : > { %5077 = vst [vmem:[#allocation15_spill] sm:$0xff] %v3727_v36  ;;  %5078 = vst [vmem:[#allocation16_spill] sm:$0xff] %v3729_v5  ;;  %3156 = vtanh.f32 %v459_v35 }
 0x100   : > { %v3155_v5 = vpop.eup %3154 }
 0x101   : > { %v462_v52 = vadd.f32 1.0, %v3155_v5 }
 0x102   : > { %v3731_v63 = vpop.permute.xlu1 %2069  ;;  %v3733_v4 = vpop.permute.xlu0 %2059 }
 0x103   : > { %5079 = vst [vmem:[#allocation17_spill] sm:$0xff] %v3731_v63  ;;  %5080 = vst [vmem:[#allocation18_spill] sm:$0xff] %v3733_v4  ;;  %v3747_v0 = vmul.f32 %v462_v52, %v448_v7 }
 0x105   : > { %5087 = vst [vmem:[#allocation25_spill] sm:$0xff] %v3747_v0  ;;  %v3750_v3 = vrot.slane %v3747_v0, 4  ;;  %v510_v59 = vmul.f32 %v3491_v10, %v3747_v0  ;;  %v592_v52 = vmul.f32 %v3541_v30, %v3747_v0  ;;  %v898_v51 = vmul.f32 %v3551_v34, %v3747_v0 }
 0x106   : > { %v3735_v19 = vpop.permute.xlu1 %2326  ;;  %v3737_v27 = vpop.permute.xlu0 %2316 }
 0x107   : > { %5081 = vst [vmem:[#allocation19_spill] sm:$0xff] %v3735_v19  ;;  %5082 = vst [vmem:[#allocation20_spill] sm:$0xff] %v3737_v27  ;;  %v520_v28 = vmul.f32 %v3501_v14, %v3750_v3  ;;  %v602_v5 = vmul.f32 %v3539_v29, %v3750_v3  ;;  %v449_v27 = vmul.f32 0.5, %v445_v60  ;;  %v818_v19 = vmul.f32 %v3489_v9, %v3747_v0 }
 0x108   : > { %5088 = vst [vmem:[#allocation26_spill] sm:$0xff] %v3750_v3 }
 0x10a   : > { %v3739_v20 = vpop.permute.xlu1 %1571  ;;  %v3741_v36 = vpop.permute.xlu0 %1561 }
 0x10b   : > { %5083 = vst [vmem:[#allocation21_spill] sm:$0xff] %v3739_v20  ;;  %5084 = vst [vmem:[#allocation22_spill] sm:$0xff] %v3741_v36  ;;  %v3157_v20 = vpop.eup %3156  ;;  %v523_v36 = vadd.f32 %v520_v28, %v510_v59 }
 0x10d   : > { %530 = vrot.lane.b32.xlu0 %v523_v36, %s3193_s24 }
 0x10e   : > { %v3743_v63 = vpop.permute.xlu1 %1852  ;;  %v3745_v4 = vpop.permute.xlu0 %1842 }
 0x10f   : > { %5085 = vst [vmem:[#allocation23_spill] sm:$0xff] %v3743_v63  ;;  %5086 = vst [vmem:[#allocation24_spill] sm:$0xff] %v3745_v4  ;;  %v908_v4 = vmul.f32 %v3549_v33, %v3750_v3  ;;  %v605_v63 = vadd.f32 %v602_v5, %v592_v52  ;;  %v1165_v5 = vmul.f32 %v3559_v37, %v3750_v3 }
 0x111   : > { %612 = vrot.lane.b32.xlu1 %v605_v63, %s3195_s27  ;;  %v911_v28 = vadd.f32 %v908_v4, %v898_v51  ;;  %v1155_v63 = vmul.f32 %v3561_v38, %v3747_v0  ;;  %v868_v51 = vmul.f32 %v3519_v21, %v3750_v3  ;;  %v947_v4 = vmul.f32 %v3579_v45, %v3750_v3 }
 0x112   : > { %v3752_v15 = vpop.permute.xlu1 %2109  ;;  %v3754_v16 = vpop.permute.xlu0 %2099 }
 0x113   : > { %5089 = vst [vmem:[#allocation27_spill] sm:$0xff] %v3752_v15  ;;  %5090 = vst [vmem:[#allocation28_spill] sm:$0xff] %v3754_v16  ;;  %v463_v15 = vadd.f32 1.0, %v3157_v20  ;;  %v828_v16 = vmul.f32 %v3499_v13, %v3750_v3  ;;  %v1168_v36 = vadd.f32 %v1165_v5, %v1155_v63  ;;  %v1115_v63 = vmul.f32 %v3531_v26, %v3747_v0 }
 0x115   : > { %v3778_v20 = vmul.f32 %v463_v15, %v449_v27  ;;  %v831_v60 = vadd.f32 %v828_v16, %v818_v19  ;;  %918 = vrot.lane.b32.xlu1 %v911_v28, %s3195_s27  ;;  %v858_v15 = vmul.f32 %v3521_v22, %v3747_v0  ;;  %v937_v16 = vmul.f32 %v3581_v46, %v3747_v0 }
 0x116   : > { %v3764_v35 = vpop.permute.xlu1 %2366  ;;  %v3766_v7 = vpop.permute.xlu0 %2356 }
 0x117   : > { %5091 = vst [vmem:[#allocation29_spill] sm:$0xff] %v3764_v35  ;;  %5092 = vst [vmem:[#allocation30_spill] sm:$0xff] %v3766_v7  ;;  %v561_v7 = vmul.f32 %v3509_v17, %v3750_v3  ;;  %v551_v35 = vmul.f32 %v3511_v18, %v3747_v0  ;;  %838 = vrot.lane.b32.xlu0 %v831_v60, %s3193_s24  ;;  %v3795_v27 = vrot.slane %v3778_v20, 4 }
 0x118   : > { %v871_v5 = vadd.f32 %v868_v51, %v858_v15  ;;  %v635_v15 = vmul.f32 %v3571_v42, %v3747_v0 }
 0x119   : > { %v564_v19 = vadd.f32 %v561_v7, %v551_v35  ;;  %1175 = vrot.lane.b32.xlu1 %v1168_v36, %s3194_s25  ;;  %v521_v35 = vmul.f32 %v3501_v14, %v3795_v27  ;;  %v950_v7 = vadd.f32 %v947_v4, %v937_v16  ;;  %v511_v36 = vmul.f32 %v3491_v10, %v3778_v20 }
 0x11a   : > { %v3784_v59 = vpop.permute.xlu1 %1611  ;;  %v3786_v52 = vpop.permute.xlu0 %1601  ;;  %v819_v10 = vmul.f32 %v3489_v9, %v3778_v20  ;;  %v562_v16 = vmul.f32 %v3509_v17, %v3795_v27  ;;  %v869_v17 = vmul.f32 %v3519_v21, %v3795_v27  ;;  %v1166_v21 = vmul.f32 %v3559_v37, %v3795_v27 }
 0x11b   : > { %5093 = vst [vmem:[#allocation31_spill] sm:$0xff] %v3786_v52  ;;  %571 = vrot.lane.b32.xlu0 %v564_v19, %s3194_s25  ;;  %v1125_v52 = vmul.f32 %v3529_v25, %v3750_v3  ;;  %v648_v19 = vmul.f32 %v3569_v41, %v3750_v3  ;;  %v524_v14 = vadd.f32 %v521_v35, %v511_v36 }
 0x11c   : > { %v1126_v36 = vmul.f32 %v3529_v25, %v3795_v27  ;;  %v649_v25 = vmul.f32 %v3569_v41, %v3795_v27  ;;  %v948_v37 = vmul.f32 %v3579_v45, %v3795_v27  ;;  %v1205_v41 = vmul.f32 %v3589_v49, %v3750_v3 }
 0x11d   : > { %956 = vrot.lane.b32.xlu1 %v950_v7, %s3196_s28  ;;  %v552_v7 = vmul.f32 %v3511_v18, %v3778_v20  ;;  %v859_v18 = vmul.f32 %v3521_v22, %v3778_v20  ;;  %v1116_v22 = vmul.f32 %v3531_v26, %v3778_v20  ;;  %v938_v26 = vmul.f32 %v3581_v46, %v3778_v20 }
 0x11e   : > { %v3807_v28 = vpop.permute.xlu1 %1892  ;;  %v3809_v60 = vpop.permute.xlu0 %1882  ;;  %v1206_v45 = vmul.f32 %v3589_v49, %v3795_v27  ;;  %v1196_v46 = vmul.f32 %v3591_v50, %v3778_v20 }
 0x11f   : > { %5094 = vst [vmem:[#allocation32_spill] sm:$0xff] %v3807_v28  ;;  %5095 = vst [vmem:[#allocation33_spill] sm:$0xff] %v3809_v60  ;;  %878 = vrot.lane.b32.xlu0 %v871_v5, %s3194_s25  ;;  %v829_v60 = vmul.f32 %v3499_v13, %v3795_v27  ;;  %v1128_v28 = vadd.f32 %v1125_v52, %v1115_v63  ;;  %v603_v13 = vmul.f32 %v3539_v29, %v3795_v27 }
 0x120   : > { %v651_v52 = vadd.f32 %v648_v19, %v635_v15  ;;  %v593_v5 = vmul.f32 %v3541_v30, %v3778_v20  ;;  %v909_v29 = vmul.f32 %v3549_v33, %v3795_v27  ;;  %v565_v63 = vadd.f32 %v562_v16, %v552_v7 }
 0x121   : > { %532 = vrot.lane.b32.xlu1 %v524_v14, %s3193_s24  ;;  %v832_v35 = vadd.f32 %v829_v60, %v819_v10  ;;  %v899_v30 = vmul.f32 %v3551_v34, %v3778_v20  ;;  %v872_v33 = vadd.f32 %v869_v17, %v859_v18  ;;  %v1156_v34 = vmul.f32 %v3561_v38, %v3778_v20 }
 0x122   : > { %v3825_v4 = vpop.permute.xlu1 %2149  ;;  %v3827_v51 = vpop.permute.xlu0 %2139  ;;  %v606_v60 = vadd.f32 %v603_v13, %v593_v5  ;;  %v1129_v16 = vadd.f32 %v1126_v36, %v1116_v22  ;;  %v636_v13 = vmul.f32 %v3571_v42, %v3778_v20  ;;  %v1195_v42 = vmul.f32 %v3591_v50, %v3747_v0 }
 0x123   : > { %1135 = vrot.lane.b32.xlu0 %v1128_v28, %s3193_s24  ;;  %v912_v19 = vadd.f32 %v909_v29, %v899_v30  ;;  %v1169_v10 = vadd.f32 %v1166_v21, %v1156_v34  ;;  %v1422_v5 = vmul.f32 %v3599_v53, %v3750_v3  ;;  %v1423_v17 = vmul.f32 %v3599_v53, %v3795_v27 }
 0x124   : > { %v652_v7 = vadd.f32 %v649_v25, %v636_v13  ;;  %v1209_v18 = vadd.f32 %v1206_v45, %v1196_v46  ;;  %v1412_v30 = vmul.f32 %v3601_v54, %v3747_v0  ;;  %v1413_v36 = vmul.f32 %v3601_v54, %v3778_v20 }
 0x125   : > { %840 = vrot.lane.b32.xlu1 %v832_v35, %s3193_s24  ;;  %v951_v35 = vadd.f32 %v948_v37, %v938_v26  ;;  %v1696_v21 = vmul.f32 %v3609_v57, %v3750_v3  ;;  %v1686_v34 = vmul.f32 %v3611_v58, %v3747_v0  ;;  %v1687_v25 = vmul.f32 %v3611_v58, %v3778_v20 }
 0x126   : > { %v3845_v9 = vpop.permute.xlu1 %2406  ;;  %v3847_v28 = vpop.permute.xlu0 %2396  ;;  %v1426_v22 = vadd.f32 %v1423_v17, %v1413_v36  ;;  %v1194_v13 = vmul.f32 0.0, %v3591_v50  ;;  %v1421_v26 = vmul.f32 0.0, %v3599_v53  ;;  %v689_v46 = vmul.f32 %v3619_v61, %v3750_v3 }
 0x127   : > { %657 = vrot.lane.b32.xlu0 %v651_v52, %s3196_s28  ;;  %v1699_v45 = vadd.f32 %v1696_v21, %v1686_v34  ;;  %v978_v34 = vmul.f32 %v3631_v2, %v3778_v20 }
 0x129   : > { %573 = vrot.lane.b32.xlu1 %v565_v63, %s3194_s25  ;;  %v1208_v63 = vadd.f32 %v1205_v41, %v1195_v42  ;;  %v1411_v41 = vmul.f32 0.0, %v3601_v54  ;;  %v1685_v42 = vmul.f32 0.0, %v3611_v58  ;;  %v679_v54 = vmul.f32 %v3621_v62, %v3747_v0 }
 0x12a   : > { %v3863_v14 = vpop.permute.xlu1 %2189  ;;  %v3865_v15 = vpop.permute.xlu0 %2179  ;;  %v681_v58 = vmul.f32 0.0, %v3621_v62 }
 0x12b   : > { %614 = vrot.lane.b32.xlu0 %v606_v60, %s3195_s27 }
 0x12d   : > { %880 = vrot.lane.b32.xlu1 %v872_v33, %s3194_s25  ;;  %v1425_v33 = vadd.f32 %v1422_v5, %v1412_v30  ;;  %v1424_v5 = vadd.f32 %v1421_v26, %v1411_v41  ;;  %v680_v30 = vmul.f32 %v3621_v62, %v3778_v20  ;;  %v977_v62 = vmul.f32 %v3631_v2, %v3747_v0 }
 0x12e   : > { %v3883_v38 = vpop.permute.xlu1 %2446  ;;  %v3885_v52 = vpop.permute.xlu0 %2436 }
 0x12f   : > { %920 = vrot.lane.b32.xlu0 %v912_v19, %s3195_s27  ;;  %v1697_v19 = vmul.f32 %v3609_v57, %v3795_v27 }
 0x131   : > { %1137 = vrot.lane.b32.xlu1 %v1129_v16, %s3193_s24  ;;  %v1204_v16 = vmul.f32 0.0, %v3589_v49 }
 0x132   : > { %v3901_v29 = vpop.permute.xlu1 %2486  ;;  %v3903_v60 = vpop.permute.xlu0 %2476 }
 0x133   : > { %1177 = vrot.lane.b32.xlu0 %v1169_v10, %s3194_s25  ;;  %v1207_v53 = vadd.f32 %v1204_v16, %v1194_v13  ;;  %v979_v16 = vmul.f32 0.0, %v3631_v2  ;;  %v1244_v13 = vmul.f32 %v3639_v6, %v3750_v3  ;;  %v1236_v2 = vmul.f32 0.0, %v3641_v8 }
 0x135   : > { %659 = vrot.lane.b32.xlu1 %v652_v7, %s3196_s28  ;;  %v1695_v7 = vmul.f32 0.0, %v3609_v57  ;;  %v691_v57 = vmul.f32 0.0, %v3619_v61 }
 0x136   : > { %v3919_v37 = vpop.permute.xlu1 %490  ;;  %v3921_v10 = vpop.permute.xlu0 %478 }
 0x137   : > { %958 = vrot.lane.b32.xlu0 %v951_v35, %s3196_s28  ;;  %v1700_v35 = vadd.f32 %v1697_v19, %v1687_v25  ;;  %v1698_v17 = vadd.f32 %v1695_v7, %v1685_v42  ;;  %v987_v19 = vmul.f32 %v3629_v1, %v3750_v3  ;;  %v989_v25 = vmul.f32 0.0, %v3629_v1 }
 0x138   : > { %v1234_v7 = vmul.f32 %v3641_v8, %v3747_v0 }
 0x139   : > { %1217 = vrot.lane.b32.xlu1 %v1209_v18, %s3195_s27  ;;  %v692_v18 = vadd.f32 %v689_v46, %v679_v54  ;;  %v992_v42 = vadd.f32 %v989_v25, %v979_v16  ;;  %v1245_v46 = vmul.f32 %v3639_v6, %v3795_v27  ;;  %v1727_v25 = vmul.f32 %v3663_v40, %v3778_v20 }
 0x13a   : > { %v3935_v49 = vpop.permute.xlu1 %798  ;;  %v3937_v50 = vpop.permute.xlu0 %788  ;;  %v1993_v16 = vmul.f32 %v3671_v55, %v3750_v3 }
 0x13b   : > { %1215 = vrot.lane.b32.xlu0 %v1208_v63, %s3195_s27  ;;  %v690_v63 = vmul.f32 %v3619_v61, %v3795_v27 }
 0x13d   : > { %1434 = vrot.lane.b32.xlu1 %v1426_v22, %s3193_s24  ;;  %v693_v61 = vadd.f32 %v690_v63, %v680_v30  ;;  %v694_v22 = vadd.f32 %v691_v57, %v681_v58  ;;  %v1462_v57 = vmul.f32 %v3653_v23, %v3750_v3  ;;  %v1463_v58 = vmul.f32 %v3653_v23, %v3795_v27 }
 0x13e   : > { %v3949_v36 = vpop.permute.xlu1 %1095  ;;  %v3951_v21 = vpop.permute.xlu0 %1085  ;;  %v1736_v30 = vmul.f32 %v3661_v39, %v3750_v3 }
 0x13f   : > { %1432 = vrot.lane.b32.xlu0 %v1425_v33, %s3193_s24  ;;  %5096 = vst [vmem:[#allocation34_spill] sm:$0xff] %v3949_v36  ;;  %5097 = vst [vmem:[#allocation35_spill] sm:$0xff] %v3951_v21  ;;  %v988_v33 = vmul.f32 %v3629_v1, %v3795_v27  ;;  %v1246_v1 = vmul.f32 0.0, %v3639_v6 }
 0x141   : > { %1708 = vrot.lane.b32.xlu1 %v1700_v35, %s3193_s24  ;;  %v991_v35 = vadd.f32 %v988_v33, %v978_v34  ;;  %v1249_v6 = vadd.f32 %v1246_v1, %v1236_v2  ;;  %v1726_v34 = vmul.f32 %v3663_v40, %v3747_v0 }
 0x142   : > { %v3969_v26 = vpop.permute.xlu1 %1392  ;;  %v3971_v41 = vpop.permute.xlu0 %1382 }
 0x143   : > { %1706 = vrot.lane.b32.xlu0 %v1699_v45, %s3193_s24  ;;  %5098 = vst [vmem:[#allocation36_spill] sm:$0xff] %v3969_v26  ;;  %5099 = vst [vmem:[#allocation37_spill] sm:$0xff] %v3971_v41  ;;  %v990_v45 = vadd.f32 %v987_v19, %v977_v62  ;;  %v1737_v19 = vmul.f32 %v3661_v39, %v3795_v27 }
 0x145   : > { %1430 = vrot.lane.b32.xlu1 %v1424_v5, %s3193_s24  ;;  %v1235_v5 = vmul.f32 %v3641_v8, %v3778_v20  ;;  %v1453_v8 = vmul.f32 %v3655_v24, %v3778_v20 }
 0x146   : > { %v3983_v54 = vpop.permute.xlu1 %1666 }
 0x147   : > { %1213 = vrot.lane.b32.xlu0 %v1207_v53, %s3195_s27  ;;  %v1247_v53 = vadd.f32 %v1244_v13, %v1234_v7  ;;  %v1248_v63 = vadd.f32 %v1245_v46, %v1235_v5  ;;  %v1466_v62 = vadd.f32 %v1463_v58, %v1453_v8  ;;  %v1994_v13 = vmul.f32 %v3671_v55, %v3795_v27 }
 0x148   : > { %v1983_v7 = vmul.f32 %v3673_v56, %v3747_v0  ;;  %v1461_v46 = vmul.f32 0.0, %v3653_v23  ;;  %v1735_v5 = vmul.f32 0.0, %v3661_v39  ;;  %v730_v8 = vmul.f32 %v3681_v11, %v3750_v3 }
 0x149   : > { %698 = vrot.lane.b32.xlu1 %v692_v18, %s3197_s29  ;;  %v1452_v18 = vmul.f32 %v3655_v24, %v3747_v0 }
 0x14a   : > { %v4003_v33 = vpop.permute.xlu1 %1963  ;;  %v1996_v58 = vadd.f32 %v1993_v16, %v1983_v7  ;;  %v1018_v7 = vmul.f32 %v3693_v32, %v3778_v20 }
 0x14b   : > { %1704 = vrot.lane.b32.xlu0 %v1698_v17, %s3193_s24  ;;  %v3985_v17 = vpop.permute.xlu0 %1656 }
 0x14d   : > { %702 = vrot.lane.b32.xlu1 %v694_v22, %s3197_s29  ;;  %v1465_v22 = vadd.f32 %v1462_v57, %v1452_v18  ;;  %v1725_v57 = vmul.f32 0.0, %v3663_v40  ;;  %v1982_v18 = vmul.f32 0.0, %v3673_v56  ;;  %v720_v40 = vmul.f32 %v3683_v12, %v3747_v0 }
 0x14e   : > { %v4021_v1 = vpop.permute.xlu1 %2260 }
 0x14f   : > { %700 = vrot.lane.b32.xlu0 %v693_v61, %s3197_s29  ;;  %v4005_v61 = vpop.permute.xlu0 %1953  ;;  %5100 = vst [vmem:[#allocation38_spill] sm:$0xff] %v4021_v1  ;;  %v5125_v1 = vld [vmem:[#allocation15_spill] sm:$0xff] }
 0x151   : > { %998 = vrot.lane.b32.xlu1 %v991_v35, %s3197_s29  ;;  %v1740_v35 = vadd.f32 %v1737_v19, %v1727_v25 }
 0x152   : > { %v4037_v23 = vpop.permute.xlu1 %836 }
 0x153   : > { %996 = vrot.lane.b32.xlu0 %v990_v45, %s3197_s29  ;;  %v1739_v45 = vadd.f32 %v1736_v30, %v1726_v34  ;;  %v4023_v2 = vpop.permute.xlu0 %2250  ;;  %v1738_v30 = vadd.f32 %v1735_v5, %v1725_v57  ;;  %v721_v34 = vmul.f32 %v3683_v12, %v3778_v20 }
 0x154   : > { %5101 = vst [vmem:[#allocation39_spill] sm:$0xff] %v4023_v2 }
 0x155   : > { %1253 = vrot.lane.b32.xlu1 %v1247_v53, %s3196_s28  ;;  %v1451_v53 = vmul.f32 0.0, %v3655_v24 }
 0x156   : > { %v4051_v25 = vpop.permute.xlu1 %876 }
 0x157   : > { %1000 = vrot.lane.b32.xlu0 %v992_v42, %s3197_s29  ;;  %v1984_v42 = vmul.f32 %v3673_v56, %v3778_v20  ;;  %v4039_v24 = vpop.permute.xlu0 %528  ;;  %v1464_v39 = vadd.f32 %v1461_v46, %v1451_v53  ;;  %v722_v56 = vmul.f32 0.0, %v3683_v12  ;;  %5102 = vst [vmem:[#allocation40_spill] sm:$0xff] %v4051_v25  ;;  %v1017_v12 = vmul.f32 %v3693_v32, %v3747_v0 }
 0x158   : > { %v1019_v46 = vmul.f32 0.0, %v3693_v32  ;;  %v1284_v53 = vmul.f32 %v3697_v43, %v3750_v3  ;;  %v1276_v32 = vmul.f32 0.0, %v3699_v44  ;;  %v481_v25 = vmul.f32 0.0, %v3921_v10 }
 0x159   : > { %1257 = vrot.lane.b32.xlu1 %v1249_v6, %s3196_s28  ;;  %v1992_v6 = vmul.f32 0.0, %v3671_v55  ;;  %v732_v55 = vmul.f32 0.0, %v3681_v11 }
 0x15a   : > { %v4071_v5 = vpop.permute.xlu1 %610 }
 0x15b   : > { %1255 = vrot.lane.b32.xlu0 %v1248_v63, %s3196_s28  ;;  %v1997_v63 = vadd.f32 %v1994_v13, %v1984_v42  ;;  %v1995_v19 = vadd.f32 %v1992_v6, %v1982_v18  ;;  %v4053_v16 = vpop.permute.xlu0 %569  ;;  %v1027_v13 = vmul.f32 %v3691_v31, %v3750_v3  ;;  %v1029_v42 = vmul.f32 0.0, %v3691_v31  ;;  %5103 = vst [vmem:[#allocation41_spill] sm:$0xff] %v4071_v5 }
 0x15c   : > { %v1274_v6 = vmul.f32 %v3699_v44, %v3747_v0  ;;  %v1660_v5 = vmul.f32 %v3985_v17, %v3747_v0 }
 0x15d   : > { %1474 = vrot.lane.b32.xlu1 %v1466_v62, %s3194_s25  ;;  %v733_v62 = vadd.f32 %v730_v8, %v720_v40  ;;  %v1032_v18 = vadd.f32 %v1029_v42, %v1019_v46  ;;  %v1285_v8 = vmul.f32 %v3697_v43, %v3795_v27 }
 0x15e   : > { %v4085_v40 = vpop.permute.xlu1 %1173 }
 0x15f   : > { %1472 = vrot.lane.b32.xlu0 %v1465_v22, %s3194_s25  ;;  %v731_v22 = vmul.f32 %v3681_v11, %v3795_v27  ;;  %v4073_v57 = vpop.permute.xlu0 %1133  ;;  %5105 = vst [vmem:[#allocation43_spill] sm:$0xff] %v4085_v40  ;;  %v1815_v40 = vmul.f32 %v5125_v1, %v3750_v3 }
 0x160   : > { %5104 = vst [vmem:[#allocation42_spill] sm:$0xff] %v4073_v57 }
 0x161   : > { %1748 = vrot.lane.b32.xlu1 %v1740_v35, %s3194_s25  ;;  %v734_v11 = vadd.f32 %v731_v22, %v721_v34  ;;  %v735_v35 = vadd.f32 %v732_v55, %v722_v56  ;;  %v1500_v55 = vmul.f32 %v3703_v47, %v3750_v3  ;;  %v1501_v56 = vmul.f32 %v3703_v47, %v3795_v27  ;;  %v5107_v34 = vld [vmem:[#allocation5_spill] sm:$0xff] }
 0x162   : > { %v1777_v46 = vmul.f32 0.0, %v5107_v34 }
 0x163   : > { %1746 = vrot.lane.b32.xlu0 %v1739_v45, %s3194_s25  ;;  %v1028_v45 = vmul.f32 %v3691_v31, %v3795_v27  ;;  %v1286_v31 = vmul.f32 0.0, %v3697_v43 }
 0x165   : > { %2005 = vrot.lane.b32.xlu1 %v1997_v63, %s3193_s24  ;;  %v1031_v63 = vadd.f32 %v1028_v45, %v1018_v7  ;;  %v1289_v43 = vadd.f32 %v1286_v31, %v1276_v32  ;;  %v5110_v7 = vld [vmem:[#allocation6_spill] sm:$0xff] }
 0x166   : > { %v1765_v42 = vmul.f32 %v5110_v7, %v3747_v0 }
 0x167   : > { %2003 = vrot.lane.b32.xlu0 %v1996_v58, %s3193_s24  ;;  %v1030_v58 = vadd.f32 %v1027_v13, %v1017_v12  ;;  %v1775_v13 = vmul.f32 %v5107_v34, %v3750_v3 }
 0x169   : > { %1744 = vrot.lane.b32.xlu1 %v1738_v30, %s3194_s25  ;;  %v1275_v30 = vmul.f32 %v3699_v44, %v3778_v20  ;;  %v1492_v44 = vmul.f32 %v3705_v48, %v3778_v20  ;;  %v1778_v31 = vadd.f32 %v1775_v13, %v1765_v42  ;;  %v5116_v13 = vld [vmem:[#allocation10_spill] sm:$0xff] }
 0x16b   : > { %1470 = vrot.lane.b32.xlu0 %v1464_v39, %s3194_s25  ;;  %v1287_v39 = vadd.f32 %v1284_v53, %v1274_v6  ;;  %v1288_v22 = vadd.f32 %v1285_v8, %v1275_v30  ;;  %v1503_v47 = vadd.f32 %v1501_v56, %v1492_v44  ;;  %v1767_v53 = vmul.f32 0.0, %v5110_v7  ;;  %v5113_v8 = vld [vmem:[#allocation8_spill] sm:$0xff] }
 0x16d   : > { %739 = vrot.lane.b32.xlu1 %v733_v62, %s3198_s30  ;;  %v1491_v62 = vmul.f32 %v3705_v48, %v3747_v0  ;;  %v1766_v48 = vmul.f32 %v5110_v7, %v3778_v20 }
 0x16f   : > { %2001 = vrot.lane.b32.xlu0 %v1995_v19, %s3193_s24  ;;  %v4087_v19 = vpop.permute.xlu0 %916  ;;  %v1502_v45 = vadd.f32 %v1500_v55, %v1491_v62  ;;  %v5114_v55 = vld [vmem:[#allocation9_spill] sm:$0xff]  ;;  %v1780_v62 = vadd.f32 %v1777_v46, %v1767_v53 }
 0x170   : > { %5106 = vst [vmem:[#allocation44_spill] sm:$0xff] %v4087_v19  ;;  %v2290_v56 = vmul.f32 %v5114_v55, %v3750_v3  ;;  %v2291_v7 = vmul.f32 %v5114_v55, %v3795_v27  ;;  %v494_v19 = vmul.f32 %v3919_v37, %v3750_v3 }
 0x171   : > { %743 = vrot.lane.b32.xlu1 %v735_v35, %s3198_s30  ;;  %v4105_v35 = vpop.permute.xlu1 %960 }
 0x172   : > { %5108 = vst [vmem:[#allocation5_spill] sm:$0xff] %v4105_v35 }
 0x173   : > { %741 = vrot.lane.b32.xlu0 %v734_v11, %s3198_s30  ;;  %v1776_v11 = vmul.f32 %v5107_v34, %v3795_v27  ;;  %v4107_v12 = vpop.permute.xlu0 %661  ;;  %v2024_v34 = vmul.f32 %v5113_v8, %v3778_v20 }
 0x174   : > { %5109 = vst [vmem:[#allocation45_spill] sm:$0xff] %v4107_v12 }
 0x175   : > { %1038 = vrot.lane.b32.xlu1 %v1031_v63, %s3198_s30  ;;  %v1779_v32 = vadd.f32 %v1776_v11, %v1766_v48 }
 0x177   : > { %1036 = vrot.lane.b32.xlu0 %v1030_v58, %s3198_s30  ;;  %v5111_v58 = vld [vmem:[#allocation7_spill] sm:$0xff] }
 0x178   : > { %v2033_v63 = vmul.f32 %v5111_v58, %v3750_v3  ;;  %v2034_v30 = vmul.f32 %v5111_v58, %v3795_v27  ;;  %v2032_v11 = vmul.f32 0.0, %v5111_v58  ;;  %v2289_v58 = vmul.f32 0.0, %v5114_v55 }
 0x179   : > { %1293 = vrot.lane.b32.xlu1 %v1287_v39, %s3197_s29  ;;  %v2023_v39 = vmul.f32 %v5113_v8, %v3747_v0 }
 0x17a   : > { %v2037_v46 = vadd.f32 %v2034_v30, %v2024_v34 }
 0x17b   : > { %1040 = vrot.lane.b32.xlu0 %v1032_v18, %s3198_s30  ;;  %v2036_v44 = vadd.f32 %v2033_v63, %v2023_v39  ;;  %v2281_v63 = vmul.f32 %v5116_v13, %v3778_v20 }
 0x17d   : > { %1297 = vrot.lane.b32.xlu1 %v1289_v43, %s3197_s29  ;;  %v2294_v30 = vadd.f32 %v2291_v7, %v2281_v63  ;;  %v5122_v7 = vld [vmem:[#allocation13_spill] sm:$0xff] }
 0x17e   : > { %v1534_v63 = vmul.f32 %v5122_v7, %v3750_v3 }
 0x17f   : > { %1295 = vrot.lane.b32.xlu0 %v1288_v22, %s3197_s29  ;;  %v4121_v18 = vpop.permute.xlu0 %530 }
 0x181   : > { %1508 = vrot.lane.b32.xlu1 %v1503_v47, %s3195_s27  ;;  %v2022_v47 = vmul.f32 0.0, %v5113_v8 }
 0x183   : > { %1506 = vrot.lane.b32.xlu0 %v1502_v45, %s3195_s27  ;;  %v4119_v6 = vpop.permute.xlu1 %612  ;;  %v2280_v45 = vmul.f32 %v5116_v13, %v3747_v0 }
 0x184   : > { %5112 = vst [vmem:[#allocation6_spill] sm:$0xff] %v4119_v6 }
 0x185   : > { %1786 = vrot.lane.b32.xlu1 %v1779_v32, %s3195_s27  ;;  %v2293_v53 = vadd.f32 %v2290_v56, %v2280_v45  ;;  %v5118_v32 = vld [vmem:[#allocation11_spill] sm:$0xff]  ;;  %v2035_v56 = vadd.f32 %v2032_v11, %v2022_v47 }
 0x186   : > { %v1324_v8 = vmul.f32 %v5118_v32, %v3750_v3  ;;  %v1325_v55 = vmul.f32 %v5118_v32, %v3795_v27 }
 0x187   : > { %1784 = vrot.lane.b32.xlu0 %v1778_v31, %s3195_s27  ;;  %v4131_v22 = vpop.permute.xlu1 %918  ;;  %v2279_v31 = vmul.f32 0.0, %v5116_v13  ;;  %v1326_v13 = vmul.f32 0.0, %v5118_v32 }
 0x188   : > { %5115 = vst [vmem:[#allocation7_spill] sm:$0xff] %v4131_v22  ;;  %v495_v22 = vmul.f32 %v3919_v37, %v3795_v27 }
 0x189   : > { %v4133_v43 = vpop.permute.xlu0 %838  ;;  %2043 = vrot.lane.b32.xlu1 %v2036_v44, %s3194_s25  ;;  %v5120_v44 = vld [vmem:[#allocation12_spill] sm:$0xff]  ;;  %v2292_v45 = vadd.f32 %v2289_v58, %v2279_v31  ;;  %v1535_v58 = vmul.f32 %v5122_v7, %v3795_v27 }
 0x18a   : > { %v1314_v34 = vmul.f32 %v5120_v44, %v3747_v0  ;;  %v1315_v47 = vmul.f32 %v5120_v44, %v3778_v20 }
 0x18b   : > { %1788 = vrot.lane.b32.xlu0 %v1780_v62, %s3195_s27  ;;  %v4145_v42 = vpop.permute.xlu1 %1175 }
 0x18c   : > { %5117 = vst [vmem:[#allocation8_spill] sm:$0xff] %v4145_v42  ;;  %v1327_v11 = vadd.f32 %v1324_v8, %v1314_v34  ;;  %v5124_v8 = vld [vmem:[#allocation14_spill] sm:$0xff] }
 0x18d   : > { %v4147_v48 = vpop.permute.xlu0 %571  ;;  %2300 = vrot.lane.b32.xlu1 %v2293_v53, %s3193_s24  ;;  %v1524_v34 = vmul.f32 %v5124_v8, %v3747_v0 }
 0x18f   : > { %2045 = vrot.lane.b32.xlu0 %v2037_v46, %s3194_s25  ;;  %v4157_v39 = vpop.permute.xlu1 %956  ;;  %v1316_v46 = vmul.f32 0.0, %v5120_v44  ;;  %v1525_v44 = vmul.f32 %v5124_v8, %v3778_v20 }
 0x190   : > { %5119 = vst [vmem:[#allocation9_spill] sm:$0xff] %v4157_v39 }
 0x191   : > { %v4159_v62 = vpop.permute.xlu0 %878  ;;  %2041 = vrot.lane.b32.xlu1 %v2035_v56, %s3194_s25  ;;  %v1329_v56 = vadd.f32 %v1326_v13, %v1316_v46  ;;  %v1537_v13 = vadd.f32 %v1534_v63, %v1524_v34  ;;  %v1538_v46 = vadd.f32 %v1535_v58, %v1525_v44  ;;  %v5129_v34 = vld [vmem:[#allocation17_spill] sm:$0xff] }
 0x192   : > { %v2072_v44 = vmul.f32 %v5129_v34, %v3750_v3 }
 0x193   : > { %2302 = vrot.lane.b32.xlu0 %v2294_v30, %s3193_s24  ;;  %v4171_v2 = vpop.permute.xlu1 %532  ;;  %v1328_v30 = vadd.f32 %v1325_v55, %v1315_v47  ;;  %v5127_v47 = vld [vmem:[#allocation16_spill] sm:$0xff] }
 0x194   : > { %v1805_v57 = vmul.f32 %v5127_v47, %v3747_v0  ;;  %v1806_v58 = vmul.f32 %v5127_v47, %v3778_v20 }
 0x195   : > { %v4169_v53 = vpop.permute.xlu0 %1135  ;;  %1333 = vrot.lane.b32.xlu1 %v1327_v11, %s3198_s30  ;;  %v1526_v11 = vmul.f32 0.0, %v5124_v8  ;;  %v1807_v8 = vmul.f32 0.0, %v5127_v47 }
 0x196   : > { %5121 = vst [vmem:[#allocation10_spill] sm:$0xff] %v4169_v53  ;;  %v1818_v63 = vadd.f32 %v1815_v40, %v1805_v57  ;;  %v5132_v57 = vld [vmem:[#allocation18_spill] sm:$0xff] }
 0x197   : > { %2298 = vrot.lane.b32.xlu0 %v2292_v45, %s3193_s24  ;;  %v4183_v32 = vpop.permute.xlu1 %840  ;;  %v1536_v45 = vmul.f32 0.0, %v5122_v7  ;;  %v1816_v7 = vmul.f32 %v5125_v1, %v3795_v27  ;;  %v2062_v40 = vmul.f32 %v5132_v57, %v3747_v0  ;;  %v2063_v47 = vmul.f32 %v5132_v57, %v3778_v20 }
 0x199   : > { %v4181_v31 = vpop.permute.xlu0 %657  ;;  %1337 = vrot.lane.b32.xlu1 %v1329_v56, %s3198_s30  ;;  %v1817_v56 = vmul.f32 0.0, %v5125_v1 }
 0x19a   : > { %5123 = vst [vmem:[#allocation11_spill] sm:$0xff] %v4181_v31  ;;  %v4436_v31 = vmul.f32 %v3885_v52, %v3747_v0 }
 0x19b   : > { %1335 = vrot.lane.b32.xlu0 %v1328_v30, %s3198_s30  ;;  %v4197_v55 = vpop.permute.xlu1 %573  ;;  %v1539_v30 = vadd.f32 %v1536_v45, %v1526_v11  ;;  %v1819_v11 = vadd.f32 %v1816_v7, %v1806_v58 }
 0x19d   : > { %v4195_v42 = vpop.permute.xlu0 %614  ;;  %1545 = vrot.lane.b32.xlu1 %v1538_v46, %s3196_s28  ;;  %v2073_v46 = vmul.f32 %v5129_v34, %v3795_v27 }
 0x19e   : > { %5126 = vst [vmem:[#allocation12_spill] sm:$0xff] %v4195_v42 }
 0x19f   : > { %1543 = vrot.lane.b32.xlu0 %v1537_v13, %s3196_s28  ;;  %v4209_v21 = vpop.permute.xlu1 %880  ;;  %v1820_v13 = vadd.f32 %v1817_v56, %v1807_v8  ;;  %v2075_v56 = vadd.f32 %v2072_v44, %v2062_v40  ;;  %v5135_v8 = vld [vmem:[#allocation19_spill] sm:$0xff]  ;;  %v2076_v36 = vadd.f32 %v2073_v46, %v2063_v47 }
 0x1a0   : > { %v2330_v58 = vmul.f32 %v5135_v8, %v3750_v3  ;;  %v2329_v35 = vmul.f32 0.0, %v5135_v8 }
 0x1a1   : > { %v4207_v53 = vpop.permute.xlu0 %920  ;;  %1824 = vrot.lane.b32.xlu1 %v1818_v63, %s3196_s28  ;;  %v2064_v63 = vmul.f32 0.0, %v5132_v57 }
 0x1a2   : > { %5128 = vst [vmem:[#allocation13_spill] sm:$0xff] %v4207_v53 }
 0x1a3   : > { %1547 = vrot.lane.b32.xlu0 %v1539_v30, %s3196_s28  ;;  %v4219_v1 = vpop.permute.xlu1 %1137  ;;  %v2074_v30 = vmul.f32 0.0, %v5129_v34  ;;  %v2331_v34 = vmul.f32 %v5135_v8, %v3795_v27 }
 0x1a4   : > { %5131 = vst [vmem:[#allocation15_spill] sm:$0xff] %v4219_v1  ;;  %v5136_v1 = vld [vmem:[#allocation20_spill] sm:$0xff] }
 0x1a5   : > { %v4217_v45 = vpop.permute.xlu0 %1177  ;;  %1828 = vrot.lane.b32.xlu1 %v1820_v13, %s3196_s28  ;;  %v2321_v13 = vmul.f32 %v5136_v1, %v3778_v20  ;;  %v2077_v40 = vadd.f32 %v2074_v30, %v2064_v63  ;;  %v2319_v12 = vmul.f32 0.0, %v5136_v1 }
 0x1a6   : > { %5130 = vst [vmem:[#allocation14_spill] sm:$0xff] %v4217_v45 }
 0x1a7   : > { %1826 = vrot.lane.b32.xlu0 %v1819_v11, %s3196_s28  ;;  %v4233_v7 = vpop.permute.xlu1 %659  ;;  %v2320_v11 = vmul.f32 %v5136_v1, %v3747_v0  ;;  %v2334_v30 = vadd.f32 %v2331_v34, %v2321_v13  ;;  %v2332_v8 = vadd.f32 %v2329_v35, %v2319_v12  ;;  %v5145_v13 = vld [vmem:[#allocation23_spill] sm:$0xff] }
 0x1a8   : > { %5134 = vst [vmem:[#allocation17_spill] sm:$0xff] %v4233_v7  ;;  %v1856_v12 = vmul.f32 %v5145_v13, %v3795_v27 }
 0x1a9   : > { %v4231_v45 = vpop.permute.xlu0 %958  ;;  %2083 = vrot.lane.b32.xlu1 %v2076_v36, %s3195_s27  ;;  %v2333_v46 = vadd.f32 %v2330_v58, %v2320_v11  ;;  %v5139_v36 = vld [vmem:[#allocation21_spill] sm:$0xff] }
 0x1aa   : > { %5133 = vst [vmem:[#allocation16_spill] sm:$0xff] %v4231_v45  ;;  %v1574_v47 = vmul.f32 %v5139_v36, %v3750_v3  ;;  %v1575_v63 = vmul.f32 %v5139_v36, %v3795_v27  ;;  %v1576_v58 = vmul.f32 0.0, %v5139_v36 }
 0x1ab   : > { %2081 = vrot.lane.b32.xlu0 %v2075_v56, %s3195_s27  ;;  %v4247_v44 = vpop.permute.xlu1 %1217  ;;  %v5140_v56 = vld [vmem:[#allocation22_spill] sm:$0xff] }
 0x1ac   : > { %5138 = vst [vmem:[#allocation19_spill] sm:$0xff] %v4247_v44  ;;  %v1564_v39 = vmul.f32 %v5140_v56, %v3747_v0  ;;  %v1565_v1 = vmul.f32 %v5140_v56, %v3778_v20  ;;  %v1566_v11 = vmul.f32 0.0, %v5140_v56  ;;  %v5146_v44 = vld [vmem:[#allocation24_spill] sm:$0xff] }
 0x1ad   : > { %v4245_v57 = vpop.permute.xlu0 %1215  ;;  %2340 = vrot.lane.b32.xlu1 %v2333_v46, %s3194_s25  ;;  %v1845_v53 = vmul.f32 %v5146_v44, %v3747_v0  ;;  %v1846_v36 = vmul.f32 %v5146_v44, %v3778_v20 }
 0x1ae   : > { %5137 = vst [vmem:[#allocation18_spill] sm:$0xff] %v4245_v57  ;;  %v1577_v34 = vadd.f32 %v1574_v47, %v1564_v39  ;;  %v1578_v35 = vadd.f32 %v1575_v63, %v1565_v1  ;;  %v1579_v47 = vadd.f32 %v1576_v58, %v1566_v11  ;;  %v5149_v1 = vld [vmem:[#allocation27_spill] sm:$0xff] }
 0x1af   : > { %2085 = vrot.lane.b32.xlu0 %v2077_v40, %s3195_s27  ;;  %v4259_v57 = vpop.permute.xlu1 %1434  ;;  %v1859_v58 = vadd.f32 %v1856_v12, %v1846_v36  ;;  %v2113_v11 = vmul.f32 %v5149_v1, %v3795_v27  ;;  %v5155_v36 = vld [vmem:[#allocation29_spill] sm:$0xff] }
 0x1b0   : > { %5142 = vst [vmem:[#allocation21_spill] sm:$0xff] %v4259_v57  ;;  %v1855_v57 = vmul.f32 %v5145_v13, %v3750_v3 }
 0x1b1   : > { %v4257_v45 = vpop.permute.xlu0 %1432  ;;  %2338 = vrot.lane.b32.xlu1 %v2332_v8, %s3194_s25  ;;  %v1847_v8 = vmul.f32 0.0, %v5146_v44  ;;  %v2114_v44 = vmul.f32 0.0, %v5149_v1 }
 0x1b2   : > { %5141 = vst [vmem:[#allocation20_spill] sm:$0xff] %v4257_v45  ;;  %v1858_v63 = vadd.f32 %v1855_v57, %v1845_v53 }
 0x1b3   : > { %2342 = vrot.lane.b32.xlu0 %v2334_v30, %s3194_s25  ;;  %v4271_v46 = vpop.permute.xlu1 %1708  ;;  %v1857_v30 = vmul.f32 0.0, %v5145_v13 }
 0x1b4   : > { %5144 = vst [vmem:[#allocation46_spill] sm:$0xff] %v4271_v46 }
 0x1b5   : > { %v4269_v40 = vpop.permute.xlu0 %1706  ;;  %1585 = vrot.lane.b32.xlu1 %v1578_v35, %s3197_s29  ;;  %v5150_v35 = vld [vmem:[#allocation28_spill] sm:$0xff]  ;;  %v1860_v57 = vadd.f32 %v1857_v30, %v1847_v8  ;;  %v2370_v8 = vmul.f32 %v5155_v36, %v3795_v27 }
 0x1b6   : > { %5143 = vst [vmem:[#allocation22_spill] sm:$0xff] %v4269_v40  ;;  %v2102_v46 = vmul.f32 %v5150_v35, %v3747_v0  ;;  %v2103_v53 = vmul.f32 %v5150_v35, %v3778_v20  ;;  %v2104_v13 = vmul.f32 0.0, %v5150_v35 }
 0x1b7   : > { %1583 = vrot.lane.b32.xlu0 %v1577_v34, %s3197_s29  ;;  %v4285_v39 = vpop.permute.xlu1 %1430  ;;  %v2112_v34 = vmul.f32 %v5149_v1, %v3750_v3 }
 0x1b8   : > { %5148 = vst [vmem:[#allocation24_spill] sm:$0xff] %v4285_v39  ;;  %v2116_v30 = vadd.f32 %v2113_v11, %v2103_v53  ;;  %v1614_v53 = vmul.f32 %v3784_v59, %v3750_v3 }
 0x1b9   : > { %v4283_v56 = vpop.permute.xlu0 %1213  ;;  %1864 = vrot.lane.b32.xlu1 %v1858_v63, %s3197_s29  ;;  %v2115_v12 = vadd.f32 %v2112_v34, %v2102_v46  ;;  %v2117_v34 = vadd.f32 %v2114_v44, %v2104_v13  ;;  %v1615_v13 = vmul.f32 %v3784_v59, %v3795_v27 }
 0x1ba   : > { %5147 = vst [vmem:[#allocation23_spill] sm:$0xff] %v4283_v56 }
 0x1bb   : > { %1587 = vrot.lane.b32.xlu0 %v1579_v47, %s3197_s29  ;;  %v4297_v56 = vpop.permute.xlu1 %698 }
 0x1bc   : > { %5152 = vst [vmem:[#allocation28_spill] sm:$0xff] %v4297_v56  ;;  %v5156_v56 = vld [vmem:[#allocation30_spill] sm:$0xff] }
 0x1bd   : > { %v4295_v40 = vpop.permute.xlu0 %1704  ;;  %1868 = vrot.lane.b32.xlu1 %v1860_v57, %s3197_s29  ;;  %v2359_v39 = vmul.f32 %v5156_v56, %v3747_v0  ;;  %v2360_v1 = vmul.f32 %v5156_v56, %v3778_v20  ;;  %v2361_v57 = vmul.f32 0.0, %v5156_v56 }
 0x1be   : > { %5151 = vst [vmem:[#allocation27_spill] sm:$0xff] %v4295_v40  ;;  %v2369_v40 = vmul.f32 %v5155_v36, %v3750_v3 }
 0x1bf   : > { %1866 = vrot.lane.b32.xlu0 %v1859_v58, %s3197_s29  ;;  %v4309_v63 = vpop.permute.xlu1 %702  ;;  %v2371_v58 = vmul.f32 0.0, %v5155_v36  ;;  %v2373_v44 = vadd.f32 %v2370_v8, %v2360_v1  ;;  %v5164_v1 = vld [vmem:[#allocation32_spill] sm:$0xff] }
 0x1c0   : > { %5154 = vst [vmem:[#allocation48_spill] sm:$0xff] %v4309_v63  ;;  %v2372_v11 = vadd.f32 %v2369_v40, %v2359_v39  ;;  %v1616_v39 = vmul.f32 0.0, %v3784_v59  ;;  %v1896_v59 = vmul.f32 %v5164_v1, %v3795_v27 }
 0x1c1   : > { %v4307_v47 = vpop.permute.xlu0 %700  ;;  %2123 = vrot.lane.b32.xlu1 %v2116_v30, %s3196_s28  ;;  %v2374_v56 = vadd.f32 %v2371_v58, %v2361_v57 }
 0x1c2   : > { %5153 = vst [vmem:[#allocation47_spill] sm:$0xff] %v4307_v47  ;;  %v4425_v47 = vmul.f32 %v3883_v38, %v3795_v27 }
 0x1c3   : > { %2121 = vrot.lane.b32.xlu0 %v2115_v12, %s3196_s28  ;;  %v4323_v46 = vpop.permute.xlu1 %998  ;;  %v5159_v12 = vld [vmem:[#allocation31_spill] sm:$0xff] }
 0x1c4   : > { %5158 = vst [vmem:[#allocation30_spill] sm:$0xff] %v4323_v46  ;;  %v1604_v30 = vmul.f32 %v5159_v12, %v3747_v0  ;;  %v1605_v40 = vmul.f32 %v5159_v12, %v3778_v20  ;;  %v1606_v36 = vmul.f32 0.0, %v5159_v12 }
 0x1c5   : > { %v4321_v35 = vpop.permute.xlu0 %996  ;;  %2378 = vrot.lane.b32.xlu1 %v2372_v11, %s3195_s27 }
 0x1c6   : > { %5157 = vst [vmem:[#allocation29_spill] sm:$0xff] %v4321_v35  ;;  %v1617_v8 = vadd.f32 %v1614_v53, %v1604_v30  ;;  %v1618_v58 = vadd.f32 %v1615_v13, %v1605_v40  ;;  %v1619_v30 = vadd.f32 %v1616_v39, %v1606_v36  ;;  %v2152_v40 = vmul.f32 %v3825_v4, %v3750_v3 }
 0x1c7   : > { %2125 = vrot.lane.b32.xlu0 %v2117_v34, %s3196_s28  ;;  %v4335_v35 = vpop.permute.xlu1 %1253  ;;  %v2143_v39 = vmul.f32 %v3827_v51, %v3778_v20 }
 0x1c8   : > { %5161 = vst [vmem:[#allocation49_spill] sm:$0xff] %v4335_v35  ;;  %v1895_v35 = vmul.f32 %v5164_v1, %v3750_v3 }
 0x1c9   : > { %v4333_v63 = vpop.permute.xlu0 %1000  ;;  %2382 = vrot.lane.b32.xlu1 %v2374_v56, %s3195_s27 }
 0x1ca   : > { %5160 = vst [vmem:[#allocation31_spill] sm:$0xff] %v4333_v63  ;;  %v5165_v63 = vld [vmem:[#allocation33_spill] sm:$0xff] }
 0x1cb   : > { %2380 = vrot.lane.b32.xlu0 %v2373_v44, %s3195_s27  ;;  %v4347_v11 = vpop.permute.xlu1 %1257  ;;  %v1885_v46 = vmul.f32 %v5165_v63, %v3747_v0  ;;  %v1886_v57 = vmul.f32 %v5165_v63, %v3778_v20  ;;  %v1897_v44 = vmul.f32 0.0, %v5164_v1  ;;  %v1887_v56 = vmul.f32 0.0, %v5165_v63 }
 0x1cc   : > { %5163 = vst [vmem:[#allocation51_spill] sm:$0xff] %v4347_v11  ;;  %v2142_v11 = vmul.f32 %v3827_v51, %v3747_v0  ;;  %v2144_v63 = vmul.f32 0.0, %v3827_v51  ;;  %v2409_v1 = vmul.f32 %v3845_v9, %v3750_v3  ;;  %v2399_v51 = vmul.f32 %v3847_v28, %v3747_v0 }
 0x1cd   : > { %v4345_v34 = vpop.permute.xlu0 %1255  ;;  %1625 = vrot.lane.b32.xlu1 %v1618_v58, %s3198_s30  ;;  %v1898_v13 = vadd.f32 %v1895_v35, %v1885_v46  ;;  %v2154_v58 = vmul.f32 0.0, %v3825_v4  ;;  %v1899_v36 = vadd.f32 %v1896_v59, %v1886_v57  ;;  %v2401_v59 = vmul.f32 0.0, %v3847_v28 }
 0x1ce   : > { %5162 = vst [vmem:[#allocation50_spill] sm:$0xff] %v4345_v34  ;;  %v2400_v34 = vmul.f32 %v3847_v28, %v3778_v20  ;;  %v4396_v57 = vmul.f32 %v3863_v14, %v3750_v3  ;;  %v4412_v28 = vmul.f32 %v3865_v15, %v3778_v20 }
 0x1cf   : > { %1623 = vrot.lane.b32.xlu0 %v1617_v8, %s3198_s30  ;;  %v4361_v53 = vpop.permute.xlu1 %1474  ;;  %v2153_v8 = vmul.f32 %v3825_v4, %v3795_v27  ;;  %v2410_v4 = vmul.f32 %v3845_v9, %v3795_v27 }
 0x1d0   : > { %5167 = vst [vmem:[#allocation33_spill] sm:$0xff] %v4361_v53  ;;  %v2411_v53 = vmul.f32 0.0, %v3845_v9  ;;  %v4403_v9 = vmul.f32 0.0, %v3863_v14 }
 0x1d1   : > { %v4359_v12 = vpop.permute.xlu0 %1472  ;;  %1904 = vrot.lane.b32.xlu1 %v1898_v13, %s3198_s30  ;;  %v1900_v13 = vadd.f32 %v1897_v44, %v1887_v56  ;;  %v4407_v44 = vmul.f32 %v3865_v15, %v3747_v0  ;;  %v4415_v56 = vmul.f32 0.0, %v3865_v15  ;;  %v2156_v45 = vadd.f32 %v2153_v8, %v2143_v39 }
 0x1d2   : > { %5166 = vst [vmem:[#allocation32_spill] sm:$0xff] %v4359_v12  ;;  %v2155_v12 = vadd.f32 %v2152_v40, %v2142_v11  ;;  %v4432_v15 = vmul.f32 0.0, %v3883_v38  ;;  %v4440_v11 = vmul.f32 %v3885_v52, %v3778_v20  ;;  %v4443_v40 = vmul.f32 0.0, %v3885_v52 }
 0x1d3   : > { %1627 = vrot.lane.b32.xlu0 %v1619_v30, %s3198_s30  ;;  %v4377_v46 = vpop.permute.xlu1 %1748  ;;  %v4455_v8 = vmul.f32 0.0, %v3901_v29  ;;  %v4459_v39 = vmul.f32 %v3903_v60, %v3747_v0  ;;  %v4464_v52 = vmul.f32 %v3903_v60, %v3778_v20  ;;  %v2414_v6 = vadd.f32 %v2411_v53, %v2401_v59 }
 0x1d4   : > { %5168 = vst [vmem:[#allocation52_spill] sm:$0xff] %v4377_v46 }
 0x1d5   : > { %v1747_v35 = vpop.permute.xlu0 %1746  ;;  %1908 = vrot.lane.b32.xlu1 %v1900_v13, %s3198_s30  ;;  %5172 = vst [vmem:[#allocation56_spill] sm:$0xff] %v4455_v8  ;;  %v2412_v8 = vadd.f32 %v2409_v1, %v2399_v51  ;;  %v1395_v1 = vmul.f32 0.0, %v3969_v26  ;;  %v1385_v51 = vmul.f32 0.0, %v3971_v41  ;;  %v1671_v41 = vmul.f32 %v3983_v54, %v3795_v27 }
 0x1d6   : > { %v4385_v30 = vsel %vm575_vm2, %v1747_v35, %v4377_v46  ;;  %v4400_v46 = vmul.f32 %v3863_v14, %v3795_v27  ;;  %v4421_v14 = vmul.f32 %v3883_v38, %v3750_v3  ;;  %v4452_v38 = vmul.f32 %v3901_v29, %v3795_v27 }
 0x1d7   : > { %5169 = vst [vmem:[#allocation53_spill] sm:$0xff] %v4385_v30  ;;  %1906 = vrot.lane.b32.xlu0 %v1899_v36, %s3198_s30  ;;  %v4417_v30 = vpop.permute.xlu1 %2005  ;;  %v1659_v26 = vmul.f32 0.0, %v3985_v17 }
 0x1d8   : > { %5170 = vst [vmem:[#allocation54_spill] sm:$0xff] %v4417_v30 }
 0x1d9   : > { %v2004_v36 = vpop.permute.xlu0 %2003  ;;  %2163 = vrot.lane.b32.xlu1 %v2156_v45, %s3197_s29 }
 0x1da   : > { %v4429_v13 = vsel %vm534_vm3, %v2004_v36, %v4417_v30  ;;  %v493_v30 = vmul.f32 0.0, %v3919_v37  ;;  %v803_v37 = vmul.f32 %v3935_v49, %v3795_v27 }
 0x1db   : > { %5171 = vst [vmem:[#allocation55_spill] sm:$0xff] %v4429_v13  ;;  %2161 = vrot.lane.b32.xlu0 %v2155_v12, %s3197_s29  ;;  %v4448_v13 = vmul.f32 %v3901_v29, %v3750_v3  ;;  %v4467_v12 = vmul.f32 0.0, %v3903_v60  ;;  %v1745_v42 = vpop.permute.xlu1 %1744  ;;  %v2157_v29 = vadd.f32 %v2154_v58, %v2144_v63  ;;  %v482_v60 = vmul.f32 %v3921_v10, %v3747_v0 }
 0x1dc   : > { %v4477_v45 = vsel %vm575_vm2, %v1745_v42, %v1747_v35  ;;  %v801_v58 = vmul.f32 0.0, %v3935_v49  ;;  %v802_v63 = vmul.f32 %v3935_v49, %v3750_v3  ;;  %v791_v42 = vmul.f32 0.0, %v3937_v50 }
 0x1dd   : > { %5173 = vst [vmem:[#allocation57_spill] sm:$0xff] %v4467_v12  ;;  %v4470_v7 = vpop.permute.xlu0 %1470  ;;  %5175 = vst [vmem:[#allocation59_spill] sm:$0xff] %v4477_v45  ;;  %v792_v35 = vmul.f32 %v3937_v50, %v3747_v0  ;;  %2418 = vrot.lane.b32.xlu1 %v2412_v8, %s3196_s28  ;;  %v2413_v12 = vadd.f32 %v2410_v4, %v2400_v34  ;;  %v1670_v49 = vmul.f32 %v3983_v54, %v3750_v3 }
 0x1de   : > { %5174 = vst [vmem:[#allocation58_spill] sm:$0xff] %v4470_v7  ;;  %v483_v7 = vmul.f32 %v3921_v10, %v3778_v20  ;;  %v793_v10 = vmul.f32 %v3937_v50, %v3778_v20  ;;  %v1669_v50 = vmul.f32 0.0, %v3983_v54  ;;  %v1661_v34 = vmul.f32 %v3985_v17, %v3778_v20 }
 0x1df   : > { %2165 = vrot.lane.b32.xlu0 %v2157_v29, %s3197_s29  ;;  %v4498_v45 = vpop.permute.xlu1 %739  ;;  %v4516_v4 = vmul.f32 %v4003_v33, %v3750_v3  ;;  %v496_v0 = vadd.f32 %v493_v30, %v481_v25  ;;  %v535_v54 = vsel %vm534_vm3, %v4039_v24, %v4121_v18  ;;  %v805_v59 = vadd.f32 %v802_v63, %v792_v35 }
 0x1e0   : > { %v498_v53 = vadd.f32 %v495_v22, %v483_v7  ;;  %v806_v3 = vadd.f32 %v803_v37, %v793_v10  ;;  %v4528_v25 = vadd.f32 %v1670_v49, %v1660_v5  ;;  %v576_v24 = vsel %vm575_vm2, %v4053_v16, %v4147_v48  ;;  %v5182_v10 = vld [vmem:[#allocation7_spill] sm:$0xff]  ;;  %v5184_v49 = vld [vmem:[#allocation12_spill] sm:$0xff] }
 0x1e1   : > { %v2002_v29 = vpop.permute.xlu0 %2001  ;;  %2422 = vrot.lane.b32.xlu1 %v2414_v6, %s3196_s28  ;;  %v536_v6 = vsel %vm534_vm3, %v4121_v18, %v4171_v2  ;;  %v4538_v22 = vadd.f32 %v1671_v41, %v1661_v34  ;;  %v1398_v7 = vadd.f32 %v1395_v1, %v1385_v51  ;;  %v540_v30 = vadd.f32 %v535_v54, %v496_v0  ;;  %v5183_v1 = vld [vmem:[#allocation44_spill] sm:$0xff]  ;;  %v5185_v34 = vld [vmem:[#allocation17_spill] sm:$0xff] }
 0x1e2   : > { %v4505_v8 = vsel %vm534_vm3, %v2002_v29, %v2004_v36  ;;  %v804_v36 = vadd.f32 %v801_v58, %v791_v42  ;;  %v497_v29 = vadd.f32 %v494_v19, %v482_v60  ;;  %v2196_v19 = vadd.f32 %v4400_v46, %v4412_v28  ;;  %v5181_v42 = vld [vmem:[#allocation56_spill] sm:$0xff] }
 0x1e3   : > { %5176 = vst [vmem:[#allocation60_spill] sm:$0xff] %v4505_v8  ;;  %2420 = vrot.lane.b32.xlu0 %v2413_v12, %s3196_s28  ;;  %v4524_v17 = vpop.permute.xlu1 %743  ;;  %v2195_v12 = vadd.f32 %v4396_v57, %v4407_v44  ;;  %v4541_v57 = vadd.f32 %v1669_v50, %v1659_v26  ;;  %v4545_v5 = vmul.f32 %v4005_v61, %v3778_v20 }
 0x1e4   : > { %v577_v16 = vsel %vm575_vm2, %v4147_v48, %v4197_v55  ;;  %v4553_v41 = vmul.f32 %v4003_v33, %v3795_v27  ;;  %v2197_v26 = vadd.f32 %v4403_v9, %v4415_v56  ;;  %v2452_v46 = vadd.f32 %v4421_v14, %v4436_v31  ;;  %v5180_v37 = vld [vmem:[#allocation57_spill] sm:$0xff] }
 0x1e5   : > { %v4522_v8 = vpop.permute.xlu0 %741  ;;  %2203 = vrot.lane.b32.xlu1 %v2196_v19, %s3198_s30  ;;  %v581_v44 = vadd.f32 %v576_v24, %v540_v30  ;;  %v541_v28 = vadd.f32 %v536_v6, %v497_v29  ;;  %v542_v60 = vadd.f32 %v4171_v2, %v498_v53  ;;  %v843_v48 = vsel %vm534_vm3, %v4133_v43, %v4183_v32  ;;  %v5186_v29 = vld [vmem:[#allocation11_spill] sm:$0xff]  ;;  %v5187_v53 = vld [vmem:[#allocation20_spill] sm:$0xff]  ;;  %v5189_v30 = vld [vmem:[#allocation13_spill] sm:$0xff] }
 0x1e6   : > { %v842_v58 = vsel %vm534_vm3, %v4037_v23, %v4133_v43  ;;  %v2453_v9 = vadd.f32 %v4425_v47, %v4440_v11  ;;  %v2454_v31 = vadd.f32 %v4432_v15, %v4443_v40  ;;  %v2492_v56 = vadd.f32 %v4448_v13, %v4459_v39  ;;  %v5177_v43 = vld [vmem:[#allocation6_spill] sm:$0xff]  ;;  %v5178_v47 = vld [vmem:[#allocation41_spill] sm:$0xff]  ;;  %v5179_v15 = vld [vmem:[#allocation40_spill] sm:$0xff] }
 0x1e7   : > { %2201 = vrot.lane.b32.xlu0 %v2195_v12, %s3198_s30  ;;  %v4557_v0 = vpop.permute.xlu1 %1038  ;;  %v582_v2 = vadd.f32 %v577_v16, %v541_v28  ;;  %v583_v14 = vadd.f32 %v4197_v55, %v542_v60  ;;  %v883_v63 = vsel %vm575_vm2, %v4159_v62, %v4209_v21  ;;  %v2493_v23 = vadd.f32 %v4452_v38, %v4464_v52  ;;  %v5192_v28 = vld [vmem:[#allocation47_spill] sm:$0xff]  ;;  %v5193_v60 = vld [vmem:[#allocation28_spill] sm:$0xff] }
 0x1e8   : > { %v617_v11 = vsel %vm616_vm4, %v5178_v47, %v5177_v43  ;;  %v882_v13 = vsel %vm575_vm2, %v5179_v15, %v4159_v62  ;;  %v848_v40 = vadd.f32 %v843_v48, %v805_v59  ;;  %v2494_v35 = vadd.f32 %v5181_v42, %v5180_v37  ;;  %v5188_v59 = vld [vmem:[#allocation24_spill] sm:$0xff]  ;;  %v5197_v47 = vld [vmem:[#allocation22_spill] sm:$0xff]  ;;  %v5199_v37 = vld [vmem:[#allocation5_spill] sm:$0xff] }
 0x1e9   : > { %v4555_v18 = vpop.permute.xlu0 %1036  ;;  %2458 = vrot.lane.b32.xlu1 %v2452_v46, %s3197_s29  ;;  %v922_v38 = vsel %vm616_vm4, %v5183_v1, %v5182_v10  ;;  %v847_v52 = vadd.f32 %v842_v58, %v804_v36  ;;  %v622_v51 = vadd.f32 %v617_v11, %v581_v44  ;;  %v618_v50 = vsel %vm616_vm4, %v5177_v43, %v5184_v49  ;;  %v5191_v46 = vld [vmem:[#allocation9_spill] sm:$0xff]  ;;  %v5194_v58 = vld [vmem:[#allocation32_spill] sm:$0xff]  ;;  %v5198_v11 = vld [vmem:[#allocation27_spill] sm:$0xff] }
 0x1ea   : > { %v888_v62 = vadd.f32 %v883_v63, %v848_v40  ;;  %v664_v54 = vsel %vm663_vm5, %v5186_v29, %v5185_v34  ;;  %v1436_v12 = vsel %vm534_vm3, %v5188_v59, %v5187_v53  ;;  %v849_v36 = vadd.f32 %v4183_v32, %v806_v3  ;;  %v5200_v1 = vld [vmem:[#allocation46_spill] sm:$0xff] }
 0x1eb   : > { %2205 = vrot.lane.b32.xlu0 %v2197_v26, %s3198_s30  ;;  %v4592_v55 = vpop.permute.xlu1 %1293  ;;  %v887_v19 = vadd.f32 %v882_v13, %v847_v52  ;;  %v624_v24 = vadd.f32 %v5184_v49, %v583_v14  ;;  %v623_v6 = vadd.f32 %v618_v50, %v582_v2  ;;  %v923_v16 = vsel %vm616_vm4, %v5182_v10, %v5189_v30  ;;  %v5190_v26 = vld [vmem:[#allocation16_spill] sm:$0xff]  ;;  %v5202_v59 = vld [vmem:[#allocation30_spill] sm:$0xff] }
 0x1ec   : > { %v962_v44 = vsel %vm663_vm5, %v5191_v46, %v5190_v26  ;;  %v705_v48 = vsel %vm704_vm6, %v5193_v60, %v5192_v28  ;;  %v1441_v43 = vadd.f32 %v1436_v12, %v1398_v7  ;;  %v1710_v15 = vsel %vm534_vm3, %v5198_v11, %v5197_v47  ;;  %v5201_v49 = vld [vmem:[#allocation48_spill] sm:$0xff]  ;;  %v5203_v12 = vld [vmem:[#allocation29_spill] sm:$0xff] }
 0x1ed   : > { %v4590_v39 = vpop.permute.xlu0 %1040  ;;  %2462 = vrot.lane.b32.xlu1 %v2454_v31, %s3197_s29  ;;  %v5196_v31 = vld [vmem:[#allocation45_spill] sm:$0xff]  ;;  %v670_v63 = vadd.f32 %v664_v54, %v623_v6  ;;  %v889_v13 = vadd.f32 %v4209_v21, %v849_v36  ;;  %v928_v40 = vadd.f32 %v923_v16, %v888_v62  ;;  %v963_v42 = vsel %vm663_vm5, %v5190_v26, %v5199_v37 }
 0x1ee   : > { %v665_v14 = vsel %vm663_vm5, %v5185_v34, %v5196_v31  ;;  %v746_v10 = vsel %vm745_vm7, %v4498_v45, %v4522_v8  ;;  %v1711_v7 = vsel %vm534_vm3, %v5197_v47, %v5200_v1  ;;  %v706_v21 = vsel %vm704_vm6, %v5192_v28, %v5201_v49  ;;  %v5205_v31 = vld [vmem:[#allocation59_spill] sm:$0xff] }
 0x1ef   : > { %2460 = vrot.lane.b32.xlu0 %v2453_v9, %s3197_s29  ;;  %v5195_v9 = vld [vmem:[#allocation58_spill] sm:$0xff]  ;;  %v4626_v2 = vpop.permute.xlu1 %1297  ;;  %v711_v52 = vadd.f32 %v705_v48, %v670_v63  ;;  %v968_v62 = vadd.f32 %v962_v44, %v928_v40  ;;  %v671_v34 = vadd.f32 %v665_v14, %v624_v24  ;;  %v1715_v54 = vadd.f32 %v1710_v15, %v4541_v57  ;;  %v5206_v63 = vld [vmem:[#allocation53_spill] sm:$0xff] }
 0x1f0   : > { %v1476_v3 = vsel %vm575_vm2, %v5195_v9, %v5194_v58  ;;  %v747_v26 = vsel %vm745_vm7, %v4522_v8, %v4524_v17  ;;  %v929_v57 = vadd.f32 %v5189_v30, %v889_v13  ;;  %v1716_v24 = vadd.f32 %v1711_v7, %v4528_v25  ;;  %v5204_v8 = vld [vmem:[#allocation31_spill] sm:$0xff]  ;;  %v5207_v40 = vld [vmem:[#allocation25_spill] sm:$0xff]  ;;  %v5209_v7 = vld [vmem:[#allocation34_spill] sm:$0xff] }
 0x1f1   : > { %v4624_v32 = vpop.permute.xlu0 %1295  ;;  %v1481_v50 = vadd.f32 %v1476_v3, %v1441_v43  ;;  %2500 = vrot.lane.b32.xlu1 %v2493_v23, %s3198_s30  ;;  %v752_v16 = vadd.f32 %v746_v10, %v711_v52  ;;  %v712_v44 = vadd.f32 %v706_v21, %v671_v34  ;;  %v1042_v48 = vsel %vm745_vm7, %v4555_v18, %v4557_v0  ;;  %v5208_v10 = vld [vmem:[#allocation26_spill] sm:$0xff] }
 0x1f2   : > { %v927_v9 = vadd.f32 %v922_v38, %v887_v19  ;;  %v1003_v17 = vsel %vm704_vm6, %v5202_v59, %v5204_v8  ;;  %v1755_v14 = vadd.f32 %v5205_v31, %v1715_v54  ;;  %v669_v25 = vadd.f32 %v5186_v29, %v622_v51 }
 0x1f3   : > { %2498 = vrot.lane.b32.xlu0 %v2492_v56, %s3198_s30  ;;  %v1002_v56 = vsel %vm704_vm6, %v5203_v12, %v5202_v59  ;;  %v4653_v6 = vpop.permute.xlu1 %1508  ;;  %v969_v30 = vadd.f32 %v963_v42, %v929_v57  ;;  %v1756_v43 = vadd.f32 %v5206_v63, %v1716_v24  ;;  %v753_v47 = vadd.f32 %v747_v26, %v712_v44 }
 0x1f4   : > { %v1008_v3 = vadd.f32 %v1002_v56, %v968_v62  ;;  %v1043_v38 = vsel %vm745_vm7, %v4557_v0, %v4590_v39  ;;  %v1957_v37 = vmul.f32 %v4005_v61, %v5207_v40  ;;  %v1717_v51 = vadd.f32 %v5200_v1, %v4538_v22  ;;  %v5210_v39 = vld [vmem:[#allocation35_spill] sm:$0xff] }
 0x1f5   : > { %v1507_v36 = vpop.permute.xlu0 %1506  ;;  %771 = vrot.lane.b32.xlu1 %v752_v16, %s3199_s11  ;;  %v1009_v29 = vadd.f32 %v1003_v17, %v969_v30  ;;  %v1099_v52 = vmul.f32 %v5209_v7, %v5208_v10  ;;  %v1100_v0 = vmul.f32 %v5209_v7, %v3795_v27  ;;  %v1089_v49 = vmul.f32 %v5210_v39, %v5207_v40 }
 0x1f6   : > { %v4658_v28 = vadd.f32 %v1507_v36, %v1481_v50  ;;  %v4662_v23 = vsel %vm616_vm4, %v1507_v36, %v4653_v6  ;;  %v710_v21 = vadd.f32 %v5193_v60, %v669_v25  ;;  %v1090_v22 = vmul.f32 %v5210_v39, %v3778_v20  ;;  %v5211_v50 = vld [vmem:[#allocation52_spill] sm:$0xff] }
 0x1f7   : > { %2502 = vrot.lane.b32.xlu0 %v2494_v35, %s3198_s30  ;;  %v1787_v15 = vpop.permute.xlu1 %1786  ;;  %v1048_v35 = vadd.f32 %v1042_v48, %v1008_v3  ;;  %v967_v1 = vadd.f32 %v5191_v46, %v927_v9  ;;  %v1757_v62 = vadd.f32 %v5211_v50, %v1717_v51  ;;  %v1049_v34 = vadd.f32 %v1043_v38, %v1009_v29  ;;  %v5212_v48 = vld [vmem:[#allocation15_spill] sm:$0xff]  ;;  %v5218_v51 = vld [vmem:[#allocation14_spill] sm:$0xff]  ;;  %v5219_v29 = vld [vmem:[#allocation8_spill] sm:$0xff]  ;;  %s359_s30 = scalar_lea.vmem %s4994_s10, %s3123_s23 }
 0x1f8   : > { %v1966_v56 = vmul.f32 0.0, %v4003_v33  ;;  %v1971_v36 = vadd.f32 %v4553_v41, %v4545_v5  ;;  %v751_v60 = vadd.f32 %v4498_v45, %v710_v21  ;;  %v1956_v26 = vmul.f32 0.0, %v4005_v61  ;;  %v5213_v5 = vld [vmem:[#allocation10_spill] sm:$0xff]  ;;  %v5215_v3 = vld [vmem:[#allocation55_spill] sm:$0xff] }
 0x1f9   : > { %v1785_v11 = vpop.permute.xlu0 %1784  ;;  %1068 = vrot.lane.b32.xlu1 %v1048_v35, %s3200_s12  ;;  %v1007_v57 = vadd.f32 %v5203_v12, %v967_v1  ;;  %v1970_v46 = vadd.f32 %v4516_v4, %v1957_v37  ;;  %v1098_v44 = vmul.f32 0.0, %v5209_v7  ;;  %v1088_v33 = vmul.f32 0.0, %v5210_v39  ;;  %v5214_v41 = vld [vmem:[#allocation54_spill] sm:$0xff] }
 0x1fa   : > { %v4680_v19 = vadd.f32 %v1785_v11, %v1755_v14  ;;  %v1790_v13 = vsel %vm616_vm4, %v1785_v11, %v1787_v15  ;;  %v1140_v45 = vsel %vm534_vm3, %v5213_v5, %v5212_v48  ;;  %v2014_v9 = vadd.f32 %v5214_v41, %v1971_v36  ;;  %v5216_v11 = vld [vmem:[#allocation42_spill] sm:$0xff]  ;;  %v5224_v36 = vld [vmem:[#allocation51_spill] sm:$0xff] }
 0x1fb   : > { %v4687_v42 = vadd.f32 %v1790_v13, %v1756_v43  ;;  %773 = vrot.lane.b32.xlu0 %v753_v47, %s3199_s11  ;;  %v2044_v59 = vpop.permute.xlu1 %2043  ;;  %v1102_v61 = vadd.f32 %v1099_v52, %v1089_v49  ;;  %v1103_v12 = vadd.f32 %v1100_v0, %v1090_v22  ;;  %v2013_v4 = vadd.f32 %v5215_v3, %v1970_v46  ;;  %v5220_v52 = vld [vmem:[#allocation19_spill] sm:$0xff]  ;;  %v5221_v0 = vld [vmem:[#allocation18_spill] sm:$0xff] }
 0x1fc   : > { %v1047_v8 = vadd.f32 %v4555_v18, %v1007_v57  ;;  %v1969_v43 = vadd.f32 %v1966_v56, %v1956_v26  ;;  %v1101_v35 = vadd.f32 %v1098_v44, %v1088_v33  ;;  %v5217_v18 = vld [vmem:[#allocation60_spill] sm:$0xff]  ;;  %v1180_v7 = vsel %vm575_vm2, %v5219_v29, %v5218_v51  ;;  %v5226_v33 = vld [vmem:[#allocation23_spill] sm:$0xff] }
 0x1fd   : > { %v1789_v54 = vpop.permute.xlu0 %1788  ;;  %769 = vrot.lane.b32.xlu1 %v751_v60, %s3199_s11  ;;  %v1145_v30 = vadd.f32 %v1140_v45, %v1102_v61  ;;  %v1146_v63 = vadd.f32 %v5212_v48, %v1103_v12  ;;  %v1220_v39 = vsel %vm616_vm4, %v5221_v0, %v5220_v52  ;;  %v1219_v48 = vsel %vm616_vm4, %v5226_v33, %v5221_v0 }
 0x1fe   : > { %v1791_v16 = vsel %vm616_vm4, %v1787_v15, %v1789_v54  ;;  %v1139_v15 = vsel %vm534_vm3, %v5216_v11, %v5213_v5  ;;  %v2012_v38 = vadd.f32 %v5217_v18, %v1969_v43  ;;  %v5223_v54 = vld [vmem:[#allocation49_spill] sm:$0xff]  ;;  %v1299_v5 = vsel %vm704_vm6, %v4592_v55, %v4624_v32 }
 0x1ff   : > { %v4710_v24 = vadd.f32 %v1791_v16, %v1757_v62  ;;  %1070 = vrot.lane.b32.xlu0 %v1049_v34, %s3200_s12  ;;  %v2301_v31 = vpop.permute.xlu1 %2300  ;;  %v1144_v22 = vadd.f32 %v1139_v15, %v1101_v35  ;;  %v1185_v1 = vadd.f32 %v1180_v7, %v1145_v30  ;;  %v1186_v50 = vadd.f32 %v5218_v51, %v1146_v63  ;;  %v5222_v34 = vld [vmem:[#allocation50_spill] sm:$0xff]  ;;  %v5225_v16 = vld [vmem:[#allocation43_spill] sm:$0xff] }
 0x200   : > { %v1259_v56 = vsel %vm663_vm5, %v5223_v54, %v5222_v34  ;;  %v1260_v60 = vsel %vm663_vm5, %v5222_v34, %v5224_v36  ;;  %v1179_v26 = vsel %vm575_vm2, %v5225_v16, %v5219_v29  ;;  %v1300_v45 = vsel %vm704_vm6, %v4624_v32, %v4626_v2 }
 0x201   : > { %v2046_v17 = vpop.permute.xlu0 %2045  ;;  %v1225_v57 = vadd.f32 %v1220_v39, %v1185_v1 }
 0x202   : > { %v2048_v14 = vsel %vm575_vm2, %v2044_v59, %v2046_v17  ;;  %v4723_v25 = vadd.f32 %v2046_v17, %v2014_v9  ;;  %v1184_v9 = vadd.f32 %v1179_v26, %v1144_v22 }
 0x203   : > { %v4726_v47 = vadd.f32 %v2048_v14, %v2013_v4  ;;  %1066 = vrot.lane.b32.xlu0 %v1047_v8, %s3200_s12  ;;  %v2042_v37 = vpop.permute.xlu1 %2041  ;;  %v1265_v61 = vadd.f32 %v1259_v56, %v1225_v57 }
 0x204   : > { %v2047_v21 = vsel %vm575_vm2, %v2042_v37, %v2044_v59  ;;  %v1226_v59 = vadd.f32 %v5220_v52, %v1186_v50  ;;  %v1224_v3 = vadd.f32 %v1219_v48, %v1184_v9  ;;  %v5227_v52 = vld [vmem:[#allocation38_spill] sm:$0xff]  ;;  %v5230_v48 = vld [vmem:[#allocation37_spill] sm:$0xff] }
 0x205   : > { %v4733_v13 = vpop.permute.xlu0 %2302  ;;  %v4747_v62 = vadd.f32 %v2047_v21, %v2012_v38  ;;  %v1305_v4 = vadd.f32 %v1299_v5, %v1265_v61  ;;  %v2263_v0 = vmul.f32 0.0, %v5227_v52  ;;  %v1386_v5 = vmul.f32 %v5230_v48, %v5207_v40 }
 0x206   : > { %v4743_v49 = vsel %vm534_vm3, %v2301_v31, %v4733_v13  ;;  %v1266_v12 = vadd.f32 %v1260_v60, %v1226_v59  ;;  %v1264_v43 = vadd.f32 %v5223_v54, %v1224_v3  ;;  %v1387_v61 = vmul.f32 %v5230_v48, %v3778_v20 }
 0x207   : > { %v1334_v44 = vpop.permute.xlu1 %1333 }
 0x208   : > { %v1306_v8 = vadd.f32 %v1300_v45, %v1266_v12  ;;  %v1304_v32 = vadd.f32 %v4592_v55, %v1264_v43  ;;  %v5228_v55 = vld [vmem:[#allocation39_spill] sm:$0xff]  ;;  %v5231_v12 = vld [vmem:[#allocation21_spill] sm:$0xff] }
 0x209   : > { %v2299_v46 = vpop.permute.xlu0 %2298  ;;  %v2253_v39 = vmul.f32 0.0, %v5228_v55  ;;  %v1437_v3 = vsel %vm534_vm3, %v5187_v53, %v5231_v12 }
 0x20a   : > { %v2304_v41 = vsel %vm534_vm3, %v2299_v46, %v2301_v31  ;;  %v1344_v35 = vadd.f32 %v1334_v44, %v1304_v32 }
 0x20b   : > { %v1338_v14 = vpop.permute.xlu1 %1337  ;;  %v2266_v1 = vadd.f32 %v2263_v0, %v2253_v39 }
 0x20d   : > { %v1336_v17 = vpop.permute.xlu0 %1335  ;;  %v2309_v34 = vadd.f32 %v2304_v41, %v2266_v1 }
 0x20e   : > { %v1339_v30 = vsel %vm745_vm7, %v1334_v44, %v1336_v17  ;;  %v1340_v63 = vsel %vm745_vm7, %v1336_v17, %v1338_v14  ;;  %v5229_v44 = vld [vmem:[#allocation36_spill] sm:$0xff] }
 0x20f   : > { %v1345_v11 = vadd.f32 %v1339_v30, %v1305_v4  ;;  %v1346_v15 = vadd.f32 %v1340_v63, %v1306_v8  ;;  %v1546_v31 = vpop.permute.xlu1 %1545  ;;  %v1396_v33 = vmul.f32 %v5229_v44, %v5208_v10  ;;  %v1397_v9 = vmul.f32 %v5229_v44, %v3795_v27  ;;  %v5232_v8 = vld [vmem:[#allocation33_spill] sm:$0xff] }
 0x210   : > { %v1477_v17 = vsel %vm575_vm2, %v5194_v58, %v5232_v8 }
 0x211   : > { %v4773_v2 = vpop.permute.xlu0 %1543  ;;  %1365 = vrot.lane.b32.xlu1 %v1345_v11, %s3201_s15  ;;  %1367 = vrot.lane.b32.xlu0 %v1346_v15, %s3201_s15  ;;  %v1399_v4 = vadd.f32 %v1396_v33, %v1386_v5  ;;  %v1400_v43 = vadd.f32 %v1397_v9, %v1387_v61 }
 0x212   : > { %v1549_v32 = vsel %vm663_vm5, %v4773_v2, %v1546_v31 }
 0x213   : > { %v4775_v38 = vpop.permute.xlu1 %1824  ;;  %v1442_v30 = vadd.f32 %v1437_v3, %v1399_v4  ;;  %v1443_v15 = vadd.f32 %v5231_v12, %v1400_v43 }
 0x215   : > { %v1548_v18 = vpop.permute.xlu0 %1547  ;;  %1363 = vrot.lane.b32.xlu1 %v1344_v35, %s3201_s15  ;;  %v1482_v11 = vadd.f32 %v1477_v17, %v1442_v30  ;;  %v1483_v58 = vadd.f32 %v5232_v8, %v1443_v15  ;;  %v1554_v15 = vadd.f32 %v4773_v2, %v4658_v28 }
 0x217   : > { %v1829_v51 = vpop.permute.xlu1 %1828  ;;  %v1515_v53 = vadd.f32 %v4662_v23, %v1482_v11 }
 0x219   : > { %v1827_v37 = vpop.permute.xlu0 %1826  ;;  %v1555_v1 = vadd.f32 %v1549_v32, %v1515_v53 }
 0x21a   : > { %v1830_v23 = vsel %vm663_vm5, %v4775_v38, %v1827_v37  ;;  %v1831_v12 = vsel %vm663_vm5, %v1827_v37, %v1829_v51 }
 0x21b   : > { %v4779_v7 = vpop.permute.xlu1 %2083  ;;  %v1837_v17 = vadd.f32 %v1831_v12, %v4710_v24 }
 0x21d   : > { %v4777_v29 = vpop.permute.xlu0 %2081 }
 0x21e   : > { %v2087_v2 = vsel %vm616_vm4, %v4777_v29, %v4779_v7 }
 0x21f   : > { %v4785_v22 = vpop.permute.xlu1 %2340 }
 0x221   : > { %v4783_v21 = vpop.permute.xlu0 %2085 }
 0x223   : > { %v2339_v54 = vpop.permute.xlu1 %2338 }
 0x224   : > { %v2344_v56 = vsel %vm575_vm2, %v2339_v54, %v4785_v22  ;;  %v1516_v54 = vadd.f32 %v4653_v6, %v1483_v58 }
 0x225   : > { %v4787_v50 = vpop.permute.xlu0 %2342  ;;  %v4791_v36 = vadd.f32 %v2344_v56, %v2309_v34  ;;  %v1550_v34 = vsel %vm663_vm5, %v1546_v31, %v1548_v18 }
 0x226   : > { %v1556_v5 = vadd.f32 %v1550_v34, %v1516_v54 }
 0x227   : > { %v1586_v16 = vpop.permute.xlu1 %1585 }
 0x229   : > { %v1584_v60 = vpop.permute.xlu0 %1583 }
 0x22a   : > { %v1589_v39 = vsel %vm704_vm6, %v1584_v60, %v1586_v16 }
 0x22b   : > { %v1865_v57 = vpop.permute.xlu1 %1864  ;;  %v1595_v44 = vadd.f32 %v1589_v39, %v1555_v1 }
 0x22d   : > { %v1588_v26 = vpop.permute.xlu0 %1587 }
 0x22e   : > { %v1590_v33 = vsel %vm704_vm6, %v1586_v16, %v1588_v26  ;;  %v1836_v16 = vadd.f32 %v1830_v23, %v4687_v42  ;;  %v1835_v42 = vadd.f32 %v4775_v38, %v4680_v19 }
 0x22f   : > { %v1869_v46 = vpop.permute.xlu1 %1868  ;;  %v1596_v3 = vadd.f32 %v1590_v33, %v1556_v5  ;;  %v2264_v33 = vmul.f32 %v5227_v52, %v5208_v10  ;;  %v2255_v10 = vmul.f32 %v5228_v55, %v3778_v20 }
 0x230   : > { %v1875_v58 = vadd.f32 %v1865_v57, %v1835_v42 }
 0x231   : > { %v1867_v59 = vpop.permute.xlu0 %1866 }
 0x232   : > { %v1870_v31 = vsel %vm704_vm6, %v1865_v57, %v1867_v59  ;;  %v1871_v26 = vsel %vm704_vm6, %v1867_v59, %v1869_v46  ;;  %v1594_v46 = vadd.f32 %v1584_v60, %v1554_v15  ;;  %v2093_v60 = vadd.f32 %v2087_v2, %v4726_v47 }
 0x233   : > { %v4799_v41 = vpop.permute.xlu1 %2123  ;;  %v1876_v30 = vadd.f32 %v1870_v31, %v1836_v16  ;;  %v1877_v37 = vadd.f32 %v1871_v26, %v1837_v17  ;;  %v2088_v57 = vsel %vm616_vm4, %v4779_v7, %v4783_v21  ;;  %v2092_v7 = vadd.f32 %v4777_v29, %v4747_v62 }
 0x234   : > { %v2094_v47 = vadd.f32 %v2088_v57, %v4723_v25  ;;  %v2345_v62 = vsel %vm575_vm2, %v4785_v22, %v4787_v50 }
 0x235   : > { %v4797_v45 = vpop.permute.xlu0 %2121 }
 0x236   : > { %v2127_v19 = vsel %vm663_vm5, %v4797_v45, %v4799_v41  ;;  %v2132_v25 = vadd.f32 %v4797_v45, %v2092_v7 }
 0x237   : > { %v4813_v63 = vpop.permute.xlu1 %2378  ;;  %v2133_v5 = vadd.f32 %v2127_v19, %v2093_v60 }
 0x239   : > { %v4811_v14 = vpop.permute.xlu0 %2125 }
 0x23b   : > { %v4821_v0 = vpop.permute.xlu1 %2382 }
 0x23d   : > { %v4818_v35 = vpop.permute.xlu0 %2380 }
 0x23f   : > { %v1626_v48 = vpop.permute.xlu1 %1625 }
 0x241   : > { %v1624_v56 = vpop.permute.xlu0 %1623 }
 0x242   : > { %v1629_v9 = vsel %vm745_vm7, %v1624_v56, %v1626_v48  ;;  %v1634_v1 = vadd.f32 %v1624_v56, %v1594_v46 }
 0x243   : > { %v1635_v61 = vadd.f32 %v1629_v9, %v1595_v44  ;;  %v1905_v18 = vpop.permute.xlu1 %1904  ;;  %v2128_v9 = vsel %vm663_vm5, %v4799_v41, %v4811_v14 }
 0x244   : > { %v1915_v34 = vadd.f32 %v1905_v18, %v1875_v58 }
 0x245   : > { %v1628_v4 = vpop.permute.xlu0 %1627  ;;  %1642 = vrot.lane.b32.xlu0 %v1635_v61, %s3197_s29 }
 0x246   : > { %v1630_v6 = vsel %vm745_vm7, %v1626_v48, %v1628_v4  ;;  %v2254_v48 = vmul.f32 %v5228_v55, %v5207_v40  ;;  %v2265_v40 = vmul.f32 %v5227_v52, %v3795_v27  ;;  %v2384_v52 = vsel %vm616_vm4, %v4813_v63, %v4818_v35 }
 0x247   : > { %v1636_v8 = vadd.f32 %v1630_v6, %v1596_v3  ;;  %v1909_v11 = vpop.permute.xlu1 %1908  ;;  %v2134_v3 = vadd.f32 %v2128_v9, %v2094_v47  ;;  %v756_v9 = vlaneseq }
 0x248   : > { %v2267_v41 = vadd.f32 %v2264_v33, %v2254_v48  ;;  %v2268_v27 = vadd.f32 %v2265_v40, %v2255_v10 }
 0x249   : > { %v1907_v43 = vpop.permute.xlu0 %1906  ;;  %1644 = vrot.lane.b32.xlu1 %v1636_v8, %s3197_s29  ;;  %v757_v7 = vshrl.u32 %v756_v9, 7 }
 0x24a   : > { %v1910_v51 = vsel %vm745_vm7, %v1905_v18, %v1907_v43  ;;  %v1911_v53 = vsel %vm745_vm7, %v1907_v43, %v1909_v11  ;;  %v2310_v6 = vadd.f32 %v4743_v49, %v2267_v41  ;;  %v2311_v22 = vadd.f32 %v4733_v13, %v2268_v27  ;;  %v3055_v41 = vld [vmem:[%s4988_s4 + $0x4] sm:$0x3] }
 0x24b   : > { %v1916_v32 = vadd.f32 %v1910_v51, %v1876_v30  ;;  %v1917_v59 = vadd.f32 %v1911_v53, %v1877_v37  ;;  %v2164_v39 = vpop.permute.xlu1 %2163  ;;  %v2385_v30 = vsel %vm616_vm4, %v4818_v35, %v4821_v0  ;;  %v2389_v53 = vadd.f32 %v4813_v63, %v4791_v36  ;;  %v2701_v36 = vld [vmem:[%s4990_s6] sm:$0xf] }
 0x24c   : > { %v2350_v16 = vadd.f32 %v2345_v62, %v2310_v6  ;;  %v2351_v37 = vadd.f32 %v4787_v50, %v2311_v22  ;;  %v2709_v63 = vld [vmem:[%s4991_s7] sm:$0xf]  ;;  %v4906_v40 = vsub.s32 1, %v757_v7  ;;  %v3084_v22 = vld [vmem:[%s4988_s4 + $0x8] sm:$0x3] }
 0x24d   : > { %v2162_v24 = vpop.permute.xlu0 %2161  ;;  %1936 = vrot.lane.b32.xlu0 %v1916_v32, %s3202_s16  ;;  %1938 = vrot.lane.b32.xlu1 %v1917_v59, %s3202_s16 }
 0x24e   : > { %v2167_v44 = vsel %vm704_vm6, %v2162_v24, %v2164_v39  ;;  %v2172_v18 = vadd.f32 %v2162_v24, %v2132_v25  ;;  %v2390_v49 = vadd.f32 %v2384_v52, %v2350_v16  ;;  %v2391_v32 = vadd.f32 %v2385_v30, %v2351_v37  ;;  %v3099_v30 = vld [vmem:[%s4988_s4 + $0xa] sm:$0x3] }
 0x24f   : > { %v2419_v28 = vpop.permute.xlu1 %2418  ;;  %v2173_v21 = vadd.f32 %v2167_v44, %v2133_v5 }
 0x250   : > { %v2429_v0 = vadd.f32 %v2419_v28, %v2389_v53 }
 0x251   : > { %v2166_v54 = vpop.permute.xlu0 %2165  ;;  %1640 = vrot.lane.b32.xlu0 %v1634_v1, %s3197_s29  ;;  %1934 = vrot.lane.b32.xlu1 %v1915_v34, %s3202_s16 }
 0x252   : > { %v2168_v61 = vsel %vm704_vm6, %v2164_v39, %v2166_v54 }
 0x253   : > { %v2423_v56 = vpop.permute.xlu1 %2422  ;;  %v2174_v29 = vadd.f32 %v2168_v61, %v2134_v3  ;;  %v4901_v61 = vsub.s32 0, %v757_v7  ;;  %v754_v3 = vld [vmem:[%s4988_s4] sm:$0x3] }
 0x255   : > { %v2421_v38 = vpop.permute.xlu0 %2420  ;;  %v759_v62 = vrot.slane %v754_v3, %v4901_v61 }
 0x256   : > { %v2424_v8 = vsel %vm663_vm5, %v2419_v28, %v2421_v38  ;;  %v2425_v15 = vsel %vm663_vm5, %v2421_v38, %v2423_v56 }
 0x257   : > { %v2204_v12 = vpop.permute.xlu1 %2203  ;;  %v2430_v11 = vadd.f32 %v2424_v8, %v2390_v49  ;;  %v2431_v24 = vadd.f32 %v2425_v15, %v2391_v32 }
 0x259   : > { %v2202_v23 = vpop.permute.xlu0 %2201 }
 0x25a   : > { %v2207_v4 = vsel %vm745_vm7, %v2202_v23, %v2204_v12  ;;  %v2212_v26 = vadd.f32 %v2202_v23, %v2172_v18  ;;  %v763_v18 = vrot.slane %v754_v3, %v4906_v40 }
 0x25b   : > { %v2213_v14 = vadd.f32 %v2207_v4, %v2173_v21  ;;  %v2459_v55 = vpop.permute.xlu1 %2458 }
 0x25c   : > { %v2469_v1 = vadd.f32 %v2459_v55, %v2429_v0 }
 0x25d   : > { %v2206_v31 = vpop.permute.xlu0 %2205  ;;  %2233 = vrot.lane.b32.xlu0 %v2213_v14, %s3203_s17 }
 0x25e   : > { %v2208_v20 = vsel %vm745_vm7, %v2204_v12, %v2206_v31  ;;  %v3040_v12 = vld [vmem:[%s4988_s4 + $0x2] sm:$0x3]  ;;  %v1353_v31 = vrot.slane %v3055_v41, %v4901_v61 }
 0x25f   : > { %v2214_v45 = vadd.f32 %v2208_v20, %v2174_v29  ;;  %v2463_v43 = vpop.permute.xlu1 %2462  ;;  %v1056_v4 = vrot.slane %v3040_v12, %v4901_v61  ;;  %v1060_v25 = vrot.slane %v3040_v12, %v4906_v40 }
 0x261   : > { %v2461_v17 = vpop.permute.xlu0 %2460  ;;  %2235 = vrot.lane.b32.xlu1 %v2214_v45, %s3203_s17  ;;  %2231 = vrot.lane.b32.xlu0 %v2212_v26, %s3203_s17 }
 0x262   : > { %v2464_v51 = vsel %vm704_vm6, %v2459_v55, %v2461_v17  ;;  %v2465_v59 = vsel %vm704_vm6, %v2461_v17, %v2463_v43  ;;  %v1357_v55 = vrot.slane %v3055_v41, %v4906_v40 }
 0x263   : > { %v2470_v42 = vadd.f32 %v2464_v51, %v2430_v11  ;;  %v2501_v46 = vpop.permute.xlu1 %2500  ;;  %v2471_v50 = vadd.f32 %v2465_v59, %v2431_v24  ;;  %v1928_v51 = vrot.slane %v3084_v22, %v4906_v40  ;;  %v2225_v24 = vrot.slane %v3099_v30, %v4906_v40 }
 0x265   : > { %v2499_v13 = vpop.permute.xlu0 %2498 }
 0x266   : > { %v2504_v35 = vsel %vm745_vm7, %v2499_v13, %v2501_v46  ;;  %v2509_v2 = vadd.f32 %v2499_v13, %v2469_v1  ;;  %v1924_v13 = vrot.slane %v3084_v22, %v4901_v61  ;;  %v5233_v22 = vmov 0.0  }
 0x267   : > { %v2510_v58 = vadd.f32 %v2504_v35, %v2470_v42  ;;  %v772_v28 = vpop.permute.xlu1 %771 }
 0x269   : > { %v2503_v39 = vpop.permute.xlu0 %2502  ;;  %2530 = vrot.lane.b32.xlu1 %v2510_v58, %s3204_s18 }
 0x26a   : > { %v2505_v34 = vsel %vm745_vm7, %v2501_v46, %v2503_v39  ;;  %v3114_v39 = vld [vmem:[%s4988_s4 + $0xc] sm:$0x3] }
 0x26b   : > { %v2511_v54 = vadd.f32 %v2505_v34, %v2471_v50  ;;  %v1069_v38 = vpop.permute.xlu1 %1068  ;;  %v2221_v50 = vrot.slane %v3099_v30, %v4901_v61 }
 0x26d   : > { %2532 = vrot.lane.b32.xlu0 %v2511_v54, %s3204_s18  ;;  %2528 = vrot.lane.b32.xlu1 %v2509_v2, %s3204_s18  ;;  %v774_v19 = vpop.permute.xlu0 %773 }
 0x26e   : > { %v777_v45 = vsel %vm775_vm9, %v772_v28, %v774_v19 }
 0x26f   : > { %v770_v57 = vpop.permute.xlu1 %769  ;;  %v781_v43 = vmul.f32 %v777_v45, %v763_v18 }
 0x270   : > { %v776_v20 = vsel %vm775_vm9, %v770_v57, %v772_v28  ;;  %v2518_v57 = vrot.slane %v3114_v39, %v4901_v61 }
 0x271   : > { %2704 = vperm.xlu0 %3151, %v2701_v36   ;;  %2712 = vperm.xlu1 %3152, %v2709_v63   ;;  %v1071_v60 = vpop.permute.xlu0 %1070  ;;  %v780_v17 = vmul.f32 %v776_v20, %v759_v62 }
 0x272   : > { %v1074_v29 = vsel %vm1072_vm8, %v1069_v38, %v1071_v60 }
 0x273   : > { %v1078_v8 = vmul.f32 %v1074_v29, %v1060_v25 }
 0x275   : > { %v1067_v56 = vpop.permute.xlu0 %1066  ;;  %v1080_v42 = vadd.f32 %v1078_v8, %v781_v43 }
 0x276   : > { %v1073_v14 = vsel %vm1072_vm8, %v1067_v56, %v1069_v38  ;;  %v2522_v38 = vrot.slane %v3114_v39, %v4906_v40  ;;  %v4944_v39 = vld [vmem:[%s3290_s26] sm:$0xff] }
 0x277   : > { %v1077_v16 = vmul.f32 %v1073_v14, %v1056_v4 }
 0x279   : > { %v1079_v15 = vadd.f32 %v1077_v16, %v780_v17 }
 0x283   : > { %v1366_v44 = vpop.permute.xlu1 %1365  ;;  %v1368_v33 = vpop.permute.xlu0 %1367 }
 0x284   : > { %v1371_v26 = vsel %vm1369_vm10, %v1366_v44, %v1368_v33 }
 0x285   : > { %v1375_v37 = vmul.f32 %v1371_v26, %v1357_v55  ;;  %v2561_v26 = vld [vmem:[%s4989_s5] sm:$0xf] }
 0x287   : > { %v1364_v48 = vpop.permute.xlu1 %1363  ;;  %v1377_v1 = vadd.f32 %v1375_v37, %v1080_v42 }
 0x288   : > { %v1370_v27 = vsel %vm1369_vm10, %v1364_v48, %v1366_v44 }
 0x289   : > { %v1374_v49 = vmul.f32 %v1370_v27, %v1353_v31 }
 0x28b   : > { %v1376_v0 = vadd.f32 %v1374_v49, %v1079_v15 }
 0x2b7   : > { %v1643_v5 = vpop.permute.xlu0 %1642 }
 0x2bb   : > { %v1645_v47 = vpop.permute.xlu1 %1644 }
 0x2bc   : > { %v1647_v35 = vsel %vm704_vm6, %v1643_v5, %v1645_v47 }
 0x2bd   : > { %v1651_v28 = vadd.f32 %v1647_v35, %v1377_v1 }
 0x2bf   : > { %v1937_v23 = vpop.permute.xlu0 %1936  ;;  %v1939_v21 = vpop.permute.xlu1 %1938 }
 0x2c0   : > { %v1942_v32 = vsel %vm1940_vm11, %v1937_v23, %v1939_v21 }
 0x2c1   : > { %v1946_v34 = vmul.f32 %v1942_v32, %v1928_v51 }
 0x2c3   : > { %v1641_v10 = vpop.permute.xlu0 %1640  ;;  %v1935_v52 = vpop.permute.xlu1 %1934  ;;  %v1948_v56 = vadd.f32 %v1946_v34, %v1651_v28  ;;  %v5234_v34 = vld [vmem:[#allocation4_spill] sm:$0xff] }
 0x2c4   : > { %v1941_v59 = vsel %vm1940_vm11, %v1935_v52, %v1937_v23  ;;  %v1646_v46 = vsel %vm704_vm6, %v1641_v10, %v1643_v5 }
 0x2c5   : > { %v1945_v2 = vmul.f32 %v1941_v59, %v1924_v13  ;;  %v1650_v36 = vadd.f32 %v1646_v46, %v1376_v0 }
 0x2c7   : > { %v1947_v33 = vadd.f32 %v1945_v2, %v1650_v36 }
 0x2cf   : > { %v2234_v6 = vpop.permute.xlu0 %2233 }
 0x2d3   : > { %v2236_v11 = vpop.permute.xlu1 %2235  ;;  %v2232_v53 = vpop.permute.xlu0 %2231 }
 0x2d4   : > { %v2239_v58 = vsel %vm2237_vm12, %v2234_v6, %v2236_v11  ;;  %v2238_v54 = vsel %vm2237_vm12, %v2232_v53, %v2234_v6 }
 0x2d5   : > { %v2243_v19 = vmul.f32 %v2239_v58, %v2225_v24  ;;  %v2242_v60 = vmul.f32 %v2238_v54, %v2221_v50 }
 0x2d7   : > { %v2245_v9 = vadd.f32 %v2243_v19, %v1948_v56  ;;  %v2244_v7 = vadd.f32 %v2242_v60, %v1947_v33 }
 0x2db   : > { %v2531_v63 = vpop.permute.xlu1 %2530 }
 0x2df   : > { %v2533_v44 = vpop.permute.xlu0 %2532  ;;  %v2529_v48 = vpop.permute.xlu1 %2528 }
 0x2e0   : > { %v2536_v5 = vsel %vm2534_vm13, %v2531_v63, %v2533_v44  ;;  %v2535_v47 = vsel %vm2534_vm13, %v2529_v48, %v2531_v63 }
 0x2e1   : > { %v2540_v23 = vmul.f32 %v2536_v5, %v2522_v38  ;;  %v2539_v21 = vmul.f32 %v2535_v47, %v2518_v57 }
 0x2e3   : > { %v2542_v12 = vadd.f32 %v2540_v23, %v2245_v9  ;;  %v2541_v10 = vadd.f32 %v2539_v21, %v2244_v7 }
 0x2e5   : > { %v2546_v3 = vmul.f32 %v2542_v12, %v2542_v12  ;;  %v2545_v4 = vmul.f32 %v2541_v10, %v2541_v10  ;;  %v2544_v20 = vmul.f32 0.5, %v2542_v12  ;;  %v2543_v27 = vmul.f32 0.5, %v2541_v10 }
 0x2e7   : > { %v2548_v41 = vmul.f32 %v2546_v3, %v2542_v12  ;;  %v2547_v25 = vmul.f32 %v2545_v4, %v2541_v10 }
 0x2e9   : > { %v2550_v40 = vmul.f32 0.044715, %v2548_v41  ;;  %v2549_v14 = vmul.f32 0.044715, %v2547_v25 }
 0x2eb   : > { %v2552_v62 = vadd.f32 %v2550_v40, %v2542_v12  ;;  %v2551_v61 = vadd.f32 %v2549_v14, %v2541_v10 }
 0x2ed   : > { %v2554_v29 = vmul.f32 0.7978846, %v2552_v62  ;;  %v2553_v31 = vmul.f32 0.7978846, %v2551_v61 }
 0x2ef   : > { %3158 = vtanh.f32 %v2554_v29 }
 0x2f0   : > { %3160 = vtanh.f32 %v2553_v31 }
 0x2f9   : > { %v3159_v6 = vpop.eup %3158 }
 0x2fa   : > { %v3161_v18 = vpop.eup %3160  ;;  %v2558_v55 = vadd.f32 1.0, %v3159_v6 }
 0x2fb   : > { %v2557_v52 = vadd.f32 1.0, %v3161_v18 }
 0x2fc   : > { %v2560_v45 = vmul.f32 %v2558_v55, %v2544_v20 }
 0x2fd   : > { %v2559_v16 = vmul.f32 %v2557_v52, %v2543_v27 }
 0x2fe   : > { %2566 = vmatprep.subr.mxu1 %v2560_v45 }
 0x2ff   : > { %2567 = vmatpush1.msra.mxu1 %v2559_v16 }
 0x300   : > { %3115 = vmatmul.mubr.msk.f32.vlgmr.msra.gmra.mrb[0].mxu1 %vm2562_vm14, %v2561_v26 }
 0x301   : > { %2913 = vmatprep.mubr.f32.mxu1 %v5233_v22 }
 0x3d3   : > { %v2632_v8 = vpop.f32.mrb[0].mxu1 }
 0x3d4   : > { %v2639_v17 = vmul.f32 %v2632_v8, %v2632_v8  ;;  %v2634_v49 = vpop.f32.mrb[1].mxu1  ;;  %v2637_v46 = vmul.f32 0.5, %v2632_v8 }
 0x3d5   : > { %v2640_v30 = vmul.f32 %v2634_v49, %v2634_v49  ;;  %v2638_v35 = vmul.f32 0.5, %v2634_v49 }
 0x3d6   : > { %v2641_v43 = vmul.f32 %v2639_v17, %v2632_v8 }
 0x3d7   : > { %v2642_v37 = vmul.f32 %v2640_v30, %v2634_v49 }
 0x3d8   : > { %v2643_v51 = vmul.f32 0.044715, %v2641_v43 }
 0x3d9   : > { %v2644_v11 = vmul.f32 0.044715, %v2642_v37 }
 0x3da   : > { %v2645_v15 = vadd.f32 %v2643_v51, %v2632_v8  ;;  %v2713_v51 = vpop.permute.xlu1 %2712 }
 0x3db   : > { %v2646_v32 = vadd.f32 %v2644_v11, %v2634_v49  ;;  %v2705_v49 = vpop.permute.xlu0 %2704 }
 0x3dc   : > { %v2647_v13 = vmul.f32 0.7978846, %v2645_v15 }
 0x3dd   : > { %v2648_v53 = vmul.f32 0.7978846, %v2646_v32  ;;  %v2717_v32 = vld [vmem:[%s4992_s8] sm:$0xff] }
 0x3de   : > { %3162 = vtanh.f32 %v2647_v13  ;;  %v2718_v13 = vld [vmem:[%s4992_s8 + $0x8] sm:$0xff] }
 0x3df   : > { %3164 = vtanh.f32 %v2648_v53 }
 0x3e8   : > { %v3163_v42 = vpop.eup %3162 }
 0x3e9   : > { %v3165_v59 = vpop.eup %3164  ;;  %v2651_v24 = vadd.f32 1.0, %v3163_v42 }
 0x3ea   : > { %v2652_v0 = vadd.f32 1.0, %v3165_v59 }
 0x3eb   : > { %v2653_v58 = vmul.f32 %v2651_v24, %v2637_v46 }
 0x3ec   : > { %v2654_v50 = vmul.f32 %v2652_v0, %v2638_v35 }
 0x3ed   : > { %v2656_v1 = vadd.f32 %v4944_v39, %v2653_v58 }
 0x3ee   : > { %v2657_v54 = vadd.f32 %v2654_v50, %v5234_v34 }
 0x3ef   : > { %v2658_v2 = vsel %vm372_vm0, %v2656_v1, 0.0 }
 0x3f0   : > { %v2659_v36 = vrot.slane %v2658_v2, 4  ;;  %v2665_v63 = vsel %vm372_vm0, %v2657_v54, 0.0 }
 0x3f1   : > { %v2666_v28 = vrot.slane %v2665_v63, 4 }
 0x3f2   : > { %v2660_v19 = vadd.f32 %v2659_v36, %v2658_v2 }
 0x3f3   : > { %v2667_v38 = vadd.f32 %v2666_v28, %v2665_v63 }
 0x3f4   : > { %v2661_v60 = vrot.slane %v2660_v19, 2 }
 0x3f5   : > { %v2668_v57 = vrot.slane %v2667_v38, 2 }
 0x3f6   : > { %v2662_v56 = vadd.f32 %v2661_v60, %v2660_v19 }
 0x3f7   : > { %v2669_v44 = vadd.f32 %v2668_v57, %v2667_v38 }
 0x3f8   : > { %v2663_v33 = vrot.slane %v2662_v56, 1 }
 0x3f9   : > { %v2670_v48 = vrot.slane %v2669_v44, 1 }
 0x3fa   : > { %v2664_v5 = vadd.f32 %v2663_v33, %v2662_v56 }
 0x3fb   : > { %v2671_v9 = vadd.f32 %v2670_v48, %v2669_v44 }
 0x3fc   : > { %v2673_v47 = vmul.f32 0.25, %v2664_v5 }
 0x3fd   : > { %v2674_v23 = vmul.f32 0.25, %v2671_v9 }
 0x3fe   : > { %v2675_v7 = vsub.f32 %v2656_v1, %v2673_v47 }
 0x3ff   : > { %v2676_v21 = vsub.f32 %v2657_v54, %v2674_v23 }
 0x400   : > { %v2677_v12 = vmul.f32 %v2675_v7, %v2675_v7 }
 0x401   : > { %v2678_v10 = vmul.f32 %v2676_v21, %v2676_v21 }
 0x402   : > { %v2679_v3 = vsel %vm372_vm0, %v2677_v12, 0.0 }
 0x403   : > { %v2680_v4 = vrot.slane %v2679_v3, 4  ;;  %v2686_v41 = vsel %vm372_vm0, %v2678_v10, 0.0 }
 0x404   : > { %v2687_v25 = vrot.slane %v2686_v41, 4 }
 0x405   : > { %v2681_v40 = vadd.f32 %v2680_v4, %v2679_v3 }
 0x406   : > { %v2688_v14 = vadd.f32 %v2687_v25, %v2686_v41 }
 0x407   : > { %v2682_v62 = vrot.slane %v2681_v40, 2 }
 0x408   : > { %v2689_v61 = vrot.slane %v2688_v14, 2 }
 0x409   : > { %v2683_v29 = vadd.f32 %v2682_v62, %v2681_v40 }
 0x40a   : > { %v2690_v31 = vadd.f32 %v2689_v61, %v2688_v14 }
 0x40b   : > { %v2684_v6 = vrot.slane %v2683_v29, 1 }
 0x40c   : > { %v2691_v18 = vrot.slane %v2690_v31, 1 }
 0x40d   : > { %v2685_v20 = vadd.f32 %v2684_v6, %v2683_v29  ;;  %v2844_v6 = vld [vmem:[%s4993_s9] sm:$0xf] }
 0x40e   : > { %v2692_v55 = vadd.f32 %v2691_v18, %v2690_v31 }
 0x40f   : > { %v2693_v27 = vmul.f32 0.25, %v2685_v20 }
 0x410   : > { %v2694_v52 = vmul.f32 0.25, %v2692_v55 }
 0x411   : > { %v2695_v45 = vadd.f32 1e-05, %v2693_v27 }
 0x412   : > { %v2696_v16 = vadd.f32 1e-05, %v2694_v52 }
 0x413   : > { %3166 = vrsqrt.f32 %v2695_v45 }
 0x414   : > { %3168 = vrsqrt.f32 %v2696_v16 }
 0x41d   : > { %v3167_v26 = vpop.eup %3166 }
 0x41e   : > { %v3169_v8 = vpop.eup %3168  ;;  %v2699_v17 = vmul.f32 %v3167_v26, %v2675_v7 }
 0x41f   : > { %v2700_v30 = vmul.f32 %v3169_v8, %v2676_v21 }
 0x420   : > { %v2707_v43 = vmul.f32 %v2705_v49, %v2699_v17 }
 0x421   : > { %v2708_v37 = vmul.f32 %v2705_v49, %v2700_v30 }
 0x422   : > { %v4954_v15 = vadd.f32 %v2713_v51, %v2707_v43 }
 0x423   : > { %v4952_v11 = vadd.f32 %v2713_v51, %v2708_v37 }
 0x425   : > { %3116 = vmatprep.subr.msk.mxu0 %vm372_vm0, %v4952_v11 }
 0x426   : > { %3117 = vmatpush1.msk.msra.mxu0 %vm372_vm0, %v4954_v15 }
 0x427   : > { %3118 = vmatmul.mubr.msk.f32.vlgmr.msra.gmra.mrb[2].mxu0 %vm368_vm1, %v2717_v32 }
 0x428   : > { %2801 = vmatprep.mubr.f32.mxu0 %v5233_v22 }
 0x42b   : > { %3119 = vmatmul.mubr.msk.f32.gmra.mrb[4].mxu0 %vm368_vm1, %v2718_v13 }
 0x4fa   : > { %v2797_v53 = vpop.f32.mrb[2].mxu0 }
 0x4fb   : > { %v2812_v42 = vmul.f32 %v2797_v53, %v2797_v53  ;;  %v2799_v59 = vpop.f32.mrb[3].mxu0  ;;  %v2808_v12 = vmul.f32 0.5, %v2797_v53 }
 0x4fc   : > { %v2813_v46 = vmul.f32 %v2799_v59, %v2799_v59  ;;  %v2809_v4 = vmul.f32 0.5, %v2799_v59 }
 0x4fd   : > { %v2816_v24 = vmul.f32 %v2812_v42, %v2797_v53 }
 0x4fe   : > { %v2817_v35 = vmul.f32 %v2813_v46, %v2799_v59  ;;  %v2803_v0 = vpop.f32.mrb[4].mxu0 }
 0x4ff   : > { %v2820_v58 = vmul.f32 0.044715, %v2816_v24  ;;  %v2814_v50 = vmul.f32 %v2803_v0, %v2803_v0  ;;  %v2805_v1 = vpop.f32.mrb[5].mxu0  ;;  %v2810_v10 = vmul.f32 0.5, %v2803_v0 }
 0x500   : > { %v2821_v54 = vmul.f32 0.044715, %v2817_v35  ;;  %v2815_v2 = vmul.f32 %v2805_v1, %v2805_v1  ;;  %v2811_v41 = vmul.f32 0.5, %v2805_v1 }
 0x501   : > { %v2824_v36 = vadd.f32 %v2820_v58, %v2797_v53  ;;  %v2818_v22 = vmul.f32 %v2814_v50, %v2803_v0 }
 0x502   : > { %v2825_v63 = vadd.f32 %v2821_v54, %v2799_v59  ;;  %v2819_v28 = vmul.f32 %v2815_v2, %v2805_v1 }
 0x503   : > { %v2828_v19 = vmul.f32 0.7978846, %v2824_v36  ;;  %v2822_v38 = vmul.f32 0.044715, %v2818_v22 }
 0x504   : > { %v2829_v60 = vmul.f32 0.7978846, %v2825_v63  ;;  %v2823_v57 = vmul.f32 0.044715, %v2819_v28 }
 0x505   : > { %3170 = vtanh.f32 %v2828_v19  ;;  %v2826_v56 = vadd.f32 %v2822_v38, %v2803_v0 }
 0x506   : > { %3172 = vtanh.f32 %v2829_v60  ;;  %v2827_v44 = vadd.f32 %v2823_v57, %v2805_v1 }
 0x507   : > { %v2830_v33 = vmul.f32 0.7978846, %v2826_v56 }
 0x508   : > { %v2831_v48 = vmul.f32 0.7978846, %v2827_v44 }
 0x509   : > { %3174 = vtanh.f32 %v2830_v33 }
 0x50a   : > { %3176 = vtanh.f32 %v2831_v48 }
 0x50f   : > { %v3171_v5 = vpop.eup %3170 }
 0x510   : > { %v3173_v9 = vpop.eup %3172  ;;  %v2836_v47 = vadd.f32 1.0, %v3171_v5 }
 0x511   : > { %v2837_v7 = vadd.f32 1.0, %v3173_v9 }
 0x512   : > { %v2840_v40 = vmul.f32 %v2836_v47, %v2808_v12 }
 0x513   : > { %v3175_v23 = vpop.eup %3174  ;;  %v2841_v61 = vmul.f32 %v2837_v7, %v2809_v4 }
 0x514   : > { %v3177_v21 = vpop.eup %3176  ;;  %v2838_v3 = vadd.f32 1.0, %v3175_v23 }
 0x515   : > { %v2839_v25 = vadd.f32 1.0, %v3177_v21 }
 0x516   : > { %v2842_v14 = vmul.f32 %v2838_v3, %v2810_v10 }
 0x517   : > { %v2843_v62 = vmul.f32 %v2839_v25, %v2811_v41 }
 0x518   : > { %v3127_v29 = vpack.c.bf16 %v2842_v14, %v2840_v40 }
 0x519   : > { %v3125_v31 = vpack.c.bf16 %v2843_v62, %v2841_v61 }
 0x51b   : > { %3126 = vmatprep.subr.bf16.mxu1 %v3125_v31 }
 0x51c   : > { %3128 = vmatpush1.bf16.msra.mxu1 %v3127_v29 }
 0x51f   : > { %3120 = vmatmul.mubr.msk.f32.vlgmr.msra.gmra.mrb[2].mxu1 %vm2845_vm15, %v2844_v6 }
 0x5f2   : > { %v2915_v18 = vpop.f32.mrb[2].mxu1 }
 0x5f3   : > { %v2922_v20 = vmul.f32 %v2915_v18, %v2915_v18  ;;  %v2917_v55 = vpop.f32.mrb[3].mxu1  ;;  %v2920_v51 = vmul.f32 0.5, %v2915_v18 }
 0x5f4   : > { %v2923_v27 = vmul.f32 %v2917_v55, %v2917_v55  ;;  %v2921_v13 = vmul.f32 0.5, %v2917_v55 }
 0x5f5   : > { %v2924_v52 = vmul.f32 %v2922_v20, %v2915_v18 }
 0x5f6   : > { %v2925_v45 = vmul.f32 %v2923_v27, %v2917_v55 }
 0x5f7   : > { %v2926_v16 = vmul.f32 0.044715, %v2924_v52 }
 0x5f8   : > { %v2927_v26 = vmul.f32 0.044715, %v2925_v45 }
 0x5f9   : > { %v2928_v8 = vadd.f32 %v2926_v16, %v2915_v18 }
 0x5fa   : > { %v2929_v17 = vadd.f32 %v2927_v26, %v2917_v55 }
 0x5fb   : > { %v2930_v49 = vmul.f32 0.7978846, %v2928_v8 }
 0x5fc   : > { %v2931_v30 = vmul.f32 0.7978846, %v2929_v17 }
 0x5fd   : > { %3178 = vtanh.f32 %v2930_v49 }
 0x5fe   : > { %3180 = vtanh.f32 %v2931_v30 }
 0x607   : > { %v3179_v43 = vpop.eup %3178 }
 0x608   : > { %v3181_v37 = vpop.eup %3180  ;;  %v2934_v32 = vadd.f32 1.0, %v3179_v43 }
 0x609   : > { %v2935_v53 = vadd.f32 1.0, %v3181_v37 }
 0x60a   : > { %v2936_v42 = vmul.f32 %v2934_v32, %v2920_v51 }
 0x60b   : > { %v2937_v59 = vmul.f32 %v2935_v53, %v2921_v13 }
 0x60c   : > { %v2938_v46 = vadd.f32 %v2936_v42, %v4954_v15 }
 0x60d   : > { %v2939_v24 = vadd.f32 %v2937_v59, %v4952_v11 }
 0x60e   : > { %v2940_v35 = vadd.f32 %v4944_v39, %v2938_v46 }
 0x60f   : > { %v2941_v0 = vadd.f32 %v2939_v24, %v5234_v34 }
 0x611   : > { %v2944_v58 = vcombine.low %v2940_v35, %v2941_v0 }
 0x613   : > { %2946 = vst [vmem:[%s359_s30] sm:$0xff] %v2944_v58 }
 0x614 PF: > { %s20_s13 = sadd.s32 1, %s3189_s13  }
 0x615   : > { %p17_p4 = scmp.ge.s32.totalorder %s20_s13, 4  }
 0x617   :  { %19 = sbr.rel (!%p17_p4) target bundleno = 1 (0x1), region = 191 }

</bundles_post_ra>
